<compile_context>
chip_gen: v5e
topology: v5e:2x2
jax: 0.10.0
libtpu: 0.0.40
codegen_flags: <defaults>
</compile_context>

<pallas_src>
import jax
import jax.numpy as jnp
import numpy as np
from jax.experimental import pallas as pl
from jax.experimental.pallas import tpu as pltpu


def _make_fused_kernel(bb, H, W, scales):
    """Kernel over one (bb, H, W) block of pred/target/mask.

    Writes a (1, 128) lane-dense packed block:
      lane 2*s   : partial numerator  (sum of grad_x + grad_y at scale s)
      lane 2*s+1 : partial denominator (sum of subsampled mask at scale s)
    summed over the bb images in this block.
    """
    assert 2 * scales <= 128

    def kernel(pred_ref, target_ref, mask_ref, out_ref):
        # Index planes, hoisted (shared by all images / scales in the block).
        row = jax.lax.broadcasted_iota(jnp.int32, (H, W), 0)
        col = jax.lax.broadcasted_iota(jnp.int32, (H, W), 1)

        # Per-scale selection masks (subsample grid + in-bounds neighbour),
        # hoisted out of the per-image loop.
        sub_sel, vx_sel, vy_sel = [], [], []
        for s in range(scales):
            shift = 1 << s
            on_grid = jnp.logical_and((row & (shift - 1)) == 0,
                                      (col & (shift - 1)) == 0)
            sub_sel.append(on_grid)
            vx_sel.append(jnp.logical_and(on_grid, (col + shift) < W))
            vy_sel.append(jnp.logical_and(on_grid, (row + shift) < H))

        nums = [jnp.float32(0.0)] * scales
        dens = [jnp.float32(0.0)] * scales

        for i in range(bb):                       # static unroll over images
            pred = pred_ref[i]                    # (H, W)
            target = target_ref[i]
            mask = mask_ref[i]
            diff = mask * (pred - target)

            for s in range(scales):
                shift = 1 << s
                sx = (W - shift) % W              # roll by (n-k) == roll by -k
                sy = (H - shift) % H
                diff_xn = pltpu.roll(diff, shift=sx, axis=1) if sx else diff
                mask_xn = pltpu.roll(mask, shift=sx, axis=1) if sx else mask
                diff_yn = pltpu.roll(diff, shift=sy, axis=0) if sy else diff
                mask_yn = pltpu.roll(mask, shift=sy, axis=0) if sy else mask

                gx = jnp.abs(diff_xn - diff) * (mask_xn * mask)
                gy = jnp.abs(diff_yn - diff) * (mask_yn * mask)

                # Single merged cross-lane reduce per scale; edge validity and
                # subsample selection folded into one select per direction.
                contrib = (jnp.where(vx_sel[s], gx, 0.0)
                           + jnp.where(vy_sel[s], gy, 0.0))
                nums[s] = nums[s] + jnp.sum(contrib)
                dens[s] = dens[s] + jnp.sum(jnp.where(sub_sel[s], mask, 0.0))

        # Pack all per-scale partials into one lane-dense (1, 128) block.
        lane = jax.lax.broadcasted_iota(jnp.int32, (1, 128), 1)
        packed = jnp.zeros((1, 128), jnp.float32)
        for s in range(scales):
            packed = (packed
                      + jnp.where(lane == 2 * s, nums[s], 0.0)
                      + jnp.where(lane == 2 * s + 1, dens[s], 0.0))
        out_ref[...] = packed

    return kernel


def gradient_loss_forward(prediction, target, mask, scales=4):
    """Equivalent of GradientLoss(scales=scales, reduction='batch-based').forward."""
    prediction = prediction.astype(jnp.float32)
    target = target.astype(jnp.float32)
    mask = mask.astype(jnp.float32)
    B, H, W = prediction.shape

    # Pad once to (8, 128) alignment if needed so the single roll-based code
    # path stays layout-friendly. mask == 0 in the padding keeps the math exact
    # (no pad / no copy for already-aligned inputs, as in the demo below).
    Hp = -(-H // 8) * 8
    Wp = -(-W // 128) * 128
    if (Hp, Wp) != (H, W):
        pad = ((0, 0), (0, Hp - H), (0, Wp - W))
        prediction = jnp.pad(prediction, pad)
        target = jnp.pad(target, pad)
        mask = jnp.pad(mask, pad)

    # Pack as many images per block as fit a ~2 MiB-per-input DMA budget, so
    # each DMA moves large blocks while 3 inputs x 2 pipeline buffers stay well
    # under scoped VMEM on every generation (v5e 16 MiB default, v7x 64 MiB).
    img_bytes = Hp * Wp * 4
    budget = 2 * 1024 * 1024
    max_unroll = 8
    bb = 1
    for d in range(1, B + 1):
        if B % d == 0 and d <= max_unroll and d * img_bytes <= budget:
            bb = d
    nb = B // bb

    kernel = _make_fused_kernel(bb, Hp, Wp, scales)
    in_spec = pl.BlockSpec((bb, Hp, Wp), lambda b: (b, 0, 0))
    vmem_limit = int(min(64 * 1024 * 1024,
                         max(16 * 1024 * 1024, 8 * bb * img_bytes)))

    partials = pl.pallas_call(
        kernel,
        grid=(nb,),
        in_specs=[in_spec, in_spec, in_spec],
        out_specs=pl.BlockSpec((None, 1, 128), lambda b: (b, 0, 0)),
        out_shape=jax.ShapeDtypeStruct((nb, 1, 128), jnp.float32),
        compiler_params=pltpu.CompilerParams(
            dimension_semantics=("parallel",),
            vmem_limit_bytes=vmem_limit),
    )(prediction, target, mask)

    # Reduce packed partials: lane 2s = numerator, lane 2s+1 = sum(mask).
    nums = jnp.sum(partials[:, 0, 0:2 * scales:2], axis=0)   # (scales,)
    dens = jnp.sum(partials[:, 0, 1:2 * scales:2], axis=0)   # (scales,)
    # reduction_batch_based per scale: sum(image_loss)/sum(M), or 0 if sum(M)==0.
    per_scale = jnp.where(dens > 0, nums / jnp.maximum(dens, 1.0),
                          jnp.float32(0.0))
    return jnp.sum(per_scale)


# ---- pure-JAX reference (mirrors the PyTorch code) for a sanity check ----
def _ref_gradient_loss(prediction, target, mask, scales=4):
    total = jnp.float32(0.0)
    for scale in range(scales):
        step = 2 ** scale
        p = prediction[:, ::step, ::step]
        t = target[:, ::step, ::step]
        m = mask[:, ::step, ::step]
        M = jnp.sum(m, axis=(1, 2))
        diff = m * (p - t)
        gx = jnp.abs(diff[:, :, 1:] - diff[:, :, :-1]) * (m[:, :, 1:] * m[:, :, :-1])
        gy = jnp.abs(diff[:, 1:, :] - diff[:, :-1, :]) * (m[:, 1:, :] * m[:, :-1, :])
        image_loss = jnp.sum(gx, axis=(1, 2)) + jnp.sum(gy, axis=(1, 2))
        div = jnp.sum(M)
        total = total + jnp.where(div == 0, 0.0, jnp.sum(image_loss) / div)
    return total


if __name__ == "__main__":
    key = jax.random.PRNGKey(0)
    kp, kt, km = jax.random.split(key, 3)

    B, H, W = 2, 32, 256   # aligned; all four scales handled in one fused call
    prediction = jax.random.normal(kp, (B, H, W), dtype=jnp.float32)
    target = jax.random.normal(kt, (B, H, W), dtype=jnp.float32)
    mask = (jax.random.uniform(km, (B, H, W)) > 0.3).astype(jnp.float32)

    loss = gradient_loss_forward(prediction, target, mask, scales=4)
    loss = jax.block_until_ready(loss)

    ref = jax.block_until_ready(_ref_gradient_loss(prediction, target, mask, scales=4))
    np.testing.assert_allclose(np.asarray(loss), np.asarray(ref), rtol=1e-4, atol=1e-4)

    print("KERNEL_OK")
</pallas_src>

<mosaic_0001>
module attributes {stable_mosaic.version = 11 : i64} {
  func.func @kernel(%arg0: i32, %arg1: memref<2x32x256xf32, #tpu.memory_space<vmem>>, %arg2: memref<2x32x256xf32, #tpu.memory_space<vmem>>, %arg3: memref<2x32x256xf32, #tpu.memory_space<vmem>>, %arg4: memref<1x1x128xf32, #tpu.memory_space<vmem>>) attributes {dimension_semantics = [#tpu.dimension_semantics<parallel>], iteration_bounds = array<i64: 1>, scalar_prefetch = 0 : i64, scratch_operands = 0 : i64, tpu.core_type = #tpu.core_type<tc>, window_params = [{transform_indices = @transform_0, window_bounds = array<i64: 2, 32, 256>}, {transform_indices = @transform_1, window_bounds = array<i64: 2, 32, 256>}, {transform_indices = @transform_2, window_bounds = array<i64: 2, 32, 256>}, {transform_indices = @transform_3, window_bounds = array<i64: 1, 1, 128>}]} {
    %0 = tpu.iota {dimensions = array<i32: 0>} : vector<32x256xi32>
    %1 = tpu.iota {dimensions = array<i32: 1>} : vector<32x256xi32>
    %c0_i32 = arith.constant 0 : i32
    %2 = vector.broadcast %c0_i32 : i32 to vector<32x256xi32>
    %3 = arith.andi %0, %2 : vector<32x256xi32>
    %c0_i32_0 = arith.constant 0 : i32
    %4 = vector.broadcast %c0_i32_0 : i32 to vector<32x256xi32>
    %5 = arith.cmpi eq, %3, %4 : vector<32x256xi32>
    %c0_i32_1 = arith.constant 0 : i32
    %6 = vector.broadcast %c0_i32_1 : i32 to vector<32x256xi32>
    %7 = arith.andi %1, %6 : vector<32x256xi32>
    %c0_i32_2 = arith.constant 0 : i32
    %8 = vector.broadcast %c0_i32_2 : i32 to vector<32x256xi32>
    %9 = arith.cmpi eq, %7, %8 : vector<32x256xi32>
    %10 = arith.andi %5, %9 : vector<32x256xi1>
    %c1_i32 = arith.constant 1 : i32
    %11 = vector.broadcast %c1_i32 : i32 to vector<32x256xi32>
    %12 = arith.addi %1, %11 : vector<32x256xi32>
    %c256_i32 = arith.constant 256 : i32
    %13 = vector.broadcast %c256_i32 : i32 to vector<32x256xi32>
    %14 = arith.cmpi slt, %12, %13 : vector<32x256xi32>
    %15 = arith.andi %10, %14 : vector<32x256xi1>
    %c1_i32_3 = arith.constant 1 : i32
    %16 = vector.broadcast %c1_i32_3 : i32 to vector<32x256xi32>
    %17 = arith.addi %0, %16 : vector<32x256xi32>
    %c32_i32 = arith.constant 32 : i32
    %18 = vector.broadcast %c32_i32 : i32 to vector<32x256xi32>
    %19 = arith.cmpi slt, %17, %18 : vector<32x256xi32>
    %20 = arith.andi %10, %19 : vector<32x256xi1>
    %c1_i32_4 = arith.constant 1 : i32
    %21 = vector.broadcast %c1_i32_4 : i32 to vector<32x256xi32>
    %22 = arith.andi %0, %21 : vector<32x256xi32>
    %c0_i32_5 = arith.constant 0 : i32
    %23 = vector.broadcast %c0_i32_5 : i32 to vector<32x256xi32>
    %24 = arith.cmpi eq, %22, %23 : vector<32x256xi32>
    %c1_i32_6 = arith.constant 1 : i32
    %25 = vector.broadcast %c1_i32_6 : i32 to vector<32x256xi32>
    %26 = arith.andi %1, %25 : vector<32x256xi32>
    %c0_i32_7 = arith.constant 0 : i32
    %27 = vector.broadcast %c0_i32_7 : i32 to vector<32x256xi32>
    %28 = arith.cmpi eq, %26, %27 : vector<32x256xi32>
    %29 = arith.andi %24, %28 : vector<32x256xi1>
    %c2_i32 = arith.constant 2 : i32
    %30 = vector.broadcast %c2_i32 : i32 to vector<32x256xi32>
    %31 = arith.addi %1, %30 : vector<32x256xi32>
    %c256_i32_8 = arith.constant 256 : i32
    %32 = vector.broadcast %c256_i32_8 : i32 to vector<32x256xi32>
    %33 = arith.cmpi slt, %31, %32 : vector<32x256xi32>
    %34 = arith.andi %29, %33 : vector<32x256xi1>
    %c2_i32_9 = arith.constant 2 : i32
    %35 = vector.broadcast %c2_i32_9 : i32 to vector<32x256xi32>
    %36 = arith.addi %0, %35 : vector<32x256xi32>
    %c32_i32_10 = arith.constant 32 : i32
    %37 = vector.broadcast %c32_i32_10 : i32 to vector<32x256xi32>
    %38 = arith.cmpi slt, %36, %37 : vector<32x256xi32>
    %39 = arith.andi %29, %38 : vector<32x256xi1>
    %c3_i32 = arith.constant 3 : i32
    %40 = vector.broadcast %c3_i32 : i32 to vector<32x256xi32>
    %41 = arith.andi %0, %40 : vector<32x256xi32>
    %c0_i32_11 = arith.constant 0 : i32
    %42 = vector.broadcast %c0_i32_11 : i32 to vector<32x256xi32>
    %43 = arith.cmpi eq, %41, %42 : vector<32x256xi32>
    %c3_i32_12 = arith.constant 3 : i32
    %44 = vector.broadcast %c3_i32_12 : i32 to vector<32x256xi32>
    %45 = arith.andi %1, %44 : vector<32x256xi32>
    %c0_i32_13 = arith.constant 0 : i32
    %46 = vector.broadcast %c0_i32_13 : i32 to vector<32x256xi32>
    %47 = arith.cmpi eq, %45, %46 : vector<32x256xi32>
    %48 = arith.andi %43, %47 : vector<32x256xi1>
    %c4_i32 = arith.constant 4 : i32
    %49 = vector.broadcast %c4_i32 : i32 to vector<32x256xi32>
    %50 = arith.addi %1, %49 : vector<32x256xi32>
    %c256_i32_14 = arith.constant 256 : i32
    %51 = vector.broadcast %c256_i32_14 : i32 to vector<32x256xi32>
    %52 = arith.cmpi slt, %50, %51 : vector<32x256xi32>
    %53 = arith.andi %48, %52 : vector<32x256xi1>
    %c4_i32_15 = arith.constant 4 : i32
    %54 = vector.broadcast %c4_i32_15 : i32 to vector<32x256xi32>
    %55 = arith.addi %0, %54 : vector<32x256xi32>
    %c32_i32_16 = arith.constant 32 : i32
    %56 = vector.broadcast %c32_i32_16 : i32 to vector<32x256xi32>
    %57 = arith.cmpi slt, %55, %56 : vector<32x256xi32>
    %58 = arith.andi %48, %57 : vector<32x256xi1>
    %c7_i32 = arith.constant 7 : i32
    %59 = vector.broadcast %c7_i32 : i32 to vector<32x256xi32>
    %60 = arith.andi %0, %59 : vector<32x256xi32>
    %c0_i32_17 = arith.constant 0 : i32
    %61 = vector.broadcast %c0_i32_17 : i32 to vector<32x256xi32>
    %62 = arith.cmpi eq, %60, %61 : vector<32x256xi32>
    %c7_i32_18 = arith.constant 7 : i32
    %63 = vector.broadcast %c7_i32_18 : i32 to vector<32x256xi32>
    %64 = arith.andi %1, %63 : vector<32x256xi32>
    %c0_i32_19 = arith.constant 0 : i32
    %65 = vector.broadcast %c0_i32_19 : i32 to vector<32x256xi32>
    %66 = arith.cmpi eq, %64, %65 : vector<32x256xi32>
    %67 = arith.andi %62, %66 : vector<32x256xi1>
    %c8_i32 = arith.constant 8 : i32
    %68 = vector.broadcast %c8_i32 : i32 to vector<32x256xi32>
    %69 = arith.addi %1, %68 : vector<32x256xi32>
    %c256_i32_20 = arith.constant 256 : i32
    %70 = vector.broadcast %c256_i32_20 : i32 to vector<32x256xi32>
    %71 = arith.cmpi slt, %69, %70 : vector<32x256xi32>
    %72 = arith.andi %67, %71 : vector<32x256xi1>
    %c8_i32_21 = arith.constant 8 : i32
    %73 = vector.broadcast %c8_i32_21 : i32 to vector<32x256xi32>
    %74 = arith.addi %0, %73 : vector<32x256xi32>
    %c32_i32_22 = arith.constant 32 : i32
    %75 = vector.broadcast %c32_i32_22 : i32 to vector<32x256xi32>
    %76 = arith.cmpi slt, %74, %75 : vector<32x256xi32>
    %77 = arith.andi %67, %76 : vector<32x256xi1>
    %c0 = arith.constant 0 : index
    %c0_23 = arith.constant 0 : index
    %c0_24 = arith.constant 0 : index
    %78 = vector.load %arg1[%c0, %c0_23, %c0_24] : memref<2x32x256xf32, #tpu.memory_space<vmem>>, vector<1x32x256xf32>
    %79 = vector.shape_cast %78 : vector<1x32x256xf32> to vector<32x256xf32>
    %c0_25 = arith.constant 0 : index
    %c0_26 = arith.constant 0 : index
    %c0_27 = arith.constant 0 : index
    %80 = vector.load %arg2[%c0_25, %c0_26, %c0_27] : memref<2x32x256xf32, #tpu.memory_space<vmem>>, vector<1x32x256xf32>
    %81 = vector.shape_cast %80 : vector<1x32x256xf32> to vector<32x256xf32>
    %c0_28 = arith.constant 0 : index
    %c0_29 = arith.constant 0 : index
    %c0_30 = arith.constant 0 : index
    %82 = vector.load %arg3[%c0_28, %c0_29, %c0_30] : memref<2x32x256xf32, #tpu.memory_space<vmem>>, vector<1x32x256xf32>
    %83 = vector.shape_cast %82 : vector<1x32x256xf32> to vector<32x256xf32>
    %84 = arith.subf %79, %81 : vector<32x256xf32>
    %85 = arith.mulf %83, %84 : vector<32x256xf32>
    %c255_i32 = arith.constant 255 : i32
    %86 = tpu.dynamic_rotate %85 by %c255_i32 dim 1 : vector<32x256xf32>, i32 -> vector<32x256xf32>
    %c255_i32_31 = arith.constant 255 : i32
    %87 = tpu.dynamic_rotate %83 by %c255_i32_31 dim 1 : vector<32x256xf32>, i32 -> vector<32x256xf32>
    %c31_i32 = arith.constant 31 : i32
    %88 = tpu.dynamic_rotate %85 by %c31_i32 dim 0 : vector<32x256xf32>, i32 -> vector<32x256xf32>
    %c31_i32_32 = arith.constant 31 : i32
    %89 = tpu.dynamic_rotate %83 by %c31_i32_32 dim 0 : vector<32x256xf32>, i32 -> vector<32x256xf32>
    %90 = arith.subf %86, %85 : vector<32x256xf32>
    %91 = math.absf %90 : vector<32x256xf32>
    %92 = arith.mulf %87, %83 : vector<32x256xf32>
    %93 = arith.mulf %91, %92 : vector<32x256xf32>
    %94 = arith.subf %88, %85 : vector<32x256xf32>
    %95 = math.absf %94 : vector<32x256xf32>
    %96 = arith.mulf %89, %83 : vector<32x256xf32>
    %97 = arith.mulf %95, %96 : vector<32x256xf32>
    %cst = arith.constant 0.000000e+00 : f32
    %98 = vector.broadcast %cst : f32 to vector<32x256xf32>
    %99 = arith.select %15, %93, %98 : vector<32x256xi1>, vector<32x256xf32>
    %cst_33 = arith.constant 0.000000e+00 : f32
    %100 = vector.broadcast %cst_33 : f32 to vector<32x256xf32>
    %101 = arith.select %20, %97, %100 : vector<32x256xi1>, vector<32x256xf32>
    %102 = arith.addf %99, %101 : vector<32x256xf32>
    %103 = vector.shape_cast %102 : vector<32x256xf32> to vector<1x32x256xf32>
    %cst_34 = arith.constant dense<0.000000e+00> : vector<1xf32>
    %104 = vector.multi_reduction <add>, %103, %cst_34 [1, 2] : vector<1x32x256xf32> to vector<1xf32>
    %105 = vector.shape_cast %104 : vector<1xf32> to vector<1x1x1xf32>
    %106 = vector.extract %105[0, 0, 0] : f32 from vector<1x1x1xf32>
    %cst_35 = arith.constant 0.000000e+00 : f32
    %107 = arith.addf %cst_35, %106 : f32
    %cst_36 = arith.constant 0.000000e+00 : f32
    %108 = vector.broadcast %cst_36 : f32 to vector<32x256xf32>
    %109 = arith.select %10, %83, %108 : vector<32x256xi1>, vector<32x256xf32>
    %110 = vector.shape_cast %109 : vector<32x256xf32> to vector<1x32x256xf32>
    %cst_37 = arith.constant dense<0.000000e+00> : vector<1xf32>
    %111 = vector.multi_reduction <add>, %110, %cst_37 [1, 2] : vector<1x32x256xf32> to vector<1xf32>
    %112 = vector.shape_cast %111 : vector<1xf32> to vector<1x1x1xf32>
    %113 = vector.extract %112[0, 0, 0] : f32 from vector<1x1x1xf32>
    %cst_38 = arith.constant 0.000000e+00 : f32
    %114 = arith.addf %cst_38, %113 : f32
    %c254_i32 = arith.constant 254 : i32
    %115 = tpu.dynamic_rotate %85 by %c254_i32 dim 1 : vector<32x256xf32>, i32 -> vector<32x256xf32>
    %c254_i32_39 = arith.constant 254 : i32
    %116 = tpu.dynamic_rotate %83 by %c254_i32_39 dim 1 : vector<32x256xf32>, i32 -> vector<32x256xf32>
    %c30_i32 = arith.constant 30 : i32
    %117 = tpu.dynamic_rotate %85 by %c30_i32 dim 0 : vector<32x256xf32>, i32 -> vector<32x256xf32>
    %c30_i32_40 = arith.constant 30 : i32
    %118 = tpu.dynamic_rotate %83 by %c30_i32_40 dim 0 : vector<32x256xf32>, i32 -> vector<32x256xf32>
    %119 = arith.subf %115, %85 : vector<32x256xf32>
    %120 = math.absf %119 : vector<32x256xf32>
    %121 = arith.mulf %116, %83 : vector<32x256xf32>
    %122 = arith.mulf %120, %121 : vector<32x256xf32>
    %123 = arith.subf %117, %85 : vector<32x256xf32>
    %124 = math.absf %123 : vector<32x256xf32>
    %125 = arith.mulf %118, %83 : vector<32x256xf32>
    %126 = arith.mulf %124, %125 : vector<32x256xf32>
    %cst_41 = arith.constant 0.000000e+00 : f32
    %127 = vector.broadcast %cst_41 : f32 to vector<32x256xf32>
    %128 = arith.select %34, %122, %127 : vector<32x256xi1>, vector<32x256xf32>
    %cst_42 = arith.constant 0.000000e+00 : f32
    %129 = vector.broadcast %cst_42 : f32 to vector<32x256xf32>
    %130 = arith.select %39, %126, %129 : vector<32x256xi1>, vector<32x256xf32>
    %131 = arith.addf %128, %130 : vector<32x256xf32>
    %132 = vector.shape_cast %131 : vector<32x256xf32> to vector<1x32x256xf32>
    %cst_43 = arith.constant dense<0.000000e+00> : vector<1xf32>
    %133 = vector.multi_reduction <add>, %132, %cst_43 [1, 2] : vector<1x32x256xf32> to vector<1xf32>
    %134 = vector.shape_cast %133 : vector<1xf32> to vector<1x1x1xf32>
    %135 = vector.extract %134[0, 0, 0] : f32 from vector<1x1x1xf32>
    %cst_44 = arith.constant 0.000000e+00 : f32
    %136 = arith.addf %cst_44, %135 : f32
    %cst_45 = arith.constant 0.000000e+00 : f32
    %137 = vector.broadcast %cst_45 : f32 to vector<32x256xf32>
    %138 = arith.select %29, %83, %137 : vector<32x256xi1>, vector<32x256xf32>
    %139 = vector.shape_cast %138 : vector<32x256xf32> to vector<1x32x256xf32>
    %cst_46 = arith.constant dense<0.000000e+00> : vector<1xf32>
    %140 = vector.multi_reduction <add>, %139, %cst_46 [1, 2] : vector<1x32x256xf32> to vector<1xf32>
    %141 = vector.shape_cast %140 : vector<1xf32> to vector<1x1x1xf32>
    %142 = vector.extract %141[0, 0, 0] : f32 from vector<1x1x1xf32>
    %cst_47 = arith.constant 0.000000e+00 : f32
    %143 = arith.addf %cst_47, %142 : f32
    %c252_i32 = arith.constant 252 : i32
    %144 = tpu.dynamic_rotate %85 by %c252_i32 dim 1 : vector<32x256xf32>, i32 -> vector<32x256xf32>
    %c252_i32_48 = arith.constant 252 : i32
    %145 = tpu.dynamic_rotate %83 by %c252_i32_48 dim 1 : vector<32x256xf32>, i32 -> vector<32x256xf32>
    %c28_i32 = arith.constant 28 : i32
    %146 = tpu.dynamic_rotate %85 by %c28_i32 dim 0 : vector<32x256xf32>, i32 -> vector<32x256xf32>
    %c28_i32_49 = arith.constant 28 : i32
    %147 = tpu.dynamic_rotate %83 by %c28_i32_49 dim 0 : vector<32x256xf32>, i32 -> vector<32x256xf32>
    %148 = arith.subf %144, %85 : vector<32x256xf32>
    %149 = math.absf %148 : vector<32x256xf32>
    %150 = arith.mulf %145, %83 : vector<32x256xf32>
    %151 = arith.mulf %149, %150 : vector<32x256xf32>
    %152 = arith.subf %146, %85 : vector<32x256xf32>
    %153 = math.absf %152 : vector<32x256xf32>
    %154 = arith.mulf %147, %83 : vector<32x256xf32>
    %155 = arith.mulf %153, %154 : vector<32x256xf32>
    %cst_50 = arith.constant 0.000000e+00 : f32
    %156 = vector.broadcast %cst_50 : f32 to vector<32x256xf32>
    %157 = arith.select %53, %151, %156 : vector<32x256xi1>, vector<32x256xf32>
    %cst_51 = arith.constant 0.000000e+00 : f32
    %158 = vector.broadcast %cst_51 : f32 to vector<32x256xf32>
    %159 = arith.select %58, %155, %158 : vector<32x256xi1>, vector<32x256xf32>
    %160 = arith.addf %157, %159 : vector<32x256xf32>
    %161 = vector.shape_cast %160 : vector<32x256xf32> to vector<1x32x256xf32>
    %cst_52 = arith.constant dense<0.000000e+00> : vector<1xf32>
    %162 = vector.multi_reduction <add>, %161, %cst_52 [1, 2] : vector<1x32x256xf32> to vector<1xf32>
    %163 = vector.shape_cast %162 : vector<1xf32> to vector<1x1x1xf32>
    %164 = vector.extract %163[0, 0, 0] : f32 from vector<1x1x1xf32>
    %cst_53 = arith.constant 0.000000e+00 : f32
    %165 = arith.addf %cst_53, %164 : f32
    %cst_54 = arith.constant 0.000000e+00 : f32
    %166 = vector.broadcast %cst_54 : f32 to vector<32x256xf32>
    %167 = arith.select %48, %83, %166 : vector<32x256xi1>, vector<32x256xf32>
    %168 = vector.shape_cast %167 : vector<32x256xf32> to vector<1x32x256xf32>
    %cst_55 = arith.constant dense<0.000000e+00> : vector<1xf32>
    %169 = vector.multi_reduction <add>, %168, %cst_55 [1, 2] : vector<1x32x256xf32> to vector<1xf32>
    %170 = vector.shape_cast %169 : vector<1xf32> to vector<1x1x1xf32>
    %171 = vector.extract %170[0, 0, 0] : f32 from vector<1x1x1xf32>
    %cst_56 = arith.constant 0.000000e+00 : f32
    %172 = arith.addf %cst_56, %171 : f32
    %c248_i32 = arith.constant 248 : i32
    %173 = tpu.dynamic_rotate %85 by %c248_i32 dim 1 : vector<32x256xf32>, i32 -> vector<32x256xf32>
    %c248_i32_57 = arith.constant 248 : i32
    %174 = tpu.dynamic_rotate %83 by %c248_i32_57 dim 1 : vector<32x256xf32>, i32 -> vector<32x256xf32>
    %c24_i32 = arith.constant 24 : i32
    %175 = tpu.dynamic_rotate %85 by %c24_i32 dim 0 : vector<32x256xf32>, i32 -> vector<32x256xf32>
    %c24_i32_58 = arith.constant 24 : i32
    %176 = tpu.dynamic_rotate %83 by %c24_i32_58 dim 0 : vector<32x256xf32>, i32 -> vector<32x256xf32>
    %177 = arith.subf %173, %85 : vector<32x256xf32>
    %178 = math.absf %177 : vector<32x256xf32>
    %179 = arith.mulf %174, %83 : vector<32x256xf32>
    %180 = arith.mulf %178, %179 : vector<32x256xf32>
    %181 = arith.subf %175, %85 : vector<32x256xf32>
    %182 = math.absf %181 : vector<32x256xf32>
    %183 = arith.mulf %176, %83 : vector<32x256xf32>
    %184 = arith.mulf %182, %183 : vector<32x256xf32>
    %cst_59 = arith.constant 0.000000e+00 : f32
    %185 = vector.broadcast %cst_59 : f32 to vector<32x256xf32>
    %186 = arith.select %72, %180, %185 : vector<32x256xi1>, vector<32x256xf32>
    %cst_60 = arith.constant 0.000000e+00 : f32
    %187 = vector.broadcast %cst_60 : f32 to vector<32x256xf32>
    %188 = arith.select %77, %184, %187 : vector<32x256xi1>, vector<32x256xf32>
    %189 = arith.addf %186, %188 : vector<32x256xf32>
    %190 = vector.shape_cast %189 : vector<32x256xf32> to vector<1x32x256xf32>
    %cst_61 = arith.constant dense<0.000000e+00> : vector<1xf32>
    %191 = vector.multi_reduction <add>, %190, %cst_61 [1, 2] : vector<1x32x256xf32> to vector<1xf32>
    %192 = vector.shape_cast %191 : vector<1xf32> to vector<1x1x1xf32>
    %193 = vector.extract %192[0, 0, 0] : f32 from vector<1x1x1xf32>
    %cst_62 = arith.constant 0.000000e+00 : f32
    %194 = arith.addf %cst_62, %193 : f32
    %cst_63 = arith.constant 0.000000e+00 : f32
    %195 = vector.broadcast %cst_63 : f32 to vector<32x256xf32>
    %196 = arith.select %67, %83, %195 : vector<32x256xi1>, vector<32x256xf32>
    %197 = vector.shape_cast %196 : vector<32x256xf32> to vector<1x32x256xf32>
    %cst_64 = arith.constant dense<0.000000e+00> : vector<1xf32>
    %198 = vector.multi_reduction <add>, %197, %cst_64 [1, 2] : vector<1x32x256xf32> to vector<1xf32>
    %199 = vector.shape_cast %198 : vector<1xf32> to vector<1x1x1xf32>
    %200 = vector.extract %199[0, 0, 0] : f32 from vector<1x1x1xf32>
    %cst_65 = arith.constant 0.000000e+00 : f32
    %201 = arith.addf %cst_65, %200 : f32
    %c1 = arith.constant 1 : index
    %c0_66 = arith.constant 0 : index
    %c0_67 = arith.constant 0 : index
    %202 = vector.load %arg1[%c1, %c0_66, %c0_67] : memref<2x32x256xf32, #tpu.memory_space<vmem>>, vector<1x32x256xf32>
    %203 = vector.shape_cast %202 : vector<1x32x256xf32> to vector<32x256xf32>
    %c1_68 = arith.constant 1 : index
    %c0_69 = arith.constant 0 : index
    %c0_70 = arith.constant 0 : index
    %204 = vector.load %arg2[%c1_68, %c0_69, %c0_70] : memref<2x32x256xf32, #tpu.memory_space<vmem>>, vector<1x32x256xf32>
    %205 = vector.shape_cast %204 : vector<1x32x256xf32> to vector<32x256xf32>
    %c1_71 = arith.constant 1 : index
    %c0_72 = arith.constant 0 : index
    %c0_73 = arith.constant 0 : index
    %206 = vector.load %arg3[%c1_71, %c0_72, %c0_73] : memref<2x32x256xf32, #tpu.memory_space<vmem>>, vector<1x32x256xf32>
    %207 = vector.shape_cast %206 : vector<1x32x256xf32> to vector<32x256xf32>
    %208 = arith.subf %203, %205 : vector<32x256xf32>
    %209 = arith.mulf %207, %208 : vector<32x256xf32>
    %c255_i32_74 = arith.constant 255 : i32
    %210 = tpu.dynamic_rotate %209 by %c255_i32_74 dim 1 : vector<32x256xf32>, i32 -> vector<32x256xf32>
    %c255_i32_75 = arith.constant 255 : i32
    %211 = tpu.dynamic_rotate %207 by %c255_i32_75 dim 1 : vector<32x256xf32>, i32 -> vector<32x256xf32>
    %c31_i32_76 = arith.constant 31 : i32
    %212 = tpu.dynamic_rotate %209 by %c31_i32_76 dim 0 : vector<32x256xf32>, i32 -> vector<32x256xf32>
    %c31_i32_77 = arith.constant 31 : i32
    %213 = tpu.dynamic_rotate %207 by %c31_i32_77 dim 0 : vector<32x256xf32>, i32 -> vector<32x256xf32>
    %214 = arith.subf %210, %209 : vector<32x256xf32>
    %215 = math.absf %214 : vector<32x256xf32>
    %216 = arith.mulf %211, %207 : vector<32x256xf32>
    %217 = arith.mulf %215, %216 : vector<32x256xf32>
    %218 = arith.subf %212, %209 : vector<32x256xf32>
    %219 = math.absf %218 : vector<32x256xf32>
    %220 = arith.mulf %213, %207 : vector<32x256xf32>
    %221 = arith.mulf %219, %220 : vector<32x256xf32>
    %cst_78 = arith.constant 0.000000e+00 : f32
    %222 = vector.broadcast %cst_78 : f32 to vector<32x256xf32>
    %223 = arith.select %15, %217, %222 : vector<32x256xi1>, vector<32x256xf32>
    %cst_79 = arith.constant 0.000000e+00 : f32
    %224 = vector.broadcast %cst_79 : f32 to vector<32x256xf32>
    %225 = arith.select %20, %221, %224 : vector<32x256xi1>, vector<32x256xf32>
    %226 = arith.addf %223, %225 : vector<32x256xf32>
    %227 = vector.shape_cast %226 : vector<32x256xf32> to vector<1x32x256xf32>
    %cst_80 = arith.constant dense<0.000000e+00> : vector<1xf32>
    %228 = vector.multi_reduction <add>, %227, %cst_80 [1, 2] : vector<1x32x256xf32> to vector<1xf32>
    %229 = vector.shape_cast %228 : vector<1xf32> to vector<1x1x1xf32>
    %230 = vector.extract %229[0, 0, 0] : f32 from vector<1x1x1xf32>
    %231 = arith.addf %107, %230 : f32
    %cst_81 = arith.constant 0.000000e+00 : f32
    %232 = vector.broadcast %cst_81 : f32 to vector<32x256xf32>
    %233 = arith.select %10, %207, %232 : vector<32x256xi1>, vector<32x256xf32>
    %234 = vector.shape_cast %233 : vector<32x256xf32> to vector<1x32x256xf32>
    %cst_82 = arith.constant dense<0.000000e+00> : vector<1xf32>
    %235 = vector.multi_reduction <add>, %234, %cst_82 [1, 2] : vector<1x32x256xf32> to vector<1xf32>
    %236 = vector.shape_cast %235 : vector<1xf32> to vector<1x1x1xf32>
    %237 = vector.extract %236[0, 0, 0] : f32 from vector<1x1x1xf32>
    %238 = arith.addf %114, %237 : f32
    %c254_i32_83 = arith.constant 254 : i32
    %239 = tpu.dynamic_rotate %209 by %c254_i32_83 dim 1 : vector<32x256xf32>, i32 -> vector<32x256xf32>
    %c254_i32_84 = arith.constant 254 : i32
    %240 = tpu.dynamic_rotate %207 by %c254_i32_84 dim 1 : vector<32x256xf32>, i32 -> vector<32x256xf32>
    %c30_i32_85 = arith.constant 30 : i32
    %241 = tpu.dynamic_rotate %209 by %c30_i32_85 dim 0 : vector<32x256xf32>, i32 -> vector<32x256xf32>
    %c30_i32_86 = arith.constant 30 : i32
    %242 = tpu.dynamic_rotate %207 by %c30_i32_86 dim 0 : vector<32x256xf32>, i32 -> vector<32x256xf32>
    %243 = arith.subf %239, %209 : vector<32x256xf32>
    %244 = math.absf %243 : vector<32x256xf32>
    %245 = arith.mulf %240, %207 : vector<32x256xf32>
    %246 = arith.mulf %244, %245 : vector<32x256xf32>
    %247 = arith.subf %241, %209 : vector<32x256xf32>
    %248 = math.absf %247 : vector<32x256xf32>
    %249 = arith.mulf %242, %207 : vector<32x256xf32>
    %250 = arith.mulf %248, %249 : vector<32x256xf32>
    %cst_87 = arith.constant 0.000000e+00 : f32
    %251 = vector.broadcast %cst_87 : f32 to vector<32x256xf32>
    %252 = arith.select %34, %246, %251 : vector<32x256xi1>, vector<32x256xf32>
    %cst_88 = arith.constant 0.000000e+00 : f32
    %253 = vector.broadcast %cst_88 : f32 to vector<32x256xf32>
    %254 = arith.select %39, %250, %253 : vector<32x256xi1>, vector<32x256xf32>
    %255 = arith.addf %252, %254 : vector<32x256xf32>
    %256 = vector.shape_cast %255 : vector<32x256xf32> to vector<1x32x256xf32>
    %cst_89 = arith.constant dense<0.000000e+00> : vector<1xf32>
    %257 = vector.multi_reduction <add>, %256, %cst_89 [1, 2] : vector<1x32x256xf32> to vector<1xf32>
    %258 = vector.shape_cast %257 : vector<1xf32> to vector<1x1x1xf32>
    %259 = vector.extract %258[0, 0, 0] : f32 from vector<1x1x1xf32>
    %260 = arith.addf %136, %259 : f32
    %cst_90 = arith.constant 0.000000e+00 : f32
    %261 = vector.broadcast %cst_90 : f32 to vector<32x256xf32>
    %262 = arith.select %29, %207, %261 : vector<32x256xi1>, vector<32x256xf32>
    %263 = vector.shape_cast %262 : vector<32x256xf32> to vector<1x32x256xf32>
    %cst_91 = arith.constant dense<0.000000e+00> : vector<1xf32>
    %264 = vector.multi_reduction <add>, %263, %cst_91 [1, 2] : vector<1x32x256xf32> to vector<1xf32>
    %265 = vector.shape_cast %264 : vector<1xf32> to vector<1x1x1xf32>
    %266 = vector.extract %265[0, 0, 0] : f32 from vector<1x1x1xf32>
    %267 = arith.addf %143, %266 : f32
    %c252_i32_92 = arith.constant 252 : i32
    %268 = tpu.dynamic_rotate %209 by %c252_i32_92 dim 1 : vector<32x256xf32>, i32 -> vector<32x256xf32>
    %c252_i32_93 = arith.constant 252 : i32
    %269 = tpu.dynamic_rotate %207 by %c252_i32_93 dim 1 : vector<32x256xf32>, i32 -> vector<32x256xf32>
    %c28_i32_94 = arith.constant 28 : i32
    %270 = tpu.dynamic_rotate %209 by %c28_i32_94 dim 0 : vector<32x256xf32>, i32 -> vector<32x256xf32>
    %c28_i32_95 = arith.constant 28 : i32
    %271 = tpu.dynamic_rotate %207 by %c28_i32_95 dim 0 : vector<32x256xf32>, i32 -> vector<32x256xf32>
    %272 = arith.subf %268, %209 : vector<32x256xf32>
    %273 = math.absf %272 : vector<32x256xf32>
    %274 = arith.mulf %269, %207 : vector<32x256xf32>
    %275 = arith.mulf %273, %274 : vector<32x256xf32>
    %276 = arith.subf %270, %209 : vector<32x256xf32>
    %277 = math.absf %276 : vector<32x256xf32>
    %278 = arith.mulf %271, %207 : vector<32x256xf32>
    %279 = arith.mulf %277, %278 : vector<32x256xf32>
    %cst_96 = arith.constant 0.000000e+00 : f32
    %280 = vector.broadcast %cst_96 : f32 to vector<32x256xf32>
    %281 = arith.select %53, %275, %280 : vector<32x256xi1>, vector<32x256xf32>
    %cst_97 = arith.constant 0.000000e+00 : f32
    %282 = vector.broadcast %cst_97 : f32 to vector<32x256xf32>
    %283 = arith.select %58, %279, %282 : vector<32x256xi1>, vector<32x256xf32>
    %284 = arith.addf %281, %283 : vector<32x256xf32>
    %285 = vector.shape_cast %284 : vector<32x256xf32> to vector<1x32x256xf32>
    %cst_98 = arith.constant dense<0.000000e+00> : vector<1xf32>
    %286 = vector.multi_reduction <add>, %285, %cst_98 [1, 2] : vector<1x32x256xf32> to vector<1xf32>
    %287 = vector.shape_cast %286 : vector<1xf32> to vector<1x1x1xf32>
    %288 = vector.extract %287[0, 0, 0] : f32 from vector<1x1x1xf32>
    %289 = arith.addf %165, %288 : f32
    %cst_99 = arith.constant 0.000000e+00 : f32
    %290 = vector.broadcast %cst_99 : f32 to vector<32x256xf32>
    %291 = arith.select %48, %207, %290 : vector<32x256xi1>, vector<32x256xf32>
    %292 = vector.shape_cast %291 : vector<32x256xf32> to vector<1x32x256xf32>
    %cst_100 = arith.constant dense<0.000000e+00> : vector<1xf32>
    %293 = vector.multi_reduction <add>, %292, %cst_100 [1, 2] : vector<1x32x256xf32> to vector<1xf32>
    %294 = vector.shape_cast %293 : vector<1xf32> to vector<1x1x1xf32>
    %295 = vector.extract %294[0, 0, 0] : f32 from vector<1x1x1xf32>
    %296 = arith.addf %172, %295 : f32
    %c248_i32_101 = arith.constant 248 : i32
    %297 = tpu.dynamic_rotate %209 by %c248_i32_101 dim 1 : vector<32x256xf32>, i32 -> vector<32x256xf32>
    %c248_i32_102 = arith.constant 248 : i32
    %298 = tpu.dynamic_rotate %207 by %c248_i32_102 dim 1 : vector<32x256xf32>, i32 -> vector<32x256xf32>
    %c24_i32_103 = arith.constant 24 : i32
    %299 = tpu.dynamic_rotate %209 by %c24_i32_103 dim 0 : vector<32x256xf32>, i32 -> vector<32x256xf32>
    %c24_i32_104 = arith.constant 24 : i32
    %300 = tpu.dynamic_rotate %207 by %c24_i32_104 dim 0 : vector<32x256xf32>, i32 -> vector<32x256xf32>
    %301 = arith.subf %297, %209 : vector<32x256xf32>
    %302 = math.absf %301 : vector<32x256xf32>
    %303 = arith.mulf %298, %207 : vector<32x256xf32>
    %304 = arith.mulf %302, %303 : vector<32x256xf32>
    %305 = arith.subf %299, %209 : vector<32x256xf32>
    %306 = math.absf %305 : vector<32x256xf32>
    %307 = arith.mulf %300, %207 : vector<32x256xf32>
    %308 = arith.mulf %306, %307 : vector<32x256xf32>
    %cst_105 = arith.constant 0.000000e+00 : f32
    %309 = vector.broadcast %cst_105 : f32 to vector<32x256xf32>
    %310 = arith.select %72, %304, %309 : vector<32x256xi1>, vector<32x256xf32>
    %cst_106 = arith.constant 0.000000e+00 : f32
    %311 = vector.broadcast %cst_106 : f32 to vector<32x256xf32>
    %312 = arith.select %77, %308, %311 : vector<32x256xi1>, vector<32x256xf32>
    %313 = arith.addf %310, %312 : vector<32x256xf32>
    %314 = vector.shape_cast %313 : vector<32x256xf32> to vector<1x32x256xf32>
    %cst_107 = arith.constant dense<0.000000e+00> : vector<1xf32>
    %315 = vector.multi_reduction <add>, %314, %cst_107 [1, 2] : vector<1x32x256xf32> to vector<1xf32>
    %316 = vector.shape_cast %315 : vector<1xf32> to vector<1x1x1xf32>
    %317 = vector.extract %316[0, 0, 0] : f32 from vector<1x1x1xf32>
    %318 = arith.addf %194, %317 : f32
    %cst_108 = arith.constant 0.000000e+00 : f32
    %319 = vector.broadcast %cst_108 : f32 to vector<32x256xf32>
    %320 = arith.select %67, %207, %319 : vector<32x256xi1>, vector<32x256xf32>
    %321 = vector.shape_cast %320 : vector<32x256xf32> to vector<1x32x256xf32>
    %cst_109 = arith.constant dense<0.000000e+00> : vector<1xf32>
    %322 = vector.multi_reduction <add>, %321, %cst_109 [1, 2] : vector<1x32x256xf32> to vector<1xf32>
    %323 = vector.shape_cast %322 : vector<1xf32> to vector<1x1x1xf32>
    %324 = vector.extract %323[0, 0, 0] : f32 from vector<1x1x1xf32>
    %325 = arith.addf %201, %324 : f32
    %326 = tpu.iota {dimensions = array<i32: 1>} : vector<1x128xi32>
    %cst_110 = arith.constant 0.000000e+00 : f32
    %327 = vector.broadcast %cst_110 : f32 to vector<1x128xf32>
    %c0_i32_111 = arith.constant 0 : i32
    %328 = vector.broadcast %c0_i32_111 : i32 to vector<1x128xi32>
    %329 = arith.cmpi eq, %326, %328 : vector<1x128xi32>
    %cst_112 = arith.constant 0.000000e+00 : f32
    %330 = vector.broadcast %231 : f32 to vector<1x128xf32>
    %331 = vector.broadcast %cst_112 : f32 to vector<1x128xf32>
    %332 = arith.select %329, %330, %331 : vector<1x128xi1>, vector<1x128xf32>
    %333 = arith.addf %327, %332 : vector<1x128xf32>
    %c1_i32_113 = arith.constant 1 : i32
    %334 = vector.broadcast %c1_i32_113 : i32 to vector<1x128xi32>
    %335 = arith.cmpi eq, %326, %334 : vector<1x128xi32>
    %cst_114 = arith.constant 0.000000e+00 : f32
    %336 = vector.broadcast %238 : f32 to vector<1x128xf32>
    %337 = vector.broadcast %cst_114 : f32 to vector<1x128xf32>
    %338 = arith.select %335, %336, %337 : vector<1x128xi1>, vector<1x128xf32>
    %339 = arith.addf %333, %338 : vector<1x128xf32>
    %c2_i32_115 = arith.constant 2 : i32
    %340 = vector.broadcast %c2_i32_115 : i32 to vector<1x128xi32>
    %341 = arith.cmpi eq, %326, %340 : vector<1x128xi32>
    %cst_116 = arith.constant 0.000000e+00 : f32
    %342 = vector.broadcast %260 : f32 to vector<1x128xf32>
    %343 = vector.broadcast %cst_116 : f32 to vector<1x128xf32>
    %344 = arith.select %341, %342, %343 : vector<1x128xi1>, vector<1x128xf32>
    %345 = arith.addf %339, %344 : vector<1x128xf32>
    %c3_i32_117 = arith.constant 3 : i32
    %346 = vector.broadcast %c3_i32_117 : i32 to vector<1x128xi32>
    %347 = arith.cmpi eq, %326, %346 : vector<1x128xi32>
    %cst_118 = arith.constant 0.000000e+00 : f32
    %348 = vector.broadcast %267 : f32 to vector<1x128xf32>
    %349 = vector.broadcast %cst_118 : f32 to vector<1x128xf32>
    %350 = arith.select %347, %348, %349 : vector<1x128xi1>, vector<1x128xf32>
    %351 = arith.addf %345, %350 : vector<1x128xf32>
    %c4_i32_119 = arith.constant 4 : i32
    %352 = vector.broadcast %c4_i32_119 : i32 to vector<1x128xi32>
    %353 = arith.cmpi eq, %326, %352 : vector<1x128xi32>
    %cst_120 = arith.constant 0.000000e+00 : f32
    %354 = vector.broadcast %289 : f32 to vector<1x128xf32>
    %355 = vector.broadcast %cst_120 : f32 to vector<1x128xf32>
    %356 = arith.select %353, %354, %355 : vector<1x128xi1>, vector<1x128xf32>
    %357 = arith.addf %351, %356 : vector<1x128xf32>
    %c5_i32 = arith.constant 5 : i32
    %358 = vector.broadcast %c5_i32 : i32 to vector<1x128xi32>
    %359 = arith.cmpi eq, %326, %358 : vector<1x128xi32>
    %cst_121 = arith.constant 0.000000e+00 : f32
    %360 = vector.broadcast %296 : f32 to vector<1x128xf32>
    %361 = vector.broadcast %cst_121 : f32 to vector<1x128xf32>
    %362 = arith.select %359, %360, %361 : vector<1x128xi1>, vector<1x128xf32>
    %363 = arith.addf %357, %362 : vector<1x128xf32>
    %c6_i32 = arith.constant 6 : i32
    %364 = vector.broadcast %c6_i32 : i32 to vector<1x128xi32>
    %365 = arith.cmpi eq, %326, %364 : vector<1x128xi32>
    %cst_122 = arith.constant 0.000000e+00 : f32
    %366 = vector.broadcast %318 : f32 to vector<1x128xf32>
    %367 = vector.broadcast %cst_122 : f32 to vector<1x128xf32>
    %368 = arith.select %365, %366, %367 : vector<1x128xi1>, vector<1x128xf32>
    %369 = arith.addf %363, %368 : vector<1x128xf32>
    %c7_i32_123 = arith.constant 7 : i32
    %370 = vector.broadcast %c7_i32_123 : i32 to vector<1x128xi32>
    %371 = arith.cmpi eq, %326, %370 : vector<1x128xi32>
    %cst_124 = arith.constant 0.000000e+00 : f32
    %372 = vector.broadcast %325 : f32 to vector<1x128xf32>
    %373 = vector.broadcast %cst_124 : f32 to vector<1x128xf32>
    %374 = arith.select %371, %372, %373 : vector<1x128xi1>, vector<1x128xf32>
    %375 = arith.addf %369, %374 : vector<1x128xf32>
    %c0_125 = arith.constant 0 : index
    %c0_126 = arith.constant 0 : index
    %c0_127 = arith.constant 0 : index
    %376 = vector.load %arg4[%c0_125, %c0_126, %c0_127] : memref<1x1x128xf32, #tpu.memory_space<vmem>>, vector<1x1x128xf32>
    %377 = vector.shape_cast %376 : vector<1x1x128xf32> to vector<1x128xf32>
    %378 = vector.shape_cast %375 : vector<1x128xf32> to vector<1x1x128xf32>
    tpu.vector_store %arg4[%c0_125, %c0_126, %c0_127], %378 {strides = array<i32>} : memref<1x1x128xf32, #tpu.memory_space<vmem>>, vector<1x1x128xf32>,
    return
  }
  func.func @transform_0(%arg0: i32) -> (i32, i32, i32) {
    %c0_i32 = arith.constant 0 : i32
    %c0_i32_0 = arith.constant 0 : i32
    %c0_i32_1 = arith.constant 0 : i32
    return %arg0, %c0_i32, %c0_i32_0 : i32, i32, i32
  }
  func.func @transform_1(%arg0: i32) -> (i32, i32, i32) {
    %c0_i32 = arith.constant 0 : i32
    %c0_i32_0 = arith.constant 0 : i32
    %c0_i32_1 = arith.constant 0 : i32
    return %arg0, %c0_i32, %c0_i32_0 : i32, i32, i32
  }
  func.func @transform_2(%arg0: i32) -> (i32, i32, i32) {
    %c0_i32 = arith.constant 0 : i32
    %c0_i32_0 = arith.constant 0 : i32
    %c0_i32_1 = arith.constant 0 : i32
    return %arg0, %c0_i32, %c0_i32_0 : i32, i32, i32
  }
  func.func @transform_3(%arg0: i32) -> (i32, i32, i32) {
    %c0_i32 = arith.constant 0 : i32
    %c0_i32_0 = arith.constant 0 : i32
    %c0_i32_1 = arith.constant 0 : i32
    return %arg0, %c0_i32, %c0_i32_0 : i32, i32, i32
  }
}

</mosaic_0001>

<bundles_post_ra>
// kernel: tpu_custom_call.1
= control target key start
LH: loop header
LB: loop body
LE: loop exit
PB: predicated region body
PF: predicated region fallthrough
CT: control target
= control target key end

     0   :  { %8 = vsyncpa [#allocation3], 0  ;;  %s4657_s0 = inlined_call_operand.hbm [shape: f32[2,32,256], index: 0, kind: input, shape index: {}]   ;;  %s4658_s1 = inlined_call_operand.hbm [shape: f32[2,32,256], index: 1, kind: input, shape index: {}]   ;;  %s4659_s2 = inlined_call_operand.hbm [shape: f32[2,32,256], index: 2, kind: input, shape index: {}]   ;;  %s4660_s3 = inlined_call_operand.hbm [shape: f32[1,1,128], index: 3, kind: output, shape index: {}]  }
   0x1   :  { %9 = vsyncpa [#allocation6], 0 }
   0x2   :  { %10 = vsyncpa [#allocation4], 0  ;;  %s28_s14 = sshll.u32 %s4658_s1, 4  ;;  %s2126_s15 = smov [#allocation5]   ;;  %s29_s14 = int_to_ptr.hbm [resolvable:$true] %s28_s14 }
   0x3   :  { %s30_s16 = sshll.u32 %s2126_s15, 4  ;;  %s15_s19 = sshll.u32 %s4657_s0, 4  ;;  %s31_s16 = int_to_ptr.vmem [resolvable:$true] %s30_s16  ;;  %s16_s19 = int_to_ptr.hbm [resolvable:$true] %s15_s19 }
   0x4   :  { %s2127_s20 = smov 256   ;;  %s2128_s21 = smov 16  }
   0x5   :  { %36 = dma.hbm_to_vmem [thread:$0]  %s29_s14, 2048, %s31_s16, [#allocation6], %s2127_s20, %s2127_s20, %s2128_s21  }
   0x6   :  { %s2129_s22 = smov [#allocation2]   ;;  %s41_s26 = sshll.u32 %s4659_s2, 4  ;;  %s42_s26 = int_to_ptr.hbm [resolvable:$true] %s41_s26 }
   0x7   :  { %s17_s23 = sshll.u32 %s2129_s22, 4  ;;  %s2130_s1 = smov [#allocation7]   ;;  %s18_s23 = int_to_ptr.vmem [resolvable:$true] %s17_s23 }
   0x8   :  { %23 = dma.hbm_to_vmem [thread:$0]  %s16_s19, 2048, %s18_s23, [#allocation3], %s2127_s20, %s2127_s20, %s2128_s21  }
   0x9   :  { %s43_s27 = sshll.u32 %s2130_s1, 4  ;;  %s44_s27 = int_to_ptr.vmem [resolvable:$true] %s43_s27 }
   0xa   :  { %49 = dma.hbm_to_vmem [thread:$0]  %s42_s26, 2048, %s44_s27, [#allocation6], %s2127_s20, %s2127_s20, %s2128_s21  }
   0xb   :  { %2120 = dma.done.wait [#allocation3], 2048  }
   0xc   :  { %2121 = vsyncadd [#allocation3], 4294965248 }
   0xd   :  { %2122 = dma.done.wait [#allocation6], 4096  }
   0xe   :  { %2123 = vsyncadd [#allocation6], 4294963200  ;;  %v229_v0 = vld [vmem:[#allocation2 + $0x20] sm:$0xff]  ;;  %v226_v4 = vld [vmem:[#allocation2 + $0x8] sm:$0xff]  ;;  %s2131_s0 = smov 127   ;;  %s2132_s2 = smov 126   ;;  %v62_v50 = vlaneseq }
   0xf   :  { %v237_v1 = vld [vmem:[#allocation5 + $0x20] sm:$0xff]  ;;  %v234_v5 = vld [vmem:[#allocation5 + $0x8] sm:$0xff]  ;;  %v231_v13 = vld [vmem:[#allocation2 + $0x30] sm:$0xff]  ;;  %s2133_s28 = smov 124   ;;  %s2134_s29 = smov 120  }
  0x10   :  { %v2165_v2 = vld [vmem:[#allocation7 + $0x20] sm:$0xff]  ;;  %v253_v3 = vsub.f32 %v229_v0, %v237_v1  ;;  %v2167_v6 = vld [vmem:[#allocation7 + $0x8] sm:$0xff]  ;;  %v250_v7 = vsub.f32 %v226_v4, %v234_v5  ;;  %v239_v14 = vld [vmem:[#allocation5 + $0x30] sm:$0xff]  ;;  %v2279_v52 = vshrl.u32 %v62_v50, 7  ;;  %v2294_v61 = vand.u32 127, %v62_v50  ;;  %s2135_s1 = smov [#allocation8]  }
  0x11   :  { %v225_v8 = vld [vmem:[#allocation2] sm:$0xff]  ;;  %v228_v16 = vld [vmem:[#allocation2 + $0x18] sm:$0xff]  ;;  %v255_v19 = vsub.f32 %v231_v13, %v239_v14  ;;  %v227_v20 = vld [vmem:[#allocation2 + $0x10] sm:$0xff]  ;;  %v335_v56 = vrot.slane %v2165_v2, 1  ;;  %s1953_s27 = sshll.u32 %s2135_s1, 4  ;;  %s1954_s27 = int_to_ptr.vmem [resolvable:$true] %s1953_s27 }
  0x12   :  { %v233_v9 = vld [vmem:[#allocation5] sm:$0xff]  ;;  %v2172_v11 = vmul.f32 %v253_v3, %v2165_v2  ;;  %v2175_v15 = vmul.f32 %v250_v7, %v2167_v6  ;;  %v236_v17 = vld [vmem:[#allocation5 + $0x18] sm:$0xff]  ;;  %v235_v21 = vld [vmem:[#allocation5 + $0x10] sm:$0xff]  ;;  %4843 = vst [vmem:[#allocation18_spill] sm:$0xff] %v2279_v52  ;;  %vm4679_vm0 = vcmp.lt.s32.totalorder %v2279_v52, 7  ;;  %vm4681_vm1 = vcmp.lt.s32.totalorder %v2294_v61, 127 }
  0x13   :  { %v2169_v10 = vld [vmem:[#allocation7] sm:$0xff]  ;;  %v249_v12 = vsub.f32 %v225_v8, %v233_v9  ;;  %v2184_v22 = vld [vmem:[#allocation7 + $0x30] sm:$0xff]  ;;  %v252_v23 = vsub.f32 %v228_v16, %v236_v17  ;;  %v2188_v24 = vld [vmem:[#allocation7 + $0x18] sm:$0xff]  ;;  %v251_v25 = vsub.f32 %v227_v20, %v235_v21  ;;  %v2311_v9 = vadd.s32 128, %v2294_v61 }
  0x14   :  { %4837 = vst [vmem:[#allocation12_spill] sm:$0xff] %v2172_v11  ;;  %269 = vrot.lane.b32.xlu1 %v2172_v11, %s2131_s0  ;;  %273 = vrot.lane.b32.xlu2 %v2175_v15, %s2131_s0  ;;  %v2190_v26 = vld [vmem:[#allocation7 + $0x10] sm:$0xff]  ;;  %v2193_v27 = vmul.f32 %v255_v19, %v2184_v22  ;;  %v232_v29 = vld [vmem:[#allocation2 + $0x38] sm:$0xff]  ;;  %v230_v32 = vld [vmem:[#allocation2 + $0x28] sm:$0xff]  ;;  %v452_v40 = vadd.f32 %v2167_v6, %v2169_v10  ;;  %v318_v53 = vrot.slane %v2172_v11, 1  ;;  %v337_v57 = vrot.slane %v2184_v22, 1 }
  0x15   :  { %4838 = vst [vmem:[#allocation13_spill] sm:$0xff] %v2175_v15  ;;  %v2180_v18 = vmul.f32 %v249_v12, %v2169_v10  ;;  %v2196_v28 = vmul.f32 %v252_v23, %v2188_v24  ;;  %v240_v30 = vld [vmem:[#allocation5 + $0x38] sm:$0xff]  ;;  %v2199_v31 = vmul.f32 %v251_v25, %v2190_v26  ;;  %v238_v33 = vld [vmem:[#allocation5 + $0x28] sm:$0xff]  ;;  %v333_v12 = vrot.slane %v2190_v26, 1 }
  0x16   :  { %4840 = vst [vmem:[#allocation15_spill] sm:$0xff] %v2193_v27  ;;  %v256_v34 = vsub.f32 %v232_v29, %v240_v30  ;;  %v2205_v35 = vld [vmem:[#allocation7 + $0x38] sm:$0xff]  ;;  %v254_v36 = vsub.f32 %v230_v32, %v238_v33  ;;  %v2209_v37 = vld [vmem:[#allocation7 + $0x28] sm:$0xff]  ;;  %v453_v41 = vadd.f32 %v452_v40, %v2190_v26  ;;  %v320_v54 = vrot.slane %v2193_v27, 1 }
  0x17   :  { %4839 = vst [vmem:[#allocation14_spill] sm:$0xff] %v2180_v18  ;;  %265 = vrot.lane.b32.xlu0 %v2180_v18, %s2131_s0  ;;  %v316_v0 = vrot.slane %v2199_v31, 1  ;;  %v339_v1 = vsel %vm4679_vm0, %v335_v56, %v337_v57  ;;  %v317_v4 = vrot.slane %v2196_v28, 1  ;;  %v336_v5 = vrot.slane %v2209_v37, 1 }
  0x18   :  { %v2212_v38 = vmul.f32 %v256_v34, %v2205_v35  ;;  %v2215_v39 = vmul.f32 %v254_v36, %v2209_v37  ;;  %v454_v42 = vadd.f32 %v453_v41, %v2188_v24  ;;  %v323_v58 = vsel %vm4679_vm0, %v318_v53, %v320_v54  ;;  %4844 = vst [vmem:[#allocation19_spill] sm:$0xff] %v2311_v9 }
  0x19   :  { %v383_v3 = vsub.f32 %v323_v58, %v2172_v11  ;;  %v338_v8 = vrot.slane %v2205_v35, 1  ;;  %v399_v13 = vmul.f32 %v339_v1, %v2165_v2  ;;  %v325_v14 = vsel %vm4679_vm0, %v316_v0, %v318_v53 }
  0x1a   :  { %4841 = vst [vmem:[#allocation16_spill] sm:$0xff] %v2212_v38  ;;  %v455_v43 = vadd.f32 %v454_v42, %v2165_v2  ;;  %v319_v59 = vrot.slane %v2215_v39, 1  ;;  %v321_v60 = vrot.slane %v2212_v38, 1  ;;  %v315_v16 = vrot.slane %v2175_v15, 1 }
  0x1b   :  { %4842 = vst [vmem:[#allocation17_spill] sm:$0xff] %v2215_v39  ;;  %v314_v17 = vrot.slane %v2180_v18, 1  ;;  %v391_v20 = vand.u32 2147483647, %v383_v3  ;;  %v334_v21 = vrot.slane %v2188_v24, 1  ;;  %v331_v29 = vrot.slane %v2169_v10, 1 }
  0x1c   :  { %271 = vrot.lane.b32.xlu1 %v2193_v27, %s2131_s0  ;;  %275 = vrot.lane.b32.xlu2 %v2196_v28, %s2131_s0  ;;  %v456_v44 = vadd.f32 %v455_v43, %v2209_v37  ;;  %v324_v7 = vsel %vm4679_vm0, %v319_v59, %v321_v60  ;;  %v326_v23 = vsel %vm4679_vm0, %v317_v4, %v319_v59  ;;  %v332_v43 = vrot.slane %v2167_v6, 1 }
  0x1d   :  { %v384_v25 = vsub.f32 %v324_v7, %v2215_v39  ;;  %v340_v30 = vsel %vm4679_vm0, %v336_v5, %v338_v8  ;;  %v341_v36 = vsel %vm4679_vm0, %v333_v12, %v335_v56  ;;  %v381_v40 = vsub.f32 %v325_v14, %v2199_v31 }
  0x1e   :  { %v457_v45 = vadd.f32 %v456_v44, %v2184_v22  ;;  %v382_v41 = vsub.f32 %v326_v23, %v2196_v28  ;;  %v328_v42 = vsel %vm4679_vm0, %v315_v16, %v317_v4  ;;  %v327_v44 = vsel %vm4679_vm0, %v314_v17, %v316_v0 }
  0x1f   :  { %267 = vrot.lane.b32.xlu0 %v2199_v31, %s2131_s0  ;;  %v342_v50 = vsel %vm4679_vm0, %v334_v21, %v336_v5  ;;  %v343_v58 = vsel %vm4679_vm0, %v331_v29, %v333_v12  ;;  %v329_v59 = vsel %vm4679_vm0, %v320_v54, %v314_v17  ;;  %v397_v0 = vmul.f32 %v341_v36, %v2190_v26 }
  0x20   :  { %v458_v46 = vadd.f32 %v457_v45, %v2205_v35  ;;  %v380_v1 = vsub.f32 %v328_v42, %v2175_v15  ;;  %v379_v3 = vsub.f32 %v327_v44, %v2180_v18  ;;  %v400_v4 = vmul.f32 %v340_v30, %v2209_v37 }
  0x21   :  { %v398_v5 = vmul.f32 %v342_v50, %v2188_v24  ;;  %v389_v7 = vand.u32 2147483647, %v381_v40  ;;  %v344_v14 = vsel %vm4679_vm0, %v332_v43, %v334_v21  ;;  %v395_v17 = vmul.f32 %v343_v58, %v2169_v10 }
  0x22   :  { %v385_v23 = vsub.f32 %v329_v59, %v2193_v27  ;;  %v388_v36 = vand.u32 2147483647, %v380_v1  ;;  %v396_v40 = vmul.f32 %v344_v14, %v2167_v6 }
  0x24   :  { %279 = vrot.lane.b32.xlu1 %v2212_v38, %s2131_s0  ;;  %290 = vrot.lane.b32.xlu2 %v2169_v10, %s2131_s0  ;;  %v393_v44 = vand.u32 2147483647, %v385_v23 }
  0x27   :  { %277 = vrot.lane.b32.xlu0 %v2215_v39, %s2131_s0 }
  0x2c   :  { %294 = vrot.lane.b32.xlu1 %v2165_v2, %s2131_s0  ;;  %296 = vrot.lane.b32.xlu2 %v2184_v22, %s2131_s0 }
  0x2f   :  { %292 = vrot.lane.b32.xlu0 %v2190_v26, %s2131_s0 }
  0x34   :  { %300 = vrot.lane.b32.xlu1 %v2188_v24, %s2131_s0  ;;  %302 = vrot.lane.b32.xlu2 %v2209_v37, %s2131_s0 }
  0x37   :  { %298 = vrot.lane.b32.xlu0 %v2167_v6, %s2131_s0 }
  0x3c   :  { %481 = vrot.lane.b32.xlu1 %v2215_v39, %s2132_s2 }
  0x3f   :  { %304 = vrot.lane.b32.xlu0 %v2205_v35, %s2131_s0 }
  0x44   :  { %500 = vrot.lane.b32.xlu1 %v2184_v22, %s2132_s2 }
  0x47   :  { %469 = vrot.lane.b32.xlu0 %v2180_v18, %s2132_s2 }
  0x4c   :  { %506 = vrot.lane.b32.xlu1 %v2209_v37, %s2132_s2 }
  0x4f   :  { %471 = vrot.lane.b32.xlu0 %v2199_v31, %s2132_s2 }
  0x57   :  { %473 = vrot.lane.b32.xlu0 %v2172_v11, %s2132_s2 }
  0x5d   :  { %459 = vadd.xlane.f32.xlu2 %v458_v46  ;;  %v2346_v46 = vadd.s32 1, %v2311_v9 }
  0x5f   :  { %475 = vrot.lane.b32.xlu0 %v2193_v27, %s2132_s2  ;;  %4845 = vst [vmem:[#allocation20_spill] sm:$0xff] %v2346_v46  ;;  %vm4678_vm2 = vcmp.lt.s32.totalorder %v2346_v46, 256 }
  0x67   :  { %477 = vrot.lane.b32.xlu0 %v2175_v15, %s2132_s2 }
  0x6e   :  { %v274_v47 = vpop.permute.xlu2 %273 }
  0x6f   :  { %483 = vrot.lane.b32.xlu0 %v2212_v38, %s2132_s2 }
  0x75   :  { %479 = vrot.lane.b32.xlu2 %v2196_v28, %s2132_s2 }
  0x76   :  { %v2275_v49 = vpop.permute.xlu2 %275 }
  0x77   :  { %494 = vrot.lane.b32.xlu0 %v2169_v10, %s2132_s2 }
  0x7d   :  { %498 = vrot.lane.b32.xlu2 %v2165_v2, %s2132_s2 }
  0x7e   :  { %v2296_v62 = vpop.permute.xlu2 %290 }
  0x7f   :  { %496 = vrot.lane.b32.xlu0 %v2190_v26, %s2132_s2 }
  0x85   :  { %504 = vrot.lane.b32.xlu2 %v2188_v24, %s2132_s2 }
  0x86   :  { %v2273_v48 = vpop.permute.xlu1 %269  ;;  %v2343_v45 = vpop.permute.xlu2 %296 }
  0x87   :  { %502 = vrot.lane.b32.xlu0 %v2167_v6, %s2132_s2 }
  0x89   :  { %v266_v51 = vpop.permute.xlu0 %265 }
  0x8a   :  { %v282_v32 = vsel %vm4681_vm1, %v266_v51, %v274_v47  ;;  %v286_v33 = vsel %vm4681_vm1, %v274_v47, %v266_v51  ;;  %v2348_v47 = vmul.f32 %v399_v13, %v391_v20  ;;  %v392_v51 = vand.u32 2147483647, %v384_v25 }
  0x8b   :  { %v347_v53 = vsub.f32 %v282_v32, %v2180_v18  ;;  %v348_v56 = vsub.f32 %v286_v33, %v2175_v15  ;;  %v390_v13 = vand.u32 2147483647, %v382_v41  ;;  %v330_v20 = vsel %vm4679_vm0, %v321_v60, %v315_v16 }
  0x8c   :  { %v345_v32 = vsel %vm4679_vm0, %v337_v57, %v331_v29  ;;  %v387_v41 = vand.u32 2147483647, %v379_v3  ;;  %v2383_v60 = vadd.s32 24, %v2279_v52  ;;  %v386_v57 = vsub.f32 %v330_v20, %v2212_v38 }
  0x8d   :  { %v355_v25 = vand.u32 2147483647, %v347_v53  ;;  %v356_v30 = vand.u32 2147483647, %v348_v56  ;;  %v401_v50 = vmul.f32 %v345_v32, %v2184_v22  ;;  %v2398_v53 = vmul.f32 %v397_v0, %v389_v7 }
  0x8e   :  { %v2286_v55 = vpop.permute.xlu1 %271  ;;  %v2400_v56 = vmul.f32 %v398_v5, %v390_v13  ;;  %v303_v1 = vpop.permute.xlu2 %302  ;;  %v404_v3 = vmul.f32 %v396_v40, %v388_v36  ;;  %v403_v14 = vmul.f32 %v395_v17, %v387_v41  ;;  %v2416_v7 = vadd.s32 1, %v2383_v60 }
  0x8f   :  { %508 = vrot.lane.b32.xlu0 %v2205_v35, %s2132_s2 }
  0x90   :  { %4846 = vst [vmem:[#allocation21_spill] sm:$0xff] %v2416_v7  ;;  %vm4676_vm3 = vcmp.lt.s32.totalorder %v2416_v7, 32 }
  0x91   :  { %v268_v63 = vpop.permute.xlu0 %267 }
  0x92   :  { %v283_v12 = vsel %vm4681_vm1, %v268_v63, %v2275_v49  ;;  %v287_v21 = vsel %vm4681_vm1, %v2275_v49, %v268_v63 }
  0x93   :  { %v349_v16 = vsub.f32 %v283_v12, %v2199_v31  ;;  %v350_v63 = vsub.f32 %v287_v21, %v2196_v28  ;;  %v2423_v12 = vmul.f32 %v401_v50, %v393_v44  ;;  %v82_v44 = vand.u32 1, %v2279_v52 }
  0x94   :  { %v90_v50 = vand.u32 1, %v2294_v61 }
  0x95   :  { %vm86_vm4 = vcmp.eq.s32.totalorder %v82_v44, 0 }
  0x96   :  { %v280_v19 = vpop.permute.xlu1 %279  ;;  %vm2454_vm5 = vcmp.eq.s32.totalorder %v90_v50, 0 }
  0x97   :  { %681 = vrot.lane.b32.xlu0 %v2180_v18, %s2133_s28  ;;  %v285_v42 = vsel %vm4681_vm1, %v2286_v55, %v280_v19  ;;  %v289_v49 = vsel %vm4681_vm1, %v280_v19, %v2286_v55  ;;  %v346_v55 = vsel %vm4679_vm0, %v338_v8, %v332_v43  ;;  %v2406_v19 = vmul.f32 %v400_v4, %v392_v51  ;;  %vm2471_vm7 = vmand %vm86_vm4, %vm2454_vm5 }
  0x98   :  { %v353_v58 = vsub.f32 %v285_v42, %v2193_v27  ;;  %v354_v59 = vsub.f32 %v289_v49, %v2212_v38  ;;  %v2418_v8 = vand.u32 2147483647, %v386_v57  ;;  %v357_v43 = vand.u32 2147483647, %v349_v16 }
  0x99   :  { %v278_v34 = vpop.permute.xlu0 %277  ;;  %v358_v51 = vand.u32 2147483647, %v350_v63  ;;  %v402_v13 = vmul.f32 %v346_v55, %v2205_v35  ;;  %v91_v55 = vand.u32 1, %v2311_v9 }
  0x9a   :  { %v284_v29 = vsel %vm4681_vm1, %v2273_v48, %v278_v34  ;;  %v288_v0 = vsel %vm4681_vm1, %v278_v34, %v2273_v48  ;;  %v361_v23 = vand.u32 2147483647, %v353_v58  ;;  %v362_v21 = vand.u32 2147483647, %v354_v59 }
  0x9b   :  { %v351_v5 = vsub.f32 %v284_v29, %v2172_v11  ;;  %v352_v32 = vsub.f32 %v288_v0, %v2215_v39  ;;  %v2448_v29 = vadd.s32 8, %v2279_v52  ;;  %vm2465_vm6 = vcmp.eq.s32.totalorder %v91_v55, 0 }
  0x9c   :  { %vm2477_vm9 = vmand %vm86_vm4, %vm2465_vm6  ;;  %v410_v55 = vmul.f32 %v402_v13, %v2418_v8 }
  0x9d   :  { %v359_v41 = vand.u32 2147483647, %v351_v5  ;;  %4847 = vst [vmem:[#allocation22_spill] sm:$0xff] %v2448_v29  ;;  %v83_v5 = vand.u32 1, %v2448_v29  ;;  %v535_v29 = vrot.slane %v2169_v10, 2 }
  0x9e   :  { %v295_v54 = vpop.permute.xlu1 %294 }
  0x9f   :  { %683 = vrot.lane.b32.xlu0 %v2199_v31, %s2133_s28  ;;  %v308_v48 = vsel %vm4681_vm1, %v295_v54, %v303_v1  ;;  %v312_v34 = vsel %vm4681_vm1, %v303_v1, %v295_v54  ;;  %vm87_vm8 = vcmp.eq.s32.totalorder %v83_v5, 0 }
  0xa0   :  { %v368_v49 = vmul.f32 %v312_v34, %v2209_v37  ;;  %vm2486_vm10 = vmand %vm87_vm8, %vm2454_vm5 }
  0xa1   :  { %v293_v33 = vpop.permute.xlu0 %292  ;;  %vm2505_vm11 = vmand %vm87_vm8, %vm2465_vm6 }
  0xa6   :  { %v301_v4 = vpop.permute.xlu1 %300 }
  0xa7   :  { %685 = vrot.lane.b32.xlu0 %v2172_v11, %s2133_s28  ;;  %v307_v17 = vsel %vm4681_vm1, %v293_v33, %v301_v4  ;;  %v311_v20 = vsel %vm4681_vm1, %v301_v4, %v293_v33  ;;  %v367_v33 = vmul.f32 %v308_v48, %v2165_v2  ;;  %v4876_v4 = vmov 0 }
  0xa8   :  { %v366_v36 = vmul.f32 %v311_v20, %v2188_v24  ;;  %v365_v16 = vmul.f32 %v307_v17, %v2190_v26  ;;  %v2463_v17 = vadd.s32 16, %v2279_v52 }
  0xa9   :  { %v299_v40 = vpop.permute.xlu0 %298 }
  0xaa   :  { %v306_v54 = vsel %vm4681_vm1, %v2296_v62, %v299_v40  ;;  %v310_v42 = vsel %vm4681_vm1, %v299_v40, %v2296_v62  ;;  %v360_v62 = vand.u32 2147483647, %v352_v32  ;;  %v374_v58 = vmul.f32 %v366_v36, %v358_v51  ;;  %4850 = vst [vmem:[#allocation23_spill] sm:$0xff] %v2463_v17 }
  0xab   :  { %v363_v57 = vmul.f32 %v306_v54, %v2169_v10  ;;  %v364_v63 = vmul.f32 %v310_v42, %v2167_v6  ;;  %v373_v0 = vmul.f32 %v365_v16, %v357_v43  ;;  %v375_v43 = vmul.f32 %v367_v33, %v359_v41 }
  0xac   :  { %v376_v51 = vmul.f32 %v368_v49, %v360_v62  ;;  %v414_v32 = vsel %vm4678_vm2, %v374_v58, 0.0  ;;  %v84_v40 = vand.u32 1, %v2463_v17  ;;  %v4859_v16 = vmov 0 }
  0xad   :  { %v371_v59 = vmul.f32 %v363_v57, %v355_v25  ;;  %v372_v1 = vmul.f32 %v364_v63, %v356_v30  ;;  %v4853_v30 = vmov 0  ;;  %v4860_v16 = vsel %vm2486_vm10, 4294967295, %v4859_v16 }
  0xae   :  { %v4854_v30 = vsel %vm2471_vm7, 4294967295, %v4853_v30  ;;  %4861 = vst [vmem:[#allocation26_spill] sm:$0xff] %v4860_v16  ;;  %v657_v41 = vsel %vm2477_vm9, %v2167_v6, 0.0  ;;  %v429_v54 = vadd.f32 %v2398_v53, %v373_v0  ;;  %v4862_v57 = vmov 0 }
  0xaf   :  { %v412_v48 = vsel %vm4678_vm2, %v372_v1, 0.0  ;;  %v427_v34 = vadd.f32 %v403_v14, %v371_v59  ;;  %687 = vrot.lane.b32.xlu0 %v2193_v27, %s2133_s28  ;;  %4855 = vst [vmem:[#allocation24_spill] sm:$0xff] %v4854_v30  ;;  %v4856_v14 = vmov 0  ;;  %v4863_v57 = vsel %vm2505_vm11, 4294967295, %v4862_v57 }
  0xb0   :  { %v428_v20 = vadd.f32 %v412_v48, %v404_v3  ;;  %v4857_v14 = vsel %vm2477_vm9, 4294967295, %v4856_v14  ;;  %v656_v3 = vsel %vm2471_vm7, %v2169_v10, 0.0  ;;  %4864 = vst [vmem:[#allocation27_spill] sm:$0xff] %v4863_v57  ;;  %vm88_vm12 = vcmp.eq.s32.totalorder %v84_v40, 0 }
  0xb1   :  { %4858 = vst [vmem:[#allocation25_spill] sm:$0xff] %v4857_v14  ;;  %v305_v36 = vpop.permute.xlu0 %304  ;;  %v658_v53 = vsel %vm2486_vm10, %v2190_v26, 0.0  ;;  %v430_v50 = vadd.f32 %v414_v32, %v2400_v56  ;;  %vm2518_vm13 = vmand %vm88_vm12, %vm2454_vm5  ;;  %v4865_v62 = vmov 0  ;;  %v664_v58 = vadd.f32 %v657_v41, %v656_v3 }
  0xb2   :  { %v435_v42 = vadd.f32 %v428_v20, %v427_v34  ;;  %v309_v33 = vsel %vm4681_vm1, %v2343_v45, %v305_v36  ;;  %v313_v49 = vsel %vm4681_vm1, %v305_v36, %v2343_v45  ;;  %v4866_v62 = vsel %vm2518_vm13, 4294967295, %v4865_v62  ;;  %vm2531_vm14 = vmand %vm88_vm12, %vm2465_vm6 }
  0xb3   :  { %v369_v63 = vmul.f32 %v309_v33, %v2184_v22  ;;  %v370_v44 = vmul.f32 %v313_v49, %v2205_v35  ;;  %4867 = vst [vmem:[#allocation28_spill] sm:$0xff] %v4866_v62  ;;  %v416_v59 = vsel %vm4678_vm2, %v376_v51, 0.0  ;;  %v85_v0 = vand.u32 1, %v2383_v60  ;;  %v482_v51 = vpop.permute.xlu1 %481 }
  0xb4   :  { %v436_v45 = vadd.f32 %v435_v42, %v429_v54  ;;  %v659_v56 = vsel %vm2505_vm11, %v2188_v24, 0.0  ;;  %v431_v8 = vadd.f32 %v2348_v47, %v375_v43  ;;  %v4868_v48 = vmov 0 }
  0xb5   :  { %v378_v1 = vmul.f32 %v370_v44, %v362_v21  ;;  %v377_v13 = vmul.f32 %v369_v63, %v361_v23  ;;  %v4869_v48 = vsel %vm2531_vm14, 4294967295, %v4868_v48  ;;  %v665_v34 = vadd.f32 %v664_v58, %v658_v53 }
  0xb6   :  { %v437_v5 = vadd.f32 %v436_v45, %v430_v50  ;;  %4870 = vst [vmem:[#allocation29_spill] sm:$0xff] %v4869_v48  ;;  %v425_v21 = vsel %vm4676_vm3, %v2423_v12, 0.0  ;;  %vm2540_vm15 = vcmp.eq.s32.totalorder %v85_v0, 0  ;;  %v660_v47 = vsel %vm2518_vm13, %v2165_v2, 0.0 }
  0xb7   :  { %689 = vrot.lane.b32.xlu0 %v2175_v15, %s2133_s28  ;;  %v432_v23 = vadd.f32 %v416_v59, %v2406_v19  ;;  %v666_v20 = vadd.f32 %v665_v34, %v659_v56  ;;  %v418_v12 = vsel %vm4678_vm2, %v378_v1, 0.0  ;;  %v426_v36 = vsel %vm4676_vm3, %v410_v55, 0.0  ;;  %vm2561_vm4 = vmand %vm2540_vm15, %vm2454_vm5 }
  0xb8   :  { %v438_v43 = vadd.f32 %v437_v5, %v431_v8  ;;  %v661_v40 = vsel %vm2531_vm14, %v2209_v37, 0.0  ;;  %v433_v3 = vadd.f32 %v425_v21, %v377_v13  ;;  %v4873_v19 = vmov 0  ;;  %vm2572_vm8 = vmand %vm2540_vm15, %vm2465_vm6 }
  0xb9   :  { %v2548_v32 = vpop.permute.xlu0 %469  ;;  %v4874_v19 = vsel %vm2561_vm4, 4294967295, %v4873_v19  ;;  %v667_v54 = vadd.f32 %v666_v20, %v660_v47  ;;  %v434_v42 = vadd.f32 %v426_v36, %v418_v12  ;;  %v662_v63 = vsel %vm2561_vm4, %v2184_v22, 0.0 }
  0xba   :  { %v439_v41 = vadd.f32 %v438_v43, %v432_v23  ;;  %4875 = vst [vmem:[#allocation30_spill] sm:$0xff] %v4874_v19  ;;  %v4877_v4 = vsel %vm2572_vm8, 4294967295, %v4876_v4  ;;  %v663_v55 = vsel %vm2572_vm8, %v2205_v35, 0.0  ;;  %v522_v56 = vrot.slane %v2172_v11, 2 }
  0xbb   :  { %v668_v49 = vadd.f32 %v667_v54, %v661_v40  ;;  %4878 = vst [vmem:[#allocation31_spill] sm:$0xff] %v4877_v4  ;;  %v4663_v8 = vrot.slane %v2193_v27, 2  ;;  %vm4677_vm5 = vcmp.lt.s32.totalorder %v2279_v52, 6  ;;  %v520_v5 = vrot.slane %v2199_v31, 2 }
  0xbc   :  { %v440_v33 = vadd.f32 %v439_v41, %v433_v3  ;;  %v521_v34 = vrot.slane %v2196_v28, 2  ;;  %v523_v21 = vrot.slane %v2215_v39, 2  ;;  %v539_v23 = vrot.slane %v2165_v2, 2 }
  0xbd   :  { %v669_v53 = vadd.f32 %v668_v49, %v662_v63  ;;  %v527_v47 = vsel %vm4677_vm5, %v522_v56, %v4663_v8  ;;  %v4661_v43 = vrot.slane %v2184_v22, 2  ;;  %v4662_v20 = vrot.slane %v2212_v38, 2  ;;  %v2657_v63 = vpop.permute.xlu1 %500 }
  0xbe   :  { %v441_v44 = vadd.f32 %v440_v33, %v434_v42  ;;  %v537_v12 = vrot.slane %v2190_v26, 2  ;;  %v538_v36 = vrot.slane %v2188_v24, 2  ;;  %v4664_v40 = vrot.slane %v2175_v15, 2 }
  0xbf   :  { %695 = vrot.lane.b32.xlu0 %v2212_v38, %s2133_s28  ;;  %v670_v45 = vadd.f32 %v669_v53, %v663_v55  ;;  %v587_v3 = vsub.f32 %v527_v47, %v2172_v11  ;;  %v529_v41 = vsel %vm4677_vm5, %v520_v5, %v522_v56  ;;  %v530_v54 = vsel %vm4677_vm5, %v521_v34, %v523_v21 }
  0xc0   :  { %442 = vadd.xlane.f32.xlu1 %v441_v44  ;;  %v540_v42 = vrot.slane %v2209_v37, 2  ;;  %v543_v33 = vsel %vm4677_vm5, %v539_v23, %v4661_v43  ;;  %v528_v49 = vsel %vm4677_vm5, %v523_v21, %v4662_v20  ;;  %vm4680_vm6 = vcmp.lt.s32.totalorder %v2294_v61, 126 }
  0xc1   :  { %v2578_v50 = vpop.permute.xlu0 %471  ;;  %v545_v44 = vsel %vm4677_vm5, %v537_v12, %v539_v23  ;;  %v585_v21 = vsub.f32 %v529_v41, %v2199_v31  ;;  %v586_v47 = vsub.f32 %v530_v54, %v2196_v28  ;;  %v532_v43 = vsel %vm4677_vm5, %v4664_v40, %v521_v34 }
  0xc2   :  { %v546_v53 = vsel %vm4677_vm5, %v538_v36, %v540_v42  ;;  %v595_v20 = vand.u32 2147483647, %v587_v3  ;;  %v603_v8 = vmul.f32 %v543_v33, %v2165_v2  ;;  %v588_v55 = vsub.f32 %v528_v49, %v2215_v39 }
  0xc3   :  { %v2660_v54 = vadd.s32 2, %v2311_v9  ;;  %v4880_v34 = vrot.slane %v2205_v35, 2  ;;  %v601_v23 = vmul.f32 %v545_v44, %v2190_v26  ;;  %v602_v3 = vmul.f32 %v546_v53, %v2188_v24 }
  0xc4   :  { %v584_v33 = vsub.f32 %v532_v43, %v2175_v15  ;;  %v4881_v49 = vrot.slane %v2180_v18, 2  ;;  %v593_v46 = vand.u32 2147483647, %v585_v21  ;;  %v594_v17 = vand.u32 2147483647, %v586_v47 }
  0xc5   :  { %v544_v40 = vsel %vm4677_vm5, %v540_v42, %v4880_v34  ;;  %v4882_v9 = vrot.slane %v2167_v6, 2  ;;  %v2680_v53 = vmul.f32 %v603_v8, %v595_v20  ;;  %v596_v43 = vand.u32 2147483647, %v588_v55 }
  0xc6   :  { %v531_v7 = vsel %vm4677_vm5, %v4881_v49, %v520_v5  ;;  %v604_v34 = vmul.f32 %v544_v40, %v2209_v37  ;;  %v547_v55 = vsel %vm4677_vm5, %v535_v29, %v537_v12  ;;  %vm105_vm12 = vcmp.lt.s32.totalorder %v2660_v54, 256 }
  0xc7   :  { %706 = vrot.lane.b32.xlu0 %v2169_v10, %s2133_s28  ;;  %v548_v42 = vsel %vm4677_vm5, %v4882_v9, %v538_v36  ;;  %v583_v9 = vsub.f32 %v531_v7, %v2180_v18  ;;  %v2703_v7 = vmul.f32 %v601_v23, %v593_v46  ;;  %v2705_v36 = vmul.f32 %v602_v3, %v594_v17  ;;  %vm2785_vm15 = vmand %vm2477_vm9, %vm105_vm12 }
  0xc8   :  { %671 = vadd.xlane.f32.xlu1 %v670_v45  ;;  %v600_v20 = vmul.f32 %v548_v42, %v2167_v6  ;;  %v2719_v17 = vmul.f32 %v604_v34, %v596_v43  ;;  %v599_v23 = vmul.f32 %v547_v55, %v2169_v10  ;;  %vm2797_vm3 = vmand %vm2505_vm11, %vm105_vm12  ;;  %v736_v62 = vrot.slane %v2193_v27, 4 }
  0xc9   :  { %v474_v25 = vpop.permute.xlu0 %473  ;;  %vm2823_vm2 = vmand %vm2531_vm14, %vm105_vm12 }
  0xca   :  { %v488_v41 = vsel %vm4680_vm6, %v474_v25, %v482_v51  ;;  %v492_v44 = vsel %vm4680_vm6, %v482_v51, %v474_v25  ;;  %v592_v51 = vand.u32 2147483647, %v584_v33  ;;  %v591_v33 = vand.u32 2147483647, %v583_v9 }
  0xcb   :  { %v4884_v9 = vrot.slane %v2193_v27, 2 }
  0xcc   :  { %v608_v3 = vmul.f32 %v600_v20, %v592_v51  ;;  %v607_v55 = vmul.f32 %v599_v23, %v591_v33 }
  0xcf   :  { %708 = vrot.lane.b32.xlu0 %v2190_v26, %s2133_s28 }
  0xd0   :  { %v2589_v59 = vpop.xlane.xlu2 %459 }
  0xd1   :  { %v2587_v58 = vpop.permute.xlu0 %475  ;;  %4879 = vst [vmem:[#allocation32_spill] sm:$0xff] %v2589_v59  ;;  %v555_v59 = vsub.f32 %v488_v41, %v2172_v11 }
  0xd3   :  { %v563_v49 = vand.u32 2147483647, %v555_v59 }
  0xd7   :  { %714 = vrot.lane.b32.xlu0 %v2167_v6, %s2133_s28 }
  0xd8   :  { %v2593_v0 = vpop.permute.xlu2 %479 }
  0xd9   :  { %v478_v1 = vpop.permute.xlu0 %477  ;;  %v487_v25 = vsel %vm4680_vm6, %v2578_v50, %v2593_v0  ;;  %v491_v8 = vsel %vm4680_vm6, %v2593_v0, %v2578_v50 }
  0xda   :  { %v486_v5 = vsel %vm4680_vm6, %v2548_v32, %v478_v1  ;;  %v490_v21 = vsel %vm4680_vm6, %v478_v1, %v2548_v32  ;;  %v556_v32 = vsub.f32 %v492_v44, %v2215_v39  ;;  %v553_v0 = vsub.f32 %v487_v25, %v2199_v31  ;;  %v507_v44 = vpop.permute.xlu1 %506 }
  0xdb   :  { %v551_v47 = vsub.f32 %v486_v5, %v2180_v18  ;;  %v552_v50 = vsub.f32 %v490_v21, %v2175_v15  ;;  %v554_v41 = vsub.f32 %v491_v8, %v2196_v28  ;;  %v625_v5 = vsel %vm2486_vm10, %v2703_v7, 0.0 }
  0xdc   :  { %v564_v42 = vand.u32 2147483647, %v556_v32  ;;  %v626_v21 = vsel %vm2505_vm11, %v2705_v36, 0.0  ;;  %v4883_v8 = vrot.slane %v2180_v18, 2  ;;  %v561_v51 = vand.u32 2147483647, %v553_v0 }
  0xdd   :  { %v559_v43 = vand.u32 2147483647, %v551_v47  ;;  %v560_v34 = vand.u32 2147483647, %v552_v50  ;;  %v562_v20 = vand.u32 2147483647, %v554_v41 }
  0xde   :  { %v533_v59 = vsel %vm4677_vm5, %v4884_v9, %v4883_v8  ;;  %v4885_v47 = vrot.slane %v2175_v15, 2  ;;  %v4886_v50 = vrot.slane %v2212_v38, 2  ;;  %v4902_v36 = vmov 0 }
  0xdf   :  { %720 = vrot.lane.b32.xlu0 %v2205_v35, %s2133_s28  ;;  %v589_v23 = vsub.f32 %v533_v59, %v2193_v27 }
  0xe0   :  { %v2640_v45 = vpop.permute.xlu2 %498  ;;  %v534_v0 = vsel %vm4677_vm5, %v4886_v50, %v4885_v47 }
  0xe1   :  { %v2600_v13 = vpop.permute.xlu0 %483  ;;  %693 = vrot.lane.b32.xlu1 %v2215_v39, %s2133_s28 }
  0xe2   :  { %v489_v32 = vsel %vm4680_vm6, %v2587_v58, %v2600_v13  ;;  %v493_v41 = vsel %vm4680_vm6, %v2600_v13, %v2587_v58  ;;  %v4887_v58 = vrot.slane %v2184_v22, 2 }
  0xe3   :  { %v557_v33 = vsub.f32 %v489_v32, %v2193_v27  ;;  %v558_v32 = vsub.f32 %v493_v41, %v2212_v38  ;;  %v117_v41 = vadd.s32 2, %v2383_v60 }
  0xe4   :  { %v549_v13 = vsel %vm4677_vm5, %v4887_v58, %v535_v29  ;;  %v623_v29 = vsel %vm2471_vm7, %v607_v55, 0.0  ;;  %v4895_v55 = vrot.slane %v2205_v35, 2 }
  0xe7   :  { %893 = vrot.lane.b32.xlu0 %v2180_v18, %s2134_s29 }
  0xe8   :  { %v505_v1 = vpop.permute.xlu2 %504 }
  0xe9   :  { %v2642_v56 = vpop.permute.xlu0 %494  ;;  %712 = vrot.lane.b32.xlu1 %v2184_v22, %s2133_s28 }
  0xef   :  { %895 = vrot.lane.b32.xlu0 %v2199_v31, %s2134_s29 }
  0xf1   :  { %v497_v40 = vpop.permute.xlu0 %496  ;;  %718 = vrot.lane.b32.xlu1 %v2209_v37, %s2133_s28 }
  0xf2   :  { %v511_v12 = vsel %vm4680_vm6, %v497_v40, %v505_v1  ;;  %v515_v25 = vsel %vm4680_vm6, %v505_v1, %v497_v40  ;;  %v512_v1 = vsel %vm4680_vm6, %v2640_v45, %v507_v44  ;;  %v624_v40 = vsel %vm2477_vm9, %v608_v3, 0.0 }
  0xf3   :  { %v569_v7 = vmul.f32 %v511_v12, %v2190_v26  ;;  %v516_v12 = vsel %vm4680_vm6, %v507_v44, %v2640_v45  ;;  %v570_v8 = vmul.f32 %v515_v25, %v2188_v24  ;;  %v571_v45 = vmul.f32 %v512_v1, %v2165_v2 }
  0xf4   :  { %v572_v50 = vmul.f32 %v516_v12, %v2209_v37  ;;  %v4891_v12 = vmov 0 }
  0xf5   :  { %v577_v44 = vmul.f32 %v569_v7, %v561_v51  ;;  %v590_v51 = vsub.f32 %v534_v0, %v2212_v38  ;;  %v578_v7 = vmul.f32 %v570_v8, %v562_v20  ;;  %v4892_v12 = vsel %vm2797_vm3, 4294967295, %v4891_v12 }
  0xf6   :  { %4893 = vst [vmem:[#allocation34_spill] sm:$0xff] %v4892_v12  ;;  %v579_v0 = vmul.f32 %v571_v45, %v563_v49 }
  0xf7   :  { %897 = vrot.lane.b32.xlu0 %v2172_v11, %s2134_s29  ;;  %v617_v8 = vsel %vm2486_vm10, %v577_v44, 0.0  ;;  %v618_v49 = vsel %vm2797_vm3, %v578_v7, 0.0  ;;  %v4896_v44 = vmov 0 }
  0xf8   :  { %v4897_v44 = vsel %vm2823_vm2, 4294967295, %v4896_v44 }
  0xf9   :  { %v503_v3 = vpop.permute.xlu0 %502  ;;  %4898 = vst [vmem:[#allocation35_spill] sm:$0xff] %v4897_v44 }
  0xfa   :  { %v510_v9 = vsel %vm4680_vm6, %v2642_v56, %v503_v3  ;;  %v514_v47 = vsel %vm4680_vm6, %v503_v3, %v2642_v56  ;;  %v4888_v56 = vmov 0 }
  0xfb   :  { %v567_v25 = vmul.f32 %v510_v9, %v2169_v10  ;;  %v568_v59 = vmul.f32 %v514_v47, %v2167_v6  ;;  %v4889_v56 = vsel %vm2785_vm15, 4294967295, %v4888_v56  ;;  %v565_v9 = vand.u32 2147483647, %v557_v33 }
  0xfc   :  { %4890 = vst [vmem:[#allocation33_spill] sm:$0xff] %v4889_v56  ;;  %v4894_v47 = vrot.slane %v2167_v6, 2 }
  0xfd   :  { %v575_v1 = vmul.f32 %v567_v25, %v559_v43  ;;  %v576_v3 = vmul.f32 %v568_v59, %v560_v34  ;;  %v597_v43 = vand.u32 2147483647, %v589_v23  ;;  %v605_v34 = vmul.f32 %v549_v13, %v2184_v22 }
  0xfe   :  { %v550_v20 = vsel %vm4677_vm5, %v4895_v55, %v4894_v47  ;;  %v566_v25 = vand.u32 2147483647, %v558_v32  ;;  %v598_v47 = vand.u32 2147483647, %v590_v51  ;;  %v580_v23 = vmul.f32 %v572_v50, %v564_v42 }
  0xff   :  { %v615_v33 = vsel %vm2471_vm7, %v575_v1, 0.0  ;;  %v616_v58 = vsel %vm2785_vm15, %v576_v3, 0.0  ;;  %899 = vrot.lane.b32.xlu0 %v2193_v27, %s2134_s29  ;;  %vm121_vm5 = vcmp.lt.s32.totalorder %v117_v41, 32  ;;  %v606_v45 = vmul.f32 %v550_v20, %v2205_v35 }
 0x100   :  { %v631_v59 = vadd.f32 %v623_v29, %v615_v33  ;;  %v632_v46 = vadd.f32 %v624_v40, %v616_v58  ;;  %v633_v32 = vadd.f32 %v625_v5, %v617_v8  ;;  %v619_v50 = vsel %vm2518_vm13, %v579_v0, 0.0  ;;  %vm2844_vm0 = vmand %vm2561_vm4, %vm121_vm5 }
 0x101   :  { %v509_v13 = vpop.permute.xlu0 %508  ;;  %v613_v1 = vmul.f32 %v605_v34, %v597_v43  ;;  %v4899_v5 = vmov 0  ;;  %v620_v55 = vsel %vm2823_vm2, %v580_v23, 0.0  ;;  %v4905_v34 = vsel %vm2518_vm13, %v2680_v53, 0.0  ;;  %vm2868_vm1 = vmand %vm2572_vm8, %vm121_vm5 }
 0x102   :  { %v639_v29 = vadd.f32 %v632_v46, %v631_v59  ;;  %v513_v42 = vsel %vm4680_vm6, %v2657_v63, %v509_v13  ;;  %v517_v40 = vsel %vm4680_vm6, %v509_v13, %v2657_v63  ;;  %v634_v46 = vadd.f32 %v626_v21, %v618_v49  ;;  %vm2857_vm6 = vmand %vm2572_vm8, %vm105_vm12 }
 0x103   :  { %v573_v51 = vmul.f32 %v513_v42, %v2184_v22  ;;  %v574_v7 = vmul.f32 %v517_v40, %v2205_v35  ;;  %v4900_v5 = vsel %vm2844_vm0, 4294967295, %v4899_v5  ;;  %v628_v63 = vsel %vm2531_vm14, %v2719_v17, 0.0  ;;  %v4910_v42 = vld [vmem:[#allocation19_spill] sm:$0xff] }
 0x104   :  { %4901 = vst [vmem:[#allocation36_spill] sm:$0xff] %v4900_v5  ;;  %v640_v3 = vadd.f32 %v639_v29, %v633_v32  ;;  %v4903_v36 = vsel %vm2857_vm6, 4294967295, %v4902_v36  ;;  %v614_v21 = vmul.f32 %v606_v45, %v598_v47  ;;  %v635_v17 = vadd.f32 %v4905_v34, %v619_v50  ;;  %v4909_v32 = vld [vmem:[#allocation32_spill] sm:$0xff] }
 0x105   :  { %v581_v20 = vmul.f32 %v573_v51, %v565_v9  ;;  %v582_v43 = vmul.f32 %v574_v7, %v566_v25  ;;  %4904 = vst [vmem:[#allocation37_spill] sm:$0xff] %v4903_v36  ;;  %v4906_v9 = vmov 0  ;;  %v629_v8 = vsel %vm2844_vm0, %v613_v1, 0.0 }
 0x106   :  { %v4907_v9 = vsel %vm2868_vm1, 4294967295, %v4906_v9  ;;  %v641_v54 = vadd.f32 %v640_v3, %v634_v46  ;;  %v636_v33 = vadd.f32 %v628_v63, %v620_v55  ;;  %v630_v58 = vsel %vm2868_vm1, %v614_v21, 0.0  ;;  %v4921_v3 = vld [vmem:[#allocation22_spill] sm:$0xff] }
 0x107   :  { %4908 = vst [vmem:[#allocation38_spill] sm:$0xff] %v4907_v9  ;;  %v621_v0 = vsel %vm2561_vm4, %v581_v20, 0.0  ;;  %901 = vrot.lane.b32.xlu0 %v2175_v15, %s2134_s29  ;;  %v622_v41 = vsel %vm2857_vm6, %v582_v43, 0.0  ;;  %v130_v13 = vand.u32 3, %v2279_v52  ;;  %v138_v45 = vand.u32 3, %v2294_v61  ;;  %v4922_v20 = vld [vmem:[#allocation23_spill] sm:$0xff] }
 0x108   :  { %v642_v53 = vadd.f32 %v641_v54, %v635_v17  ;;  %v637_v25 = vadd.f32 %v629_v8, %v621_v0  ;;  %v638_v47 = vadd.f32 %v630_v58, %v622_v41  ;;  %v461_v29 = vrot.slane %v4909_v32, 4 }
 0x109   :  { %v139_v40 = vand.u32 3, %v4910_v42  ;;  %vm134_vm5 = vcmp.eq.s32.totalorder %v130_v13, 0  ;;  %vm2896_vm12 = vcmp.eq.s32.totalorder %v138_v45, 0  ;;  %v2901_v7 = vpop.permute.xlu0 %681  ;;  %v4915_v46 = vmov 0  ;;  %v2970_v13 = vld [vmem:[#allocation7 + $0x20] sm:$0xff] }
 0x10a   :  { %v643_v59 = vadd.f32 %v642_v53, %v636_v33  ;;  %v462_v51 = vadd.f32 %v461_v29, %v4909_v32  ;;  %vm2913_vm0 = vmand %vm134_vm5, %vm2896_vm12  ;;  %v4918_v63 = vmov 0  ;;  %v131_v55 = vand.u32 3, %v4921_v3 }
 0x10b   :  { %vm2903_vm1 = vcmp.eq.s32.totalorder %v139_v40, 0  ;;  %v4916_v46 = vsel %vm2913_vm0, 4294967295, %v4915_v46  ;;  %v132_v43 = vand.u32 3, %v4922_v20  ;;  %v868_v54 = vsel %vm2913_vm0, %v2169_v10, 0.0 }
 0x10c   :  { %v644_v23 = vadd.f32 %v643_v59, %v637_v25  ;;  %4917 = vst [vmem:[#allocation32_spill] sm:$0xff] %v4916_v46  ;;  %vm2919_vm6 = vmand %vm134_vm5, %vm2903_vm1  ;;  %v463_v21 = vrot.slane %v462_v51, 2  ;;  %vm135_vm3 = vcmp.eq.s32.totalorder %v131_v55, 0  ;;  %v4923_v0 = vmov 0 }
 0x10d   :  { %v4919_v63 = vsel %vm2919_vm6, 4294967295, %v4918_v63  ;;  %vm136_vm2 = vcmp.eq.s32.totalorder %v132_v43, 0  ;;  %vm2931_vm5 = vmand %vm135_vm3, %vm2896_vm12  ;;  %v869_v8 = vsel %vm2919_vm6, %v2167_v6, 0.0  ;;  %v4926_v53 = vmov 0 }
 0x10e   :  { %v645_v49 = vadd.f32 %v644_v23, %v638_v47  ;;  %4920 = vst [vmem:[#allocation19_spill] sm:$0xff] %v4919_v63  ;;  %v4924_v0 = vsel %vm2931_vm5, 4294967295, %v4923_v0  ;;  %vm2940_vm8 = vmand %vm135_vm3, %vm2903_vm1  ;;  %v876_v41 = vadd.f32 %v869_v8, %v868_v54  ;;  %v464_v58 = vadd.f32 %v463_v21, %v462_v51 }
 0x10f   :  { %905 = vrot.lane.b32.xlu0 %v2215_v39, %s2134_s29  ;;  %4925 = vst [vmem:[#allocation22_spill] sm:$0xff] %v4924_v0  ;;  %v4927_v53 = vsel %vm2940_vm8, 4294967295, %v4926_v53  ;;  %vm2953_vm14 = vmand %vm136_vm2, %vm2896_vm12  ;;  %v4931_v6 = vmov 0  ;;  %v871_v59 = vsel %vm2940_vm8, %v2188_v24, 0.0  ;;  %v4940_v43 = vmov 0 }
 0x110   :  { %646 = vadd.xlane.f32.xlu2 %v645_v49  ;;  %4928 = vst [vmem:[#allocation23_spill] sm:$0xff] %v4927_v53  ;;  %v4932_v6 = vsel %vm2953_vm14, 4294967295, %v4931_v6  ;;  %vm2964_vm3 = vmand %vm136_vm2, %vm2903_vm1  ;;  %v872_v45 = vsel %vm2953_vm14, %v2970_v13, 0.0  ;;  %v465_v40 = vrot.slane %v464_v58, 1 }
 0x111   :  { %4933 = vst [vmem:[#allocation39_spill] sm:$0xff] %v4932_v6  ;;  %v2968_v49 = vpop.permute.xlu0 %683  ;;  %v873_v51 = vsel %vm2964_vm3, %v2209_v37, 0.0 }
 0x117   :  { %918 = vrot.lane.b32.xlu0 %v2169_v10, %s2134_s29  ;;  %v870_v10 = vsel %vm2931_vm5, %v2190_v26, 0.0 }
 0x118   :  { %v877_v23 = vadd.f32 %v876_v41, %v870_v10  ;;  %v3004_v41 = vld [vmem:[#allocation7 + $0x8] sm:$0xff] }
 0x119   :  { %v3000_v8 = vpop.permute.xlu0 %685 }
 0x11a   :  { %v878_v29 = vadd.f32 %v877_v23, %v871_v59  ;;  %v4695_v59 = vrot.slane %v2175_v15, 4  ;;  %v4697_v23 = vrot.slane %v2199_v31, 4 }
 0x11c   :  { %v879_v50 = vadd.f32 %v878_v29, %v872_v45  ;;  %v4698_v45 = vrot.slane %v2180_v18, 4 }
 0x11f   :  { %920 = vrot.lane.b32.xlu0 %v2190_v26, %s2134_s29  ;;  %v4934_v26 = vmov 0 }
 0x120   :  { %v4935_v26 = vsel %vm2964_vm3, 4294967295, %v4934_v26 }
 0x121   :  { %4936 = vst [vmem:[#allocation40_spill] sm:$0xff] %v4935_v26 }
 0x127   :  { %924 = vrot.lane.b32.xlu0 %v2184_v22, %s2134_s29 }
 0x128   :  { %691 = vrot.lane.b32.xlu2 %v2196_v28, %s2133_s28 }
 0x12f   :  { %930 = vrot.lane.b32.xlu0 %v2209_v37, %s2134_s29 }
 0x130   :  { %710 = vrot.lane.b32.xlu2 %v2165_v2, %s2133_s28  ;;  %v133_v2 = vand.u32 3, %v2383_v60 }
 0x132   :  { %vm2947_vm4 = vcmp.eq.s32.totalorder %v133_v2, 0  ;;  %v880_v2 = vadd.f32 %v879_v50, %v873_v51  ;;  %v3025_v51 = vld [vmem:[#allocation7 + $0x18] sm:$0xff] }
 0x133   :  { %v443_v34 = vpop.xlane.xlu1 %442  ;;  %vm2979_vm13 = vmand %vm2947_vm4, %vm2896_vm12  ;;  %v991_v53 = vmul.f32 %v3025_v51, %v3004_v41 }
 0x134   :  { %v444_v17 = vrot.slane %v443_v34, 4  ;;  %vm2990_vm2 = vmand %vm2947_vm4, %vm2903_vm1  ;;  %v874_v21 = vsel %vm2979_vm13, %v2184_v22, 0.0  ;;  %vm4712_vm1 = vcmp.lt.s32.totalorder %v2279_v52, 4  ;;  %vm4721_vm4 = vcmp.lt.s32.totalorder %v2294_v61, 124 }
 0x135   :  { %v4941_v43 = vsel %vm2990_vm2, 4294967295, %v4940_v43  ;;  %v875_v37 = vsel %vm2990_vm2, %v2205_v35, 0.0  ;;  %v881_v1 = vadd.f32 %v880_v2, %v874_v21  ;;  %v3031_v21 = vld [vmem:[#allocation7] sm:$0xff]  ;;  %v3034_v2 = vld [vmem:[#allocation7 + $0x10] sm:$0xff] }
 0x136   :  { %v445_v33 = vadd.f32 %v444_v17, %v443_v34  ;;  %4942 = vst [vmem:[#allocation42_spill] sm:$0xff] %v4941_v43  ;;  %v466_v17 = vadd.f32 %v465_v40, %v464_v58  ;;  %v4699_v40 = vrot.slane %v3004_v41, 4  ;;  %v4956_v46 = vrot.slane %v3034_v2, 4 }
 0x137   :  { %v882_v54 = vadd.f32 %v881_v1, %v875_v37  ;;  %v743_v37 = vsel %vm4712_vm1, %v4698_v45, %v4697_v23  ;;  %v4943_v45 = vrot.slane %v3034_v2, 4 }
 0x138   :  { %v446_v47 = vrot.slane %v445_v33, 2  ;;  %716 = vrot.lane.b32.xlu2 %v2188_v24, %s2133_s28  ;;  %v4937_v24 = vmov 0  ;;  %v795_v9 = vsub.f32 %v743_v37, %v2180_v18 }
 0x139   :  { %v4938_v24 = vsel %vm2979_vm13, 4294967295, %v4937_v24  ;;  %883 = vadd.xlane.f32.xlu1 %v882_v54 }
 0x13a   :  { %v447_v32 = vadd.f32 %v446_v47, %v445_v33  ;;  %4939 = vst [vmem:[#allocation41_spill] sm:$0xff] %v4938_v24  ;;  %v688_v33 = vpop.permute.xlu0 %687  ;;  %v4694_v47 = vrot.slane %v2196_v28, 4 }
 0x13c   :  { %v448_v55 = vrot.slane %v447_v32, 1 }
 0x13e   :  { %v449_v34 = vadd.f32 %v448_v55, %v447_v32  ;;  %v672_v32 = vpop.xlane.xlu1 %671  ;;  %v4700_v55 = vrot.slane %v3025_v51, 4 }
 0x13f   :  { %v673_v29 = vrot.slane %v672_v32, 4 }
 0x140   :  { %1966 = vpush %v449_v34 }
 0x141   :  { %1968 = vpush %v466_v17  ;;  %v760_v17 = vsel %vm4712_vm1, %v4699_v40, %v4700_v55  ;;  %v3067_v40 = vadd.s32 4, %v4910_v42 }
 0x142   :  { %v690_v10 = vpop.permute.xlu0 %689 }
 0x143   :  { %v698_v50 = vsel %vm4721_vm4, %v2901_v7, %v690_v10  ;;  %v702_v1 = vsel %vm4721_vm4, %v690_v10, %v2901_v7  ;;  %v4944_v7 = vrot.slane %v3031_v21, 4  ;;  %vm4713_vm12 = vcmp.lt.s32.totalorder %v3067_v40, 256 }
 0x144   :  { %v763_v34 = vsub.f32 %v698_v50, %v2180_v18  ;;  %v764_v23 = vsub.f32 %v702_v1, %v2175_v15  ;;  %v812_v1 = vmul.f32 %v3004_v41, %v760_v17 }
 0x145   :  { %v759_v10 = vsel %vm4712_vm1, %v4944_v7, %v4943_v45  ;;  %v803_v7 = vand.u32 2147483647, %v795_v9 }
 0x146   :  { %v771_v5 = vand.u32 2147483647, %v763_v34  ;;  %v811_v36 = vmul.f32 %v3031_v21, %v759_v10  ;;  %v772_v44 = vand.u32 2147483647, %v764_v23 }
 0x148   :  { %v819_v9 = vmul.f32 %v811_v36, %v803_v7  ;;  %v4948_v7 = vrot.slane %v2180_v18, 4 }
 0x14a   :  { %v696_v22 = vpop.permute.xlu0 %695 }
 0x14b   :  { %v705_v34 = vsel %vm4721_vm4, %v696_v22, %v688_v33 }
 0x152   :  { %907 = vrot.lane.b32.xlu1 %v2212_v38, %s2134_s29  ;;  %v707_v58 = vpop.permute.xlu0 %706 }
 0x153   :  { %v694_v12 = vpop.permute.xlu1 %693 }
 0x15a   :  { %926 = vrot.lane.b32.xlu1 %v3004_v41, %s2134_s29  ;;  %v3010_v25 = vpop.permute.xlu0 %708 }
 0x162   :  { %932 = vrot.lane.b32.xlu1 %v2205_v35, %s2134_s29  ;;  %v744_v35 = vsel %vm4712_vm1, %v4695_v59, %v4694_v47  ;;  %v715_v54 = vpop.permute.xlu0 %714  ;;  %v674_v47 = vadd.f32 %v673_v29, %v672_v32  ;;  %vm3084_vm1 = vmand %vm2919_vm6, %vm4713_vm12  ;;  %vm4949_vm12 = vcmp.lt.s32.totalorder %v2279_v52, 4 }
 0x163   :  { %v796_v59 = vsub.f32 %v744_v35, %v2175_v15  ;;  %v722_v32 = vsel %vm4721_vm4, %v707_v58, %v715_v54  ;;  %v726_v29 = vsel %vm4721_vm4, %v715_v54, %v707_v58  ;;  %v701_v58 = vsel %vm4721_vm4, %v688_v33, %v696_v22 }
 0x164   :  { %v675_v35 = vrot.slane %v674_v47, 2  ;;  %v779_v45 = vmul.f32 %v3031_v21, %v722_v32  ;;  %v780_v54 = vmul.f32 %v3004_v41, %v726_v29  ;;  %v769_v10 = vsub.f32 %v701_v58, %v2193_v27 }
 0x165   :  { %v804_v37 = vand.u32 2147483647, %v796_v59  ;;  %v737_v33 = vrot.slane %v2212_v38, 4  ;;  %v770_v22 = vsub.f32 %v705_v34, %v2212_v38  ;;  %v745_v58 = vsel %vm4949_vm12, %v736_v62, %v4948_v7 }
 0x166   :  { %v676_v19 = vadd.f32 %v675_v35, %v674_v47  ;;  %v787_v32 = vmul.f32 %v779_v45, %v771_v5  ;;  %v788_v48 = vmul.f32 %v780_v54, %v772_v44  ;;  %v4945_v47 = vmov 0 }
 0x167   :  { %v820_v59 = vmul.f32 %v812_v1, %v804_v37  ;;  %v4946_v47 = vsel %vm3084_vm1, 4294967295, %v4945_v47  ;;  %v3090_v36 = vand.u32 2147483647, %v769_v10  ;;  %v835_v35 = vsel %vm2913_vm0, %v819_v9, 0.0  ;;  %v3117_v9 = vld [vmem:[#allocation7 + $0x30] sm:$0xff] }
 0x168   :  { %4947 = vst [vmem:[#allocation43_spill] sm:$0xff] %v4946_v47  ;;  %v677_v29 = vrot.slane %v676_v19, 1  ;;  %v827_v44 = vsel %vm2913_vm0, %v787_v32, 0.0  ;;  %v828_v37 = vsel %vm3084_vm1, %v788_v48, 0.0  ;;  %v734_v45 = vrot.slane %v2172_v11, 4 }
 0x169   :  { %v700_v54 = vsel %vm4721_vm4, %v3000_v8, %v694_v12  ;;  %v4950_v34 = vrot.slane %v2175_v15, 4  ;;  %v3113_v10 = vand.u32 2147483647, %v770_v22  ;;  %v3115_v32 = vadd.f32 %v835_v35, %v827_v44  ;;  %v3133_v35 = vld [vmem:[#allocation7 + $0x38] sm:$0xff] }
 0x16a   :  { %v704_v7 = vsel %vm4721_vm4, %v694_v12, %v3000_v8  ;;  %v4954_v22 = vrot.slane %v2196_v28, 4  ;;  %v3142_v8 = vld [vmem:[#allocation7 + $0x28] sm:$0xff]  ;;  %vm4960_vm1 = vcmp.lt.s32.totalorder %v2294_v61, 124  ;;  %v721_v16 = vpop.permute.xlu0 %720 }
 0x171   :  { %s1967_s30 = spop %1966 }
 0x172   :  { %s1969_s4 = spop %1968 }
 0x183   :  { %v647_v50 = vpop.xlane.xlu2 %646 }
 0x184   :  { %v648_v55 = vrot.slane %v647_v50, 4 }
 0x186   :  { %v649_v4 = vadd.f32 %v648_v55, %v647_v50  ;;  %v713_v50 = vpop.permute.xlu1 %712 }
 0x188   :  { %v650_v17 = vrot.slane %v649_v4, 2 }
 0x18a   :  { %v651_v23 = vadd.f32 %v650_v17, %v649_v4  ;;  %v836_v4 = vsel %vm2919_vm6, %v820_v59, 0.0  ;;  %v678_v59 = vadd.f32 %v677_v29, %v676_v19  ;;  %v735_v17 = vrot.slane %v2215_v39, 4  ;;  %vm4951_vm6 = vmmov %vm4949_vm12 }
 0x18b   :  { %v692_v55 = vpop.permute.xlu2 %691  ;;  %v746_v48 = vsel %vm4951_vm6, %v737_v33, %v4950_v34  ;;  %vm4953_vm12 = vmmov %vm4951_vm6  ;;  %v3124_v29 = vadd.f32 %v836_v4, %v828_v37  ;;  %v767_v34 = vsub.f32 %v700_v54, %v2172_v11  ;;  %v801_v4 = vsub.f32 %v745_v58, %v2193_v27 }
 0x18c   :  { %v652_v5 = vrot.slane %v651_v23, 1  ;;  %v742_v44 = vsel %vm4951_vm6, %v4954_v22, %v735_v17  ;;  %v802_v37 = vsub.f32 %v746_v48, %v2212_v38  ;;  %v740_v63 = vsel %vm4951_vm6, %v735_v17, %v737_v33  ;;  %vm4957_vm4 = vmmov %vm4951_vm6 }
 0x18d   :  { %v768_v54 = vsub.f32 %v704_v7, %v2215_v39  ;;  %v798_v48 = vsub.f32 %v742_v44, %v2196_v28  ;;  %v4961_v33 = vrot.slane %v3025_v51, 4  ;;  %v3166_v7 = vadd.s32 4, %v2383_v60 }
 0x18e   :  { %v653_v1 = vadd.f32 %v652_v5, %v651_v23  ;;  %v753_v23 = vrot.slane %v3117_v9, 4  ;;  %v4952_v5 = vrot.slane %v2199_v31, 4  ;;  %v719_v57 = vpop.permute.xlu1 %718  ;;  %v800_v14 = vsub.f32 %v740_v63, %v2215_v39 }
 0x18f   :  { %v809_v30 = vand.u32 2147483647, %v801_v4 }
 0x190   :  { %1970 = vpush %v653_v1  ;;  %v741_v19 = vsel %vm4953_vm12, %v4952_v5, %v734_v45  ;;  %v754_v1 = vrot.slane %v3133_v35, 4  ;;  %v751_v5 = vrot.slane %v2970_v13, 4  ;;  %vm4955_vm12 = vmmov %vm4951_vm6 }
 0x191   :  { %1972 = vpush %v678_v59  ;;  %v739_v12 = vsel %vm4955_vm12, %v734_v45, %v736_v62  ;;  %v752_v59 = vrot.slane %v3142_v8, 4  ;;  %v797_v22 = vsub.f32 %v741_v19, %v2199_v31  ;;  %v4958_v62 = vrot.slane %v3031_v21, 4  ;;  %vm4959_vm12 = vmmov %vm4957_vm4 }
 0x192   :  { %v757_v58 = vsel %vm4957_vm4, %v4956_v46, %v751_v5  ;;  %v699_v19 = vsel %vm4960_vm1, %v2968_v49, %v692_v55  ;;  %vm4962_vm6 = vmmov %vm4957_vm4  ;;  %v4963_v46 = vrot.slane %v3004_v41, 4  ;;  %v799_v56 = vsub.f32 %v739_v12, %v2172_v11 }
 0x193   :  { %v711_v47 = vpop.permute.xlu2 %710  ;;  %v761_v45 = vsel %vm4959_vm12, %v753_v23, %v4958_v62  ;;  %v758_v17 = vsel %vm4962_vm6, %v4961_v33, %v752_v59  ;;  %vm4964_vm12 = vmmov %vm4960_vm1  ;;  %v805_v38 = vand.u32 2147483647, %v797_v22  ;;  %v813_v27 = vmul.f32 %v3034_v2, %v757_v58 }
 0x194   :  { %v762_v44 = vsel %vm4957_vm4, %v754_v1, %v4963_v46  ;;  %v703_v62 = vsel %vm4964_vm12, %v692_v55, %v2968_v49  ;;  %vm4965_vm1 = vmmov %vm4957_vm4  ;;  %v765_v46 = vsub.f32 %v699_v19, %v2199_v31  ;;  %v806_v49 = vand.u32 2147483647, %v798_v48 }
 0x195   :  { %v755_v33 = vsel %vm4965_vm1, %v751_v5, %v753_v23  ;;  %vm4966_vm6 = vmmov %vm4965_vm1  ;;  %v814_v55 = vmul.f32 %v3025_v51, %v758_v17  ;;  %v775_v12 = vand.u32 2147483647, %v767_v34  ;;  %v766_v23 = vsub.f32 %v703_v62, %v2196_v28 }
 0x196   :  { %v756_v15 = vsel %vm4966_vm6, %v752_v59, %v754_v1  ;;  %vm4967_vm4 = vmmov %vm4964_vm12  ;;  %v810_v5 = vand.u32 2147483647, %v802_v37  ;;  %v807_v22 = vand.u32 2147483647, %v799_v56  ;;  %v815_v1 = vmul.f32 %v2970_v13, %v755_v33 }
 0x197   :  { %v724_v18 = vsel %vm4967_vm4, %v711_v47, %v719_v57  ;;  %vm4968_vm12 = vmmov %vm4967_vm4  ;;  %v821_v48 = vmul.f32 %v813_v27, %v805_v38  ;;  %v808_v34 = vand.u32 2147483647, %v800_v14  ;;  %v816_v17 = vmul.f32 %v3142_v8, %v756_v15 }
 0x198   :  { %v725_v63 = vsel %vm4968_vm12, %v713_v50, %v721_v16  ;;  %vm4969_vm1 = vmmov %vm4967_vm4  ;;  %v783_v58 = vmul.f32 %v2970_v13, %v724_v18  ;;  %v773_v39 = vand.u32 2147483647, %v765_v46  ;;  %v822_v11 = vmul.f32 %v814_v55, %v806_v49 }
 0x199   :  { %v729_v4 = vsel %vm4969_vm1, %v721_v16, %v713_v50  ;;  %vm4970_vm6 = vmmov %vm4969_vm1  ;;  %v774_v56 = vand.u32 2147483647, %v766_v23  ;;  %v776_v38 = vand.u32 2147483647, %v768_v54  ;;  %v785_v15 = vmul.f32 %v3117_v9, %v725_v63 }
 0x19a   :  { %v728_v59 = vsel %vm4970_vm6, %v719_v57, %v711_v47  ;;  %vm4971_vm4 = vmmov %vm4969_vm1  ;;  %v823_v14 = vmul.f32 %v815_v1, %v807_v22  ;;  %v4974_v47 = vmov 0  ;;  %v791_v50 = vmul.f32 %v783_v58, %v775_v12 }
 0x19b   :  { %v717_v19 = vpop.permute.xlu2 %716  ;;  %vm4972_vm12 = vmmov %vm4969_vm1  ;;  %v784_v57 = vmul.f32 %v3142_v8, %v728_v59  ;;  %vm4973_vm1 = vcmp.lt.s32.totalorder %v3067_v40, 256  ;;  %v837_v62 = vsel %vm2931_vm5, %v821_v48, 0.0  ;;  %v786_v54 = vmul.f32 %v3133_v35, %v729_v4 }
 0x19c   :  { %v723_v37 = vsel %vm4971_vm4, %v3010_v25, %v717_v19  ;;  %v727_v16 = vsel %vm4972_vm12, %v717_v19, %v3010_v25  ;;  %vm3210_vm6 = vmand %vm2940_vm8, %vm4973_vm1  ;;  %v817_v25 = vmul.f32 %v3117_v9, %v761_v45  ;;  %vm169_vm4 = vcmp.lt.s32.totalorder %v3166_v7, 32 }
 0x19d   :  { %v781_v18 = vmul.f32 %v3034_v2, %v723_v37  ;;  %v782_v27 = vmul.f32 %v3025_v51, %v727_v16  ;;  %v4975_v47 = vsel %vm3210_vm6, 4294967295, %v4974_v47  ;;  %v818_v49 = vmul.f32 %v3133_v35, %v762_v44  ;;  %vm4977_vm12 = vmmov %vm4973_vm1 }
 0x19e   :  { %4976 = vst [vmem:[#allocation44_spill] sm:$0xff] %v4975_v47  ;;  %v824_v55 = vmul.f32 %v816_v17, %v808_v34  ;;  %v792_v63 = vmul.f32 %v784_v57, %v776_v38  ;;  %v838_v23 = vsel %vm2940_vm8, %v822_v11, 0.0  ;;  %vm3232_vm1 = vmand %vm2964_vm3, %vm4977_vm12  ;;  %v4978_v44 = vmov 0 }
 0x19f   :  { %v789_v33 = vmul.f32 %v781_v18, %v773_v39  ;;  %v790_v46 = vmul.f32 %v782_v27, %v774_v56  ;;  %v851_v39 = vadd.f32 %v3124_v29, %v3115_v32  ;;  %v4979_v44 = vsel %vm3232_vm1, 4294967295, %v4978_v44  ;;  %vm3245_vm12 = vmand %vm2979_vm13, %vm169_vm4 }
 0x1a0   :  { %4980 = vst [vmem:[#allocation45_spill] sm:$0xff] %v4979_v44  ;;  %v793_v11 = vmul.f32 %v785_v15, %v3090_v36  ;;  %v839_v22 = vsel %vm2953_vm14, %v823_v14, 0.0  ;;  %v831_v1 = vsel %vm2953_vm14, %v791_v50, 0.0  ;;  %v825_v59 = vmul.f32 %v817_v25, %v809_v30  ;;  %vm3266_vm8 = vmand %vm2990_vm2, %vm169_vm4  ;;  %v1073_v25 = vld [vmem:[#allocation2 + $0x40] sm:$0xff] }
 0x1a1   :  { %v829_v45 = vsel %vm2931_vm5, %v789_v33, 0.0  ;;  %v830_v12 = vsel %vm3210_vm6, %v790_v46, 0.0  ;;  %v4981_v29 = vmov 0  ;;  %v794_v48 = vmul.f32 %v786_v54, %v3113_v10  ;;  %v1082_v50 = vld [vmem:[#allocation5 + $0x40] sm:$0xff]  ;;  %v1075_v46 = vld [vmem:[#allocation2 + $0x50] sm:$0xff] }
 0x1a2   :  { %v845_v4 = vadd.f32 %v837_v62, %v829_v45  ;;  %v846_v58 = vadd.f32 %v838_v23, %v830_v12  ;;  %v4982_v29 = vsel %vm3245_vm12, 4294967295, %v4981_v29  ;;  %v832_v36 = vsel %vm3232_vm1, %v792_v63, 0.0  ;;  %v3278_v62 = vld [vmem:[#allocation7 + $0x40] sm:$0xff]  ;;  %v1084_v54 = vld [vmem:[#allocation5 + $0x50] sm:$0xff] }
 0x1a3   :  { %4983 = vst [vmem:[#allocation46_spill] sm:$0xff] %v4982_v29  ;;  %vm4984_vm6 = vcmp.lt.s32.totalorder %v3067_v40, 256  ;;  %v4985_v30 = vmov 0  ;;  %v826_v19 = vmul.f32 %v818_v49, %v810_v5  ;;  %v840_v34 = vsel %vm2964_vm3, %v824_v55, 0.0  ;;  %v3285_v63 = vld [vmem:[#allocation7 + $0x50] sm:$0xff]  ;;  %v1077_v45 = vld [vmem:[#allocation2 + $0x60] sm:$0xff] }
 0x1a4   :  { %v852_v32 = vadd.f32 %v851_v39, %v845_v4  ;;  %vm3256_vm14 = vmand %vm2990_vm2, %vm4984_vm6  ;;  %v847_v17 = vadd.f32 %v839_v22, %v831_v1  ;;  %v4988_v10 = vmov 0  ;;  %v833_v37 = vsel %vm2979_vm13, %v793_v11, 0.0  ;;  %v1086_v12 = vld [vmem:[#allocation5 + $0x60] sm:$0xff]  ;;  %v1079_v22 = vld [vmem:[#allocation2 + $0x70] sm:$0xff] }
 0x1a5   :  { %v4986_v30 = vsel %vm3256_vm14, 4294967295, %v4985_v30  ;;  %v4989_v10 = vsel %vm3266_vm8, 4294967295, %v4988_v10  ;;  %v841_v16 = vsel %vm3245_vm12, %v825_v59, 0.0  ;;  %v848_v5 = vadd.f32 %v840_v34, %v832_v36  ;;  %v3292_v4 = vld [vmem:[#allocation7 + $0x60] sm:$0xff]  ;;  %v1088_v1 = vld [vmem:[#allocation5 + $0x70] sm:$0xff]  ;;  %v1083_v36 = vld [vmem:[#allocation5 + $0x48] sm:$0xff] }
 0x1a6   :  { %4987 = vst [vmem:[#allocation47_spill] sm:$0xff] %v4986_v30  ;;  %v853_v40 = vadd.f32 %v852_v32, %v846_v58  ;;  %v834_v57 = vsel %vm3256_vm14, %v794_v48, 0.0  ;;  %v842_v7 = vsel %vm3266_vm8, %v826_v19, 0.0  ;;  %v849_v18 = vadd.f32 %v841_v16, %v833_v37  ;;  %v3301_v58 = vld [vmem:[#allocation7 + $0x70] sm:$0xff]  ;;  %v1074_v48 = vld [vmem:[#allocation2 + $0x48] sm:$0xff] }
 0x1a7   :  { %4990 = vst [vmem:[#allocation48_spill] sm:$0xff] %v4989_v10  ;;  %v850_v38 = vadd.f32 %v842_v7, %v834_v57  ;;  %v1099_v33 = vsub.f32 %v1073_v25, %v1082_v50  ;;  %v1101_v55 = vsub.f32 %v1075_v46, %v1084_v54  ;;  %v1103_v39 = vsub.f32 %v1077_v45, %v1086_v12  ;;  %v3310_v34 = vld [vmem:[#allocation7 + $0x48] sm:$0xff] }
 0x1a8   :  { %v854_v56 = vadd.f32 %v853_v40, %v847_v17  ;;  %v1105_v59 = vsub.f32 %v1079_v22, %v1088_v1  ;;  %v1100_v19 = vsub.f32 %v1074_v48, %v1083_v36  ;;  %v1078_v40 = vld [vmem:[#allocation2 + $0x68] sm:$0xff]  ;;  %v4997_v50 = vmov 0 }
 0x1a9   :  { %v3281_v49 = vmul.f32 %v1099_v33, %v3278_v62  ;;  %v3288_v23 = vmul.f32 %v1101_v55, %v3285_v63  ;;  %v3297_v11 = vmul.f32 %v1103_v39, %v3292_v4  ;;  %v1087_v37 = vld [vmem:[#allocation5 + $0x68] sm:$0xff]  ;;  %v179_v33 = vand.u32 7, %v4921_v3 }
 0x1aa   :  { %v855_v27 = vadd.f32 %v854_v56, %v848_v5  ;;  %v3306_v32 = vmul.f32 %v1105_v59, %v3301_v58  ;;  %v3315_v17 = vmul.f32 %v1100_v19, %v3310_v34  ;;  %v1104_v16 = vsub.f32 %v1078_v40, %v1087_v37  ;;  %v3319_v5 = vld [vmem:[#allocation7 + $0x68] sm:$0xff]  ;;  %v3321_v56 = vpop.permute.xlu0 %893 }
 0x1ab   :  { %1115 = vrot.lane.b32.xlu1 %v3281_v49, %s2131_s0  ;;  %4991 = vst [vmem:[#allocation49_spill] sm:$0xff] %v3288_v23  ;;  %v5000_v46 = vmov 0  ;;  %vm183_vm1 = vcmp.eq.s32.totalorder %v179_v33, 0  ;;  %v5003_v3 = vmov 0  ;;  %v180_v12 = vand.u32 7, %v4922_v20  ;;  %v5022_v30 = vld [vmem:[#allocation13_spill] sm:$0xff] }
 0x1ac   :  { %v856_v15 = vadd.f32 %v855_v27, %v849_v18  ;;  %4992 = vst [vmem:[#allocation50_spill] sm:$0xff] %v3297_v11  ;;  %v3324_v57 = vmul.f32 %v1104_v16, %v3319_v5  ;;  %v178_v18 = vand.u32 7, %v2279_v52  ;;  %v186_v27 = vand.u32 7, %v2294_v61 }
 0x1ad   :  { %v181_v39 = vand.u32 7, %v2383_v60  ;;  %v5006_v1 = vmov 0  ;;  %vm184_vm13 = vcmp.eq.s32.totalorder %v180_v12, 0  ;;  %v5009_v60 = vmov 0 }
 0x1ae   :  { %v857_v14 = vadd.f32 %v856_v15, %v850_v38  ;;  %v187_v38 = vand.u32 7, %v4910_v42  ;;  %vm182_vm6 = vcmp.eq.s32.totalorder %v178_v18, 0  ;;  %vm3335_vm4 = vcmp.eq.s32.totalorder %v186_v27, 0 }
 0x1af   :  { %vm3347_vm8 = vmand %vm182_vm6, %vm3335_vm4  ;;  %vm185_vm5 = vcmp.eq.s32.totalorder %v181_v39, 0  ;;  %v5012_v40 = vmov 0  ;;  %v5015_v18 = vmov 0  ;;  %v5018_v33 = vmov 0  ;;  %v1080_v39 = vld [vmem:[#allocation2 + $0x78] sm:$0xff] }
 0x1b0   :  { %858 = vadd.xlane.f32.xlu2 %v857_v14  ;;  %vm3339_vm14 = vcmp.eq.s32.totalorder %v187_v38, 0  ;;  %v4998_v50 = vsel %vm3347_vm8, 4294967295, %v4997_v50  ;;  %v1047_v54 = vsel %vm3347_vm8, %v3031_v21, 0.0  ;;  %vm3368_vm2 = vmand %vm183_vm1, %vm3335_vm4  ;;  %v975_v10 = vsub.f32 %v2196_v28, %v5022_v30 }
 0x1b1   :  { %4999 = vst [vmem:[#allocation51_spill] sm:$0xff] %v4998_v50  ;;  %vm3354_vm12 = vmand %vm182_vm6, %vm3339_vm14  ;;  %v5004_v3 = vsel %vm3368_vm2, 4294967295, %v5003_v3  ;;  %v1049_v22 = vsel %vm3368_vm2, %v3034_v2, 0.0  ;;  %v990_v47 = vmul.f32 %v3034_v2, %v3031_v21  ;;  %v5118_v50 = vld [vmem:[#allocation31_spill] sm:$0xff] }
 0x1b2   :  { %v3328_v7 = vpop.permute.xlu0 %895  ;;  %v5001_v46 = vsel %vm3354_vm12, 4294967295, %v5000_v46  ;;  %v1048_v55 = vsel %vm3354_vm12, %v3004_v41, 0.0  ;;  %5005 = vst [vmem:[#allocation53_spill] sm:$0xff] %v5004_v3  ;;  %vm3379_vm6 = vmand %vm183_vm1, %vm3339_vm14  ;;  %v983_v6 = vand.u32 2147483647, %v975_v10 }
 0x1b3   :  { %1117 = vrot.lane.b32.xlu1 %v3288_v23, %s2131_s0  ;;  %5002 = vst [vmem:[#allocation52_spill] sm:$0xff] %v5001_v46  ;;  %v1055_v45 = vadd.f32 %v1048_v55, %v1047_v54  ;;  %v5007_v1 = vsel %vm3379_vm6, 4294967295, %v5006_v1  ;;  %v1050_v48 = vsel %vm3379_vm6, %v3025_v51, 0.0  ;;  %vm3388_vm3 = vmand %vm184_vm13, %vm3335_vm4 }
 0x1b4   :  { %5008 = vst [vmem:[#allocation54_spill] sm:$0xff] %v5007_v1  ;;  %v5010_v60 = vsel %vm3388_vm3, 4294967295, %v5009_v60  ;;  %v1051_v36 = vsel %vm3388_vm3, %v2970_v13, 0.0  ;;  %vm3399_vm1 = vmand %vm184_vm13, %vm3339_vm14 }
 0x1b5   :  { %v1056_v59 = vadd.f32 %v1055_v45, %v1049_v22  ;;  %5011 = vst [vmem:[#allocation55_spill] sm:$0xff] %v5010_v60  ;;  %v5013_v40 = vsel %vm3399_vm1, 4294967295, %v5012_v40  ;;  %v1052_v16 = vsel %vm3399_vm1, %v3142_v8, 0.0  ;;  %vm3410_vm0 = vmand %vm185_vm5, %vm3335_vm4  ;;  %v1089_v22 = vld [vmem:[#allocation5 + $0x78] sm:$0xff] }
 0x1b6   :  { %5014 = vst [vmem:[#allocation56_spill] sm:$0xff] %v5013_v40  ;;  %v5016_v18 = vsel %vm3410_vm0, 4294967295, %v5015_v18  ;;  %v1053_v38 = vsel %vm3410_vm0, %v3117_v9, 0.0  ;;  %vm3419_vm13 = vmand %vm185_vm5, %vm3339_vm14  ;;  %vm4787_vm14 = vcmp.lt.s32.totalorder %v2294_v61, 120 }
 0x1b7   :  { %v1057_v20 = vadd.f32 %v1056_v59, %v1050_v48  ;;  %5017 = vst [vmem:[#allocation57_spill] sm:$0xff] %v5016_v18  ;;  %v5019_v33 = vsel %vm3419_vm13, 4294967295, %v5018_v33  ;;  %v1054_v15 = vsel %vm3419_vm13, %v3133_v35, 0.0  ;;  %v1106_v59 = vsub.f32 %v1080_v39, %v1089_v22  ;;  %v3426_v48 = vld [vmem:[#allocation7 + $0x78] sm:$0xff] }
 0x1b8   :  { %5020 = vst [vmem:[#allocation58_spill] sm:$0xff] %v5019_v33  ;;  %v1388_v46 = vrot.slane %v3426_v48, 2 }
 0x1b9   :  { %v1058_v37 = vadd.f32 %v1057_v20, %v1051_v36  ;;  %v884_v20 = vpop.xlane.xlu1 %883  ;;  %v3429_v14 = vmul.f32 %v1106_v59, %v3426_v48  ;;  %v5021_v59 = vld [vmem:[#allocation14_spill] sm:$0xff] }
 0x1ba   :  { %v3343_v25 = vpop.permute.xlu0 %897  ;;  %v885_v36 = vrot.slane %v884_v20, 4 }
 0x1bb   :  { %1119 = vrot.lane.b32.xlu1 %v3297_v11, %s2131_s0  ;;  %v1059_v27 = vadd.f32 %v1058_v37, %v1052_v16 }
 0x1bc   :  { %v886_v16 = vadd.f32 %v885_v36, %v884_v20  ;;  %v974_v20 = vsub.f32 %v2199_v31, %v5021_v59 }
 0x1bd   :  { %v1060_v54 = vadd.f32 %v1059_v27, %v1053_v38 }
 0x1be   :  { %v887_v38 = vrot.slane %v886_v16, 2  ;;  %v982_v43 = vand.u32 2147483647, %v974_v20 }
 0x1bf   :  { %v1061_v55 = vadd.f32 %v1060_v54, %v1054_v15 }
 0x1c0   :  { %v888_v22 = vadd.f32 %v887_v38, %v886_v16 }
 0x1c1   :  { %1062 = vadd.xlane.f32.xlu0 %v1061_v55  ;;  %s1971_s5 = spop %1970 }
 0x1c2   :  { %v3395_v19 = vpop.permute.xlu0 %899  ;;  %v889_v44 = vrot.slane %v888_v22, 1  ;;  %s1973_s6 = spop %1972 }
 0x1c3   :  { %1121 = vrot.lane.b32.xlu1 %v3306_v32, %s2131_s0 }
 0x1c4   :  { %v3437_v27 = vpop.permute.xlu1 %907 }
 0x1c8   :  { %903 = vrot.lane.b32.xlu2 %v2196_v28, %s2134_s29 }
 0x1ca   :  { %v902_v45 = vpop.permute.xlu0 %901 }
 0x1cb   :  { %1123 = vrot.lane.b32.xlu1 %v3315_v17, %s2131_s0  ;;  %v914_v16 = vsel %vm4787_vm14, %v902_v45, %v3321_v56 }
 0x1cc   :  { %v927_v38 = vpop.permute.xlu1 %926 }
 0x1d0   :  { %922 = vrot.lane.b32.xlu2 %v2970_v13, %s2134_s29 }
 0x1d2   :  { %v906_v12 = vpop.permute.xlu0 %905 }
 0x1d3   :  { %1127 = vrot.lane.b32.xlu1 %v3324_v57, %s2131_s0  ;;  %v912_v20 = vsel %vm4787_vm14, %v3343_v25, %v906_v12 }
 0x1d5   :  { %1129 = vrot.lane.b32.xlu0 %v3429_v14, %s2131_s0 }
 0x1d8   :  { %928 = vrot.lane.b32.xlu2 %v3025_v51, %s2134_s29 }
 0x1da   :  { %v919_v37 = vpop.permute.xlu0 %918 }
 0x1db   :  { %1139 = vrot.lane.b32.xlu1 %v3278_v62, %s2131_s0  ;;  %v938_v10 = vsel %vm4787_vm14, %v927_v38, %v919_v37 }
 0x1dd   :  { %1145 = vrot.lane.b32.xlu0 %v3301_v58, %s2131_s0 }
 0x1e2   :  { %v3441_v54 = vpop.permute.xlu0 %920 }
 0x1e3   :  { %1141 = vrot.lane.b32.xlu1 %v3285_v63, %s2131_s0 }
 0x1e5   :  { %1151 = vrot.lane.b32.xlu0 %v3319_v5, %s2131_s0 }
 0x1ea   :  { %v3463_v0 = vpop.permute.xlu0 %924 }
 0x1eb   :  { %1147 = vrot.lane.b32.xlu1 %v3310_v34, %s2131_s0 }
 0x1f3   :  { %1153 = vrot.lane.b32.xlu1 %v3426_v48, %s2131_s0 }
 0x1fb   :  { %1317 = vrot.lane.b32.xlu1 %v3281_v49, %s2132_s2 }
 0x203   :  { %1319 = vrot.lane.b32.xlu1 %v3288_v23, %s2132_s2 }
 0x20b   :  { %1321 = vrot.lane.b32.xlu1 %v3297_v11, %s2132_s2 }
 0x213   :  { %1323 = vrot.lane.b32.xlu1 %v3306_v32, %s2132_s2 }
 0x21b   :  { %1325 = vrot.lane.b32.xlu1 %v3315_v17, %s2132_s2 }
 0x223   :  { %v859_v15 = vpop.xlane.xlu2 %858  ;;  %1331 = vrot.lane.b32.xlu1 %v3429_v14, %s2132_s2 }
 0x224   :  { %v860_v55 = vrot.slane %v859_v15, 4 }
 0x226   :  { %v861_v39 = vadd.f32 %v860_v55, %v859_v15  ;;  %v910_v15 = vsel %vm4787_vm14, %v3321_v56, %v902_v45  ;;  %v934_v56 = vsel %vm4787_vm14, %v919_v37, %v927_v38  ;;  %v5023_v37 = vld [vmem:[#allocation12_spill] sm:$0xff]  ;;  %v5024_v38 = vld [vmem:[#allocation17_spill] sm:$0xff] }
 0x227   :  { %v942_v26 = vsub.f32 %v910_v15, %v5021_v59  ;;  %v890_v59 = vadd.f32 %v889_v44, %v888_v22  ;;  %v998_v15 = vmul.f32 %v990_v47, %v982_v43  ;;  %v946_v44 = vsub.f32 %v912_v20, %v5023_v37 }
 0x228   :  { %v862_v36 = vrot.slane %v861_v39, 2  ;;  %v959_v22 = vmul.f32 %v3004_v41, %v938_v10  ;;  %v931_v41 = vpop.permute.xlu0 %930  ;;  %v5026_v20 = vmov 0 }
 0x22a   :  { %v863_v55 = vadd.f32 %v862_v36, %v861_v39  ;;  %v943_v39 = vsub.f32 %v914_v16, %v5022_v30  ;;  %v916_v36 = vsel %vm4787_vm14, %v906_v12, %v3343_v25  ;;  %v3479_v30 = vadd.s32 8, %v4910_v42 }
 0x22b   :  { %v904_v29 = vpop.permute.xlu2 %903  ;;  %v958_v16 = vmul.f32 %v3031_v21, %v934_v56  ;;  %v947_v23 = vsub.f32 %v916_v36, %v5024_v38  ;;  %v976_v25 = vsub.f32 %v5023_v37, %v2199_v31  ;;  %v977_v42 = vsub.f32 %v5024_v38, %v2196_v28  ;;  %1341 = vrot.lane.b32.xlu1 %v3278_v62, %s2132_s2 }
 0x22c   :  { %v864_v24 = vrot.slane %v863_v55, 1  ;;  %v951_v52 = vand.u32 2147483647, %v943_v39  ;;  %vm201_vm5 = vcmp.lt.s32.totalorder %v3479_v30, 256  ;;  %v911_v43 = vsel %vm4787_vm14, %v3328_v7, %v904_v29  ;;  %v5025_v39 = vld [vmem:[#allocation15_spill] sm:$0xff] }
 0x22d   :  { %v954_v21 = vand.u32 2147483647, %v946_v44  ;;  %v915_v12 = vsel %vm4787_vm14, %v904_v29, %v3328_v7  ;;  %v978_v56 = vsub.f32 %v5025_v39, %v5023_v37  ;;  %vm3506_vm4 = vmand %vm3354_vm12, %vm201_vm5  ;;  %v984_v10 = vand.u32 2147483647, %v976_v25 }
 0x22e   :  { %v865_v45 = vadd.f32 %v864_v24, %v863_v55  ;;  %v950_v24 = vand.u32 2147483647, %v942_v26  ;;  %v999_v55 = vmul.f32 %v991_v53, %v983_v6  ;;  %v1014_v53 = vsel %vm3347_vm8, %v998_v15, 0.0 }
 0x22f   :  { %v967_v47 = vmul.f32 %v959_v22, %v951_v52  ;;  %v5027_v20 = vsel %vm3506_vm4, 4294967295, %v5026_v20  ;;  %v992_v52 = vmul.f32 %v3034_v2, %v2970_v13  ;;  %v944_v29 = vsub.f32 %v911_v43, %v2199_v31 }
 0x230   :  { %1974 = vpush %v865_v45  ;;  %v1015_v6 = vsel %vm3354_vm12, %v999_v55, 0.0  ;;  %v966_v26 = vmul.f32 %v958_v16, %v950_v24  ;;  %v955_v45 = vand.u32 2147483647, %v947_v23  ;;  %v985_v7 = vand.u32 2147483647, %v977_v42  ;;  %vm3580_vm12 = vmand %vm3399_vm1, %vm201_vm5 }
 0x231   :  { %1976 = vpush %v890_v59  ;;  %v5029_v59 = vld [vmem:[#allocation16_spill] sm:$0xff]  ;;  %v993_v24 = vmul.f32 %v3142_v8, %v3025_v51  ;;  %v913_v15 = vsel %vm4787_vm14, %v3395_v19, %v3437_v27  ;;  %v917_v55 = vsel %vm4787_vm14, %v3437_v27, %v3395_v19  ;;  %v945_v16 = vsub.f32 %v915_v12, %v2196_v28 }
 0x232   :  { %5028 = vst [vmem:[#allocation14_spill] sm:$0xff] %v5027_v20  ;;  %v979_v36 = vsub.f32 %v5029_v59, %v5024_v38  ;;  %v1006_v31 = vsel %vm3347_vm8, %v966_v26, 0.0  ;;  %v1007_v37 = vsel %vm3506_vm4, %v967_v47, 0.0  ;;  %v986_v44 = vand.u32 2147483647, %v978_v56  ;;  %v933_v56 = vpop.permute.xlu1 %932  ;;  %vm3555_vm4 = vmand %vm3379_vm6, %vm201_vm5 }
 0x233   :  { %v923_v11 = vpop.permute.xlu2 %922  ;;  %v994_v22 = vmul.f32 %v3117_v9, %v2970_v13  ;;  %v1000_v42 = vmul.f32 %v992_v52, %v984_v10  ;;  %v995_v27 = vmul.f32 %v3142_v8, %v3133_v35  ;;  %v952_v26 = vand.u32 2147483647, %v944_v29  ;;  %1349 = vrot.lane.b32.xlu1 %v3310_v34, %s2132_s2 }
 0x234   :  { %v936_v23 = vsel %vm4787_vm14, %v923_v11, %v931_v41  ;;  %v940_v38 = vsel %vm4787_vm14, %v931_v41, %v923_v11  ;;  %v987_v19 = vand.u32 2147483647, %v979_v36  ;;  %v1001_v28 = vmul.f32 %v993_v24, %v985_v7 }
 0x235   :  { %v962_v25 = vmul.f32 %v2970_v13, %v936_v23  ;;  %v953_v11 = vand.u32 2147483647, %v945_v16  ;;  %v963_v13 = vmul.f32 %v3142_v8, %v940_v38  ;;  %v948_v52 = vsub.f32 %v913_v15, %v5025_v39 }
 0x236   :  { %v1022_v36 = vadd.f32 %v1014_v53, %v1006_v31  ;;  %v1023_v29 = vadd.f32 %v1015_v6, %v1007_v37  ;;  %v1002_v23 = vmul.f32 %v994_v22, %v986_v44  ;;  %v5030_v7 = vmov 0 }
 0x237   :  { %v5031_v7 = vsel %vm3555_vm4, 4294967295, %v5030_v7  ;;  %v1016_v8 = vsel %vm3368_vm2, %v1000_v42, 0.0  ;;  %v937_v53 = vsel %vm4787_vm14, %v3463_v0, %v933_v56  ;;  %v1003_v6 = vmul.f32 %v995_v27, %v987_v19 }
 0x238   :  { %5032 = vst [vmem:[#allocation13_spill] sm:$0xff] %v5031_v7  ;;  %v971_v39 = vmul.f32 %v963_v13, %v955_v45  ;;  %v1017_v15 = vsel %vm3379_vm6, %v1001_v28, 0.0  ;;  %v1030_v16 = vadd.f32 %v1023_v29, %v1022_v36  ;;  %v5033_v45 = vmov 0  ;;  %v3615_v29 = vld [vmem:[#allocation7 + $0x58] sm:$0xff] }
 0x239   :  { %v5034_v45 = vsel %vm3580_vm12, 4294967295, %v5033_v45  ;;  %v956_v37 = vand.u32 2147483647, %v948_v52  ;;  %v964_v44 = vmul.f32 %v3117_v9, %v937_v53  ;;  %v1018_v22 = vsel %vm3388_vm3, %v1002_v23, 0.0 }
 0x23a   :  { %5035 = vst [vmem:[#allocation12_spill] sm:$0xff] %v5034_v45  ;;  %v1011_v19 = vsel %vm3580_vm12, %v971_v39, 0.0  ;;  %v1019_v27 = vsel %vm3399_vm1, %v1003_v6, 0.0  ;;  %v1300_v30 = vadd.f32 %v3310_v34, %v3278_v62  ;;  %v1116_v6 = vpop.permute.xlu1 %1115  ;;  %v5068_v33 = vrot.slane %v3615_v29, 1 }
 0x23b   :  { %v929_v43 = vpop.permute.xlu2 %928  ;;  %v972_v9 = vmul.f32 %v964_v44, %v956_v37  ;;  %1527 = vrot.lane.b32.xlu1 %v3281_v49, %s2133_s28 }
 0x23c   :  { %v935_v47 = vsel %vm4787_vm14, %v3441_v54, %v929_v43  ;;  %v939_v12 = vsel %vm4787_vm14, %v929_v43, %v3441_v54  ;;  %v970_v54 = vmul.f32 %v962_v25, %v954_v21  ;;  %v1301_v36 = vadd.f32 %v1300_v30, %v3285_v63 }
 0x23d   :  { %v960_v41 = vmul.f32 %v3034_v2, %v935_v47  ;;  %v961_v10 = vmul.f32 %v3025_v51, %v939_v12  ;;  %v949_v51 = vsub.f32 %v917_v55, %v5029_v59  ;;  %v941_v59 = vsel %vm4787_vm14, %v933_v56, %v3463_v0  ;;  %vm3600_vm14 = vmand %vm3419_vm13, %vm201_vm5 }
 0x23e   :  { %v1010_v38 = vsel %vm3388_vm3, %v970_v54, 0.0  ;;  %v965_v43 = vmul.f32 %v3133_v35, %v941_v59  ;;  %v1027_v47 = vadd.f32 %v1019_v27, %v1011_v19  ;;  %v5036_v35 = vmov 0  ;;  %v1076_v54 = vld [vmem:[#allocation2 + $0x58] sm:$0xff] }
 0x23f   :  { %v968_v2 = vmul.f32 %v960_v41, %v952_v26  ;;  %v969_v24 = vmul.f32 %v961_v10, %v953_v11  ;;  %v957_v42 = vand.u32 2147483647, %v949_v51  ;;  %v1026_v26 = vadd.f32 %v1018_v22, %v1010_v38 }
 0x240   :  { %v5037_v35 = vsel %vm3600_vm14, 4294967295, %v5036_v35  ;;  %v1012_v13 = vsel %vm3410_vm0, %v972_v9, 0.0  ;;  %v1302_v23 = vadd.f32 %v1301_v36, %v3615_v29  ;;  %vm5041_vm5 = vcmp.lt.s32.totalorder %v2294_v61, 127 }
 0x241   :  { %v1008_v21 = vsel %vm3368_vm2, %v968_v2, 0.0  ;;  %v1009_v31 = vsel %vm3555_vm4, %v969_v24, 0.0  ;;  %v973_v56 = vmul.f32 %v965_v43, %v957_v42  ;;  %5038 = vst [vmem:[#allocation17_spill] sm:$0xff] %v5037_v35  ;;  %v5040_v42 = vld [vmem:[#allocation49_spill] sm:$0xff]  ;;  %vm5044_vm12 = vmmov %vm5041_vm5 }
 0x242   :  { %v1024_v55 = vadd.f32 %v1016_v8, %v1008_v21  ;;  %v1025_v25 = vadd.f32 %v1017_v15, %v1009_v31  ;;  %v1085_v8 = vld [vmem:[#allocation5 + $0x58] sm:$0xff]  ;;  %v1303_v2 = vadd.f32 %v1302_v23, %v3292_v4  ;;  %v3631_v21 = vpop.permute.xlu1 %1117  ;;  %v1165_v43 = vrot.slane %v5040_v42, 1  ;;  %vm5046_vm13 = vmmov %vm5044_vm12 }
 0x243   :  { %v1013_v10 = vsel %vm3600_vm14, %v973_v56, 0.0  ;;  %v1102_v24 = vsub.f32 %v1076_v54, %v1085_v8  ;;  %v5042_v56 = vld [vmem:[#allocation18_spill] sm:$0xff] }
 0x244   :  { %v1031_v0 = vadd.f32 %v1030_v16, %v1024_v55  ;;  %v1304_v51 = vadd.f32 %v1303_v2, %v3319_v5  ;;  %v5039_v16 = vld [vmem:[#allocation50_spill] sm:$0xff]  ;;  %vm5043_vm14 = vcmp.lt.s32.totalorder %v5042_v56, 7 }
 0x245   :  { %v3624_v39 = vmul.f32 %v1102_v24, %v3615_v29 }
 0x246   :  { %v1032_v28 = vadd.f32 %v1031_v0, %v1025_v25  ;;  %v1305_v53 = vadd.f32 %v1304_v51, %v3301_v58  ;;  %v1063_v25 = vpop.xlane.xlu0 %1062  ;;  %v4797_v0 = vrot.slane %v3281_v49, 1 }
 0x247   :  { %1537 = vrot.lane.b32.xlu1 %v3624_v39, %s2133_s28  ;;  %v1064_v19 = vrot.slane %v1063_v25, 4 }
 0x248   :  { %v1033_v12 = vadd.f32 %v1032_v28, %v1026_v26  ;;  %v1306_v15 = vadd.f32 %v1305_v53, %v3426_v48  ;;  %v4792_v26 = vrot.slane %v3315_v17, 1  ;;  %v4796_v28 = vrot.slane %v3624_v39, 1 }
 0x24a   :  { %v1034_v11 = vadd.f32 %v1033_v12, %v1027_v47  ;;  %1307 = vadd.xlane.f32.xlu0 %v1306_v15  ;;  %v3637_v31 = vpop.permute.xlu1 %1119  ;;  %v4791_v47 = vrot.slane %v3278_v62, 1  ;;  %v4795_v12 = vrot.slane %v3285_v63, 1 }
 0x24c   :  { %v1035_v41 = vadd.f32 %v1034_v11, %v1012_v13  ;;  %v1175_v11 = vsel %vm5043_vm14, %v4797_v0, %v1165_v43  ;;  %v4793_v13 = vrot.slane %v3310_v34, 1 }
 0x24d   :  { %v1227_v8 = vsub.f32 %v1175_v11, %v3281_v49 }
 0x24e   :  { %v1036_v52 = vadd.f32 %v1035_v41, %v1013_v10  ;;  %v4794_v41 = vrot.slane %v3615_v29, 1  ;;  %v1065_v10 = vadd.f32 %v1064_v19, %v1063_v25 }
 0x24f   :  { %1345 = vrot.lane.b32.xlu1 %v3292_v4, %s2132_s2 }
 0x250   :  { %1037 = vadd.xlane.f32.xlu2 %v1036_v52  ;;  %v1066_v53 = vrot.slane %v1065_v10, 2 }
 0x252   :  { %v3647_v59 = vpop.permute.xlu1 %1121 }
 0x257   :  { %1561 = vrot.lane.b32.xlu1 %v3615_v29, %s2133_s28 }
 0x25a   :  { %v1124_v55 = vpop.permute.xlu1 %1123 }
 0x25b   :  { %v1135_v9 = vsel %vm5041_vm5, %v1124_v55, %v1116_v6  ;;  %v1131_v52 = vsel %vm5044_vm12, %v1116_v6, %v1124_v55  ;;  %vm5045_vm5 = vmmov %vm5043_vm14 }
 0x25c   :  { %v1196_v30 = vsub.f32 %v1135_v9, %v3315_v17  ;;  %v1176_v36 = vsel %vm5045_vm5, %v4792_v26, %v4796_v28  ;;  %vm5047_vm14 = vmmov %vm5045_vm5  ;;  %v1195_v2 = vsub.f32 %v1131_v52, %v3281_v49  ;;  %v1130_v9 = vpop.permute.xlu0 %1129  ;;  %v1235_v52 = vand.u32 2147483647, %v1227_v8 }
 0x25d   :  { %v1191_v54 = vsel %vm5047_vm14, %v4791_v47, %v4795_v12  ;;  %vm5048_vm12 = vmmov %vm5045_vm5  ;;  %v1228_v51 = vsub.f32 %v1176_v36, %v3315_v17  ;;  %v1067_v28 = vadd.f32 %v1066_v53, %v1065_v10  ;;  %v5051_v53 = vld [vmem:[#allocation20_spill] sm:$0xff] }
 0x25e   :  { %1329 = vrot.lane.b32.xlu0 %v3324_v57, %s2132_s2  ;;  %v1192_v24 = vsel %vm5048_vm12, %v4793_v13, %v4794_v41  ;;  %v1204_v55 = vand.u32 2147483647, %v1196_v30  ;;  %v1243_v47 = vmul.f32 %v1191_v54, %v3278_v62  ;;  %v1203_v41 = vand.u32 2147483647, %v1195_v2  ;;  %vm5049_vm5 = vmmov %vm5046_vm13 }
 0x25f   :  { %1531 = vrot.lane.b32.xlu1 %v5039_v16, %s2133_s28  ;;  %v1244_v26 = vmul.f32 %v1192_v24, %v3310_v34  ;;  %v1236_v36 = vand.u32 2147483647, %v1228_v51  ;;  %vm5050_vm14 = vmmov %vm5049_vm5  ;;  %v1068_v51 = vrot.slane %v1067_v28, 1  ;;  %vm5052_vm12 = vcmp.lt.s32.totalorder %v5051_v53, 256 }
 0x261   :  { %v1252_v8 = vmul.f32 %v1244_v26, %v1236_v36  ;;  %s4634_s7 = spop %1974 }
 0x262   :  { %v1128_v37 = vpop.permute.xlu1 %1127  ;;  %s4636_s8 = spop %1976 }
 0x263   :  { %v1137_v54 = vsel %vm5050_vm14, %v1128_v37, %v3637_v31  ;;  %vm5054_vm14 = vcmp.lt.s32.totalorder %v5042_v56, 7 }
 0x264   :  { %v1146_v26 = vpop.permute.xlu0 %1145 }
 0x266   :  { %1343 = vrot.lane.b32.xlu0 %v3285_v63, %s2132_s2 }
 0x267   :  { %1747 = vrot.lane.b32.xlu1 %v3624_v39, %s2134_s29 }
 0x268   :  { %1125 = vrot.lane.b32.xlu2 %v3624_v39, %s2131_s0 }
 0x26a   :  { %v1140_v44 = vpop.permute.xlu1 %1139 }
 0x26e   :  { %1535 = vrot.lane.b32.xlu0 %v3315_v17, %s2133_s28 }
 0x26f   :  { %1347 = vrot.lane.b32.xlu1 %v3301_v58, %s2132_s2 }
 0x270   :  { %1143 = vrot.lane.b32.xlu2 %v3292_v4, %s2131_s0 }
 0x272   :  { %v3669_v22 = vpop.permute.xlu1 %1141 }
 0x276   :  { %1551 = vrot.lane.b32.xlu0 %v3278_v62, %s2133_s28 }
 0x277   :  { %1563 = vrot.lane.b32.xlu1 %v3319_v5, %s2133_s28 }
 0x278   :  { %1149 = vrot.lane.b32.xlu2 %v3615_v29, %s2131_s0 }
 0x27a   :  { %v1148_v38 = vpop.permute.xlu1 %1147 }
 0x27b   :  { %v1159_v23 = vsel %vm5046_vm13, %v1148_v38, %v1140_v44  ;;  %v1155_v25 = vsel %vm5046_vm13, %v1140_v44, %v1148_v38  ;;  %v1133_v44 = vsel %vm5049_vm5, %v3637_v31, %v1128_v37  ;;  %v1251_v38 = vmul.f32 %v1243_v47, %v1235_v52  ;;  %vm5053_vm13 = vmmov %vm5049_vm5 }
 0x27c   :  { %v1212_v19 = vmul.f32 %v1159_v23, %v3310_v34  ;;  %v1211_v12 = vmul.f32 %v1155_v25, %v3278_v62  ;;  %v1134_v47 = vsel %vm5053_vm13, %v3647_v59, %v1130_v9  ;;  %v1138_v31 = vsel %vm5049_vm5, %v1130_v9, %v3647_v59 }
 0x27d   :  { %v1200_v37 = vsub.f32 %v1137_v54, %v3324_v57  ;;  %v1169_v25 = vrot.slane %v3306_v32, 1  ;;  %v1069_v52 = vadd.f32 %v1068_v51, %v1067_v28  ;;  %v1202_v36 = vsub.f32 %v1138_v31, %v3429_v14 }
 0x27e   :  { %1353 = vrot.lane.b32.xlu0 %v3319_v5, %s2132_s2  ;;  %v1220_v0 = vmul.f32 %v1212_v19, %v1204_v55  ;;  %v1219_v2 = vmul.f32 %v1211_v12, %v1203_v41  ;;  %v1199_v55 = vsub.f32 %v1133_v44, %v5039_v16  ;;  %v1167_v41 = vrot.slane %v5039_v16, 1 }
 0x27f   :  { %1533 = vrot.lane.b32.xlu1 %v3306_v32, %s2133_s28  ;;  %v1170_v9 = vrot.slane %v3429_v14, 1  ;;  %v1168_v44 = vrot.slane %v3324_v57, 1  ;;  %v1185_v28 = vrot.slane %v3301_v58, 1  ;;  %v5055_v54 = vrot.slane %v3281_v49, 1 }
 0x280   :  { %v1173_v59 = vsel %vm5054_vm14, %v1165_v43, %v1167_v41  ;;  %v3788_v31 = vand.u32 2147483647, %v1202_v36  ;;  %v1184_v36 = vrot.slane %v3319_v5, 1 }
 0x282   :  { %v3683_v27 = vpop.permute.xlu1 %1153 }
 0x286   :  { %1737 = vrot.lane.b32.xlu0 %v3281_v49, %s2134_s29 }
 0x287   :  { %1749 = vrot.lane.b32.xlu1 %v3324_v57, %s2134_s29 }
 0x28a   :  { %v3727_v15 = vpop.permute.xlu1 %1317 }
 0x28e   :  { %1539 = vrot.lane.b32.xlu0 %v3324_v57, %s2133_s28 }
 0x28f   :  { %1765 = vrot.lane.b32.xlu1 %v3292_v4, %s2134_s29 }
 0x292   :  { %v3743_v10 = vpop.permute.xlu1 %1319 }
 0x296   :  { %1761 = vrot.lane.b32.xlu0 %v3278_v62, %s2134_s29 }
 0x297   :  { %1751 = vrot.lane.b32.xlu1 %v3429_v14, %s2134_s29 }
 0x29e   :  { %1355 = vrot.lane.b32.xlu0 %v3426_v48, %s2132_s2 }
 0x2a6   :  { %1763 = vrot.lane.b32.xlu0 %v3285_v63, %s2134_s29 }
 0x2ae   :  { %1541 = vrot.lane.b32.xlu0 %v3429_v14, %s2133_s28 }
 0x2b6   :  { %1557 = vrot.lane.b32.xlu0 %v3301_v58, %s2133_s28 }
 0x2be   :  { %1773 = vrot.lane.b32.xlu0 %v3319_v5, %s2134_s29 }
 0x2c3   :  { %v1038_v6 = vpop.xlane.xlu2 %1037 }
 0x2c4   :  { %v1039_v11 = vrot.slane %v1038_v6, 4 }
 0x2c6   :  { %v1040_v13 = vadd.f32 %v1039_v11, %v1038_v6  ;;  %v1260_v6 = vsel %vm5052_vm12, %v1220_v0, 0.0  ;;  %v1275_v0 = vadd.f32 %v1251_v38, %v1219_v2  ;;  %v1201_v11 = vsub.f32 %v1134_v47, %v3306_v32  ;;  %vm5056_vm12 = vmmov %vm5054_vm14  ;;  %1767 = vrot.lane.b32.xlu0 %v3301_v58, %s2134_s29 }
 0x2c7   :  { %v1276_v19 = vadd.f32 %v1260_v6, %v1252_v8  ;;  %v3767_v38 = vand.u32 2147483647, %v1200_v37  ;;  %v1177_v8 = vsel %vm5056_vm12, %v1169_v25, %v5055_v54  ;;  %v5057_v6 = vrot.slane %v3624_v39, 1  ;;  %vm5058_vm13 = vmmov %vm5056_vm12  ;;  %v1152_v54 = vpop.permute.xlu0 %1151 }
 0x2c8   :  { %v1041_v30 = vrot.slane %v1040_v13, 2  ;;  %v3779_v2 = vand.u32 2147483647, %v1201_v11  ;;  %vm5059_vm5 = vmmov %vm5056_vm12 }
 0x2c9   :  { %v3777_v43 = vadd.f32 %v1276_v19, %v1275_v0  ;;  %v1174_v47 = vsel %vm5058_vm13, %v5057_v6, %v1168_v44  ;;  %v1171_v37 = vsel %vm5059_vm5, %v1167_v41, %v1169_v25  ;;  %vm5061_vm14 = vmmov %vm5059_vm5  ;;  %v5062_v19 = vrot.slane %v3315_v17, 1 }
 0x2ca   :  { %v1042_v23 = vadd.f32 %v1041_v30, %v1040_v13  ;;  %v3764_v30 = vand.u32 2147483647, %v1199_v55  ;;  %v3786_v55 = vpop.permute.xlu1 %1321  ;;  %vm5063_vm12 = vmmov %vm5059_vm5  ;;  %vm5064_vm13 = vcmp.lt.s32.totalorder %v2294_v61, 127  ;;  %v1233_v41 = vsub.f32 %v1177_v8, %v3306_v32 }
 0x2cb   :  { %v1126_v24 = vpop.permute.xlu2 %1125  ;;  %v1178_v11 = vsel %vm5063_vm12, %v1170_v9, %v5062_v19  ;;  %vm5065_vm5 = vmmov %vm5064_vm13  ;;  %v5067_v19 = vrot.slane %v3278_v62, 1  ;;  %v1231_v45 = vsub.f32 %v1171_v37, %v5039_v16 }
 0x2cc   :  { %v1043_v13 = vrot.slane %v1042_v23, 1  ;;  %v1136_v25 = vsel %vm5065_vm5, %v1126_v24, %v3631_v21 }
 0x2cd   :  { %v1193_v35 = vsel %vm5063_vm12, %v1185_v28, %v5067_v19 }
 0x2ce   :  { %v1044_v12 = vadd.f32 %v1043_v13, %v1042_v23  ;;  %v1183_v23 = vrot.slane %v3292_v4, 1  ;;  %v1229_v13 = vsub.f32 %v1173_v59, %v5040_v42  ;;  %v1186_v59 = vrot.slane %v3426_v48, 1 }
 0x2d0   :  { %1978 = vpush %v1044_v12  ;;  %v5060_v12 = vrot.slane %v3285_v63, 1  ;;  %v1237_v18 = vand.u32 2147483647, %v1229_v13 }
 0x2d1   :  { %1980 = vpush %v1069_v52  ;;  %v1132_v52 = vsel %vm5064_vm13, %v3631_v21, %v1126_v24  ;;  %vm5069_vm13 = vmmov %vm5063_vm12  ;;  %v1158_v24 = vsel %vm5065_vm5, %v1146_v26, %v3683_v27 }
 0x2d2   :  { %v1189_v0 = vsel %vm5061_vm14, %v5060_v12, %v1183_v23  ;;  %vm5066_vm14 = vmmov %vm5063_vm12  ;;  %v1230_v12 = vsub.f32 %v1174_v47, %v3624_v39  ;;  %v1190_v8 = vsel %vm5069_vm13, %v5068_v33, %v1184_v36  ;;  %v1198_v33 = vsub.f32 %v1136_v25, %v3624_v39 }
 0x2d3   :  { %v1144_v51 = vpop.permute.xlu2 %1143  ;;  %v1187_v6 = vsel %vm5066_vm14, %v1183_v23, %v1185_v28  ;;  %v1245_v21 = vmul.f32 %v1189_v0, %v3285_v63  ;;  %v1197_v23 = vsub.f32 %v1132_v52, %v5040_v42  ;;  %vm5070_vm14 = vmmov %vm5063_vm12  ;;  %v1234_v28 = vsub.f32 %v1178_v11, %v3429_v14 }
 0x2d4   :  { %v1172_v47 = vsel %vm5070_vm14, %v1168_v44, %v1170_v9  ;;  %vm5071_vm12 = vmmov %vm5065_vm5  ;;  %v5073_v0 = vrot.slane %v3310_v34, 1  ;;  %v1247_v52 = vmul.f32 %v1187_v6, %v3292_v4  ;;  %v1238_v44 = vand.u32 2147483647, %v1230_v12 }
 0x2d5   :  { %v1162_v37 = vsel %vm5071_vm12, %v3683_v27, %v1146_v26  ;;  %vm5072_vm13 = vmmov %vm5065_vm5  ;;  %v1246_v11 = vmul.f32 %v1190_v8, %v3615_v29  ;;  %v1239_v27 = vand.u32 2147483647, %v1231_v45  ;;  %v1253_v26 = vmul.f32 %v1245_v21, %v1237_v18 }
 0x2d6   :  { %v1161_v13 = vsel %vm5072_vm13, %v1152_v54, %v1144_v51  ;;  %vm5074_vm5 = vmmov %vm5070_vm14  ;;  %v1232_v40 = vsub.f32 %v1172_v47, %v3324_v57  ;;  %v1205_v60 = vand.u32 2147483647, %v1197_v23  ;;  %v1206_v45 = vand.u32 2147483647, %v1198_v33 }
 0x2d7   :  { %v1194_v19 = vsel %vm5074_vm5, %v1186_v59, %v5073_v0  ;;  %vm5075_vm14 = vmmov %vm5071_vm12  ;;  %v1324_v0 = vpop.permute.xlu1 %1323  ;;  %v1216_v6 = vmul.f32 %v1161_v13, %v3319_v5  ;;  %v1254_v8 = vmul.f32 %v1246_v11, %v1238_v44  ;;  %v1241_v21 = vand.u32 2147483647, %v1233_v41  ;;  %v3867_v44 = vpop.xlane.xlu0 %1307 }
 0x2d8   :  { %v1157_v9 = vsel %vm5075_vm14, %v1144_v51, %v1152_v54  ;;  %vm5076_vm12 = vmmov %vm5074_vm5  ;;  %v1249_v23 = vmul.f32 %v1193_v35, %v3301_v58  ;;  %v1240_v20 = vand.u32 2147483647, %v1232_v40  ;;  %vm5078_vm14 = vcmp.lt.s32.totalorder %v5051_v53, 256 }
 0x2d9   :  { %v1188_v7 = vsel %vm5076_vm12, %v1184_v36, %v1186_v59  ;;  %vm5077_vm5 = vmmov %vm5072_vm13  ;;  %v1215_v18 = vmul.f32 %v1157_v9, %v3292_v4  ;;  %v1218_v59 = vmul.f32 %v1162_v37, %v3426_v48  ;;  %v1224_v33 = vmul.f32 %v1216_v6, %v3767_v38 }
 0x2da   :  { %v1248_v1 = vmul.f32 %v1188_v7, %v3319_v5  ;;  %v1242_v9 = vand.u32 2147483647, %v1234_v28  ;;  %vm5079_vm12 = vmmov %vm5078_vm14 }
 0x2db   :  { %v1150_v25 = vpop.permute.xlu2 %1149  ;;  %v1226_v5 = vmul.f32 %v1218_v59, %v3788_v31 }
 0x2dc   :  { %v1156_v51 = vsel %vm5072_vm13, %v3669_v22, %v1150_v25  ;;  %v1160_v54 = vsel %vm5077_vm5, %v1150_v25, %v3669_v22  ;;  %v1217_v22 = vmul.f32 %v1158_v24, %v3301_v58  ;;  %v1250_v25 = vmul.f32 %v1194_v19, %v3426_v48 }
 0x2dd   :  { %v1213_v12 = vmul.f32 %v1156_v51, %v3285_v63  ;;  %v1214_v36 = vmul.f32 %v1160_v54, %v3615_v29  ;;  %v1255_v51 = vmul.f32 %v1247_v52, %v1239_v27  ;;  %v1223_v54 = vmul.f32 %v1215_v18, %v3764_v30  ;;  %v5082_v27 = vld [vmem:[#allocation21_spill] sm:$0xff] }
 0x2de   :  { %v1256_v7 = vmul.f32 %v1248_v1, %v1240_v20  ;;  %v1264_v30 = vsel %vm5079_vm12, %v1224_v33, 0.0  ;;  %v1258_v24 = vmul.f32 %v1250_v25, %v1242_v9  ;;  %vm5080_vm13 = vcmp.lt.s32.totalorder %v2294_v61, 126 }
 0x2df   :  { %v1221_v47 = vmul.f32 %v1213_v12, %v1205_v60  ;;  %v1222_v13 = vmul.f32 %v1214_v36, %v1206_v45  ;;  %v1257_v60 = vmul.f32 %v1249_v23, %v1241_v21  ;;  %v1326_v38 = vpop.permute.xlu1 %1325  ;;  %vm5081_vm5 = vmmov %vm5080_vm13  ;;  %v1225_v52 = vmul.f32 %v1217_v22, %v3779_v2 }
 0x2e0   :  { %v1333_v28 = vsel %vm5080_vm13, %v3727_v15, %v1326_v38  ;;  %v1337_v19 = vsel %vm5081_vm5, %v1326_v38, %v3727_v15  ;;  %v1279_v11 = vadd.f32 %v1255_v51, %v1223_v54  ;;  %v1280_v20 = vadd.f32 %v1264_v30, %v1256_v7  ;;  %vm5085_vm13 = vmmov %vm5081_vm5 }
 0x2e1   :  { %v1262_v41 = vsel %vm5078_vm14, %v1222_v13, 0.0  ;;  %v1277_v37 = vadd.f32 %v1253_v26, %v1221_v47  ;;  %vm5083_vm14 = vcmp.lt.s32.totalorder %v5082_v27, 32  ;;  %v1266_v26 = vsel %vm5079_vm12, %v1226_v5, 0.0 }
 0x2e2   :  { %v1278_v35 = vadd.f32 %v1262_v41, %v1254_v8  ;;  %v1273_v1 = vsel %vm5083_vm14, %v1257_v60, 0.0  ;;  %vm5084_vm0 = vmmov %vm5083_vm14  ;;  %v3896_v8 = vpop.permute.xlu0 %1329  ;;  %v4821_v21 = vrot.slane %v3281_v49, 2  ;;  %v4816_v23 = vrot.slane %v3315_v17, 2 }
 0x2e3   :  { %v1284_v40 = vadd.f32 %v3777_v43, %v1277_v37  ;;  %v1274_v6 = vsel %vm5084_vm0, %v1258_v24, 0.0  ;;  %v1281_v45 = vadd.f32 %v1273_v1, %v1225_v52  ;;  %v4823_v47 = vrot.slane %v5040_v42, 2 }
 0x2e4   :  { %v1282_v12 = vadd.f32 %v1274_v6, %v1266_v26  ;;  %v4822_v13 = vrot.slane %v3624_v39, 2  ;;  %v4814_v22 = vrot.slane %v3278_v62, 2  ;;  %v4813_v33 = vrot.slane %v3310_v34, 2 }
 0x2e5   :  { %v1285_v31 = vadd.f32 %v1284_v40, %v1278_v35  ;;  %v4818_v9 = vrot.slane %v3285_v63, 2  ;;  %vm5086_vm0 = vcmp.lt.s32.totalorder %v5042_v56, 6  ;;  %v4817_v51 = vrot.slane %v3615_v29, 2 }
 0x2e6   :  { %vm5087_vm14 = vmmov %vm5086_vm0  ;;  %v1397_v40 = vsub.f32 %v1333_v28, %v3281_v49  ;;  %v1398_v7 = vsub.f32 %v1337_v19, %v3315_v17 }
 0x2e7   :  { %v1286_v43 = vadd.f32 %v1285_v31, %v1279_v11  ;;  %v1332_v15 = vpop.permute.xlu1 %1331  ;;  %v1378_v25 = vsel %vm5087_vm14, %v4816_v23, %v4822_v13  ;;  %vm5088_vm12 = vmmov %vm5086_vm0  ;;  %vm5094_vm14 = vcmp.lt.s32.totalorder %v2294_v61, 124 }
 0x2e8   :  { %v3890_v2 = vsel %vm5085_vm13, %v1324_v0, %v1332_v15  ;;  %v3894_v59 = vsel %vm5081_vm5, %v1332_v15, %v1324_v0  ;;  %v1377_v0 = vsel %vm5086_vm0, %v4821_v21, %v4823_v47  ;;  %v1430_v37 = vsub.f32 %v1378_v25, %v3315_v17  ;;  %vm5089_vm13 = vmmov %vm5086_vm0 }
 0x2e9   :  { %v1287_v18 = vadd.f32 %v1286_v43, %v1280_v20  ;;  %v1429_v41 = vsub.f32 %v1377_v0, %v3281_v49  ;;  %v1393_v60 = vsel %vm5088_vm12, %v4814_v22, %v4818_v9  ;;  %v1394_v5 = vsel %vm5089_vm13, %v4813_v33, %v4817_v51  ;;  %vm5090_vm0 = vmmov %vm5081_vm5 }
 0x2ea   :  { %v3920_v35 = vpop.permute.xlu0 %1343  ;;  %v1438_v30 = vand.u32 2147483647, %v1430_v37  ;;  %v1445_v24 = vmul.f32 %v1393_v60, %v3278_v62  ;;  %v1446_v52 = vmul.f32 %v1394_v5, %v3310_v34  ;;  %v1405_v11 = vand.u32 2147483647, %v1397_v40  ;;  %vm5095_vm12 = vmmov %vm5094_vm14 }
 0x2eb   :  { %v1288_v36 = vadd.f32 %v1287_v18, %v1281_v45  ;;  %v1437_v38 = vand.u32 2147483647, %v1429_v41  ;;  %v1406_v31 = vand.u32 2147483647, %v1398_v7  ;;  %vm5100_vm13 = vmmov %vm5095_vm12  ;;  %v1335_v25 = vsel %vm5090_vm0, %v3786_v55, %v3896_v8 }
 0x2ec   :  { %v1454_v1 = vmul.f32 %v1446_v52, %v1438_v30  ;;  %v1401_v33 = vsub.f32 %v1335_v25, %v5039_v16  ;;  %v1505_v22 = vsel %vm2505_vm11, %v3615_v29, 0.0  ;;  %v1372_v25 = vrot.slane %v3429_v14, 2 }
 0x2ed   :  { %v1289_v53 = vadd.f32 %v1288_v36, %v1282_v12  ;;  %v1453_v27 = vmul.f32 %v1445_v24, %v1437_v38 }
 0x2ee   :  { %v1470_v36 = vsel %vm2477_vm9, %v1454_v1, 0.0  ;;  %v1409_v21 = vand.u32 2147483647, %v1401_v33 }
 0x2ef   :  { %1290 = vadd.xlane.f32.xlu2 %v1289_v53  ;;  %v1342_v54 = vpop.permute.xlu1 %1341  ;;  %v1469_v18 = vsel %vm2471_vm7, %v1453_v27, 0.0 }
 0x2f2   :  { %v1536_v28 = vpop.permute.xlu0 %1535 }
 0x2f7   :  { %v1350_v20 = vpop.permute.xlu1 %1349 }
 0x2f8   :  { %v1357_v43 = vsel %vm5081_vm5, %v1342_v54, %v1350_v20  ;;  %v1361_v26 = vsel %vm5090_vm0, %v1350_v20, %v1342_v54  ;;  %vm5102_vm5 = vcmp.lt.s32.totalorder %v5042_v56, 6 }
 0x2f9   :  { %v1413_v19 = vmul.f32 %v1357_v43, %v3278_v62  ;;  %v1414_v6 = vmul.f32 %v1361_v26, %v3310_v34  ;;  %v4824_v26 = vrot.slane %v5039_v16, 2 }
 0x2fa   :  { %v3962_v38 = vpop.permute.xlu0 %1551 }
 0x2fb   :  { %v1421_v15 = vmul.f32 %v1413_v19, %v1405_v11  ;;  %v1422_v53 = vmul.f32 %v1414_v6, %v1406_v31  ;;  %v1309_v19 = vrot.slane %v3867_v44, 4  ;;  %v4819_v6 = vrot.slane %v3292_v4, 2 }
 0x2fd   :  { %v1461_v0 = vsel %vm2471_vm7, %v1421_v15, 0.0  ;;  %v1462_v41 = vsel %vm2785_vm15, %v1422_v53, 0.0  ;;  %vm5098_vm15 = vmmov %vm5095_vm12  ;;  %v4011_v15 = vld [vmem:[#allocation7 + $0x40] sm:$0xff] }
 0x2fe   :  { %v1477_v54 = vadd.f32 %v1469_v18, %v1461_v0  ;;  %v1478_v37 = vadd.f32 %v1470_v36, %v1462_v41  ;;  %v4815_v36 = vrot.slane %v3301_v58, 2  ;;  %v1502_v53 = vsel %vm2471_vm7, %v4011_v15, 0.0  ;;  %vm5104_vm7 = vmmov %vm5090_vm0 }
 0x2ff   :  { %v1528_v60 = vpop.permute.xlu1 %1527  ;;  %v1503_v0 = vsel %vm2477_vm9, %v3310_v34, 0.0  ;;  %v1339_v45 = vsel %vm5104_vm7, %v3896_v8, %v3786_v55  ;;  %vm5105_vm9 = vmmov %vm5102_vm5  ;;  %vm5119_vm7 = vnez %v5118_v50  ;;  %v5123_v50 = vrot.slane %v3624_v39, 2 }
 0x300   :  { %v3952_v5 = vadd.f32 %v1478_v37, %v1477_v54  ;;  %v3956_v40 = vsel %vm5094_vm14, %v1528_v60, %v1536_v28  ;;  %v3960_v7 = vsel %vm5095_vm12, %v1536_v28, %v1528_v60  ;;  %v4820_v28 = vrot.slane %v3306_v32, 2  ;;  %v4023_v54 = vld [vmem:[#allocation7 + $0x50] sm:$0xff]  ;;  %vm5107_vm14 = vmmov %vm5090_vm0 }
 0x301   :  { %v1510_v41 = vadd.f32 %v1503_v0, %v1502_v53  ;;  %v1504_v60 = vsel %vm2486_vm10, %v4023_v54, 0.0  ;;  %v1389_v53 = vsel %vm5105_vm9, %v4819_v6, %v4815_v36  ;;  %v1402_v55 = vsub.f32 %v1339_v45, %v3324_v57  ;;  %v5110_v45 = vld [vmem:[#allocation28_spill] sm:$0xff]  ;;  %s4638_s9 = spop %1978 }
 0x302   :  { %v1354_v24 = vpop.permute.xlu0 %1353  ;;  %v1373_v18 = vsel %vm5102_vm5, %v4824_v26, %v4820_v28  ;;  %vm5111_vm12 = vnez %v5110_v45  ;;  %v1403_v6 = vsub.f32 %v3890_v2, %v3306_v32  ;;  %v1404_v28 = vsub.f32 %v3894_v59, %v3429_v14  ;;  %v5113_v26 = vld [vmem:[#allocation29_spill] sm:$0xff]  ;;  %v5115_v59 = vld [vmem:[#allocation30_spill] sm:$0xff]  ;;  %s4640_s10 = spop %1980 }
 0x303   :  { %v1433_v12 = vsub.f32 %v1373_v18, %v5039_v16  ;;  %v1410_v3 = vand.u32 2147483647, %v1402_v55  ;;  %v4073_v2 = vld [vmem:[#allocation7 + $0x70] sm:$0xff]  ;;  %vm5116_vm5 = vnez %v5115_v59 }
 0x304   :  { %v1508_v33 = vsel %vm5116_vm5, %v4073_v2, 0.0 }
 0x307   :  { %1327 = vrot.lane.b32.xlu2 %v3624_v39, %s2132_s2  ;;  %v3966_v30 = vpop.permute.xlu1 %1537 }
 0x30a   :  { %v3972_v11 = vpop.permute.xlu0 %1737 }
 0x30b   :  { %5096 = vst [vmem:[#allocation15_spill] sm:$0xff] %v3972_v11  ;;  %v1509_v11 = vsel %vm5119_vm7, %v3426_v48, 0.0 }
 0x30f   :  { %1351 = vrot.lane.b32.xlu2 %v3615_v29, %s2132_s2  ;;  %v1346_v52 = vpop.permute.xlu1 %1345 }
 0x310   :  { %v1359_v8 = vsel %vm5107_vm14, %v1346_v52, %v1354_v24 }
 0x312   :  { %v1540_v27 = vpop.permute.xlu0 %1539 }
 0x317   :  { %1529 = vrot.lane.b32.xlu2 %v5040_v42, %s2133_s28  ;;  %v3974_v31 = vpop.permute.xlu1 %1561 }
 0x318   :  { %5097 = vst [vmem:[#allocation16_spill] sm:$0xff] %v3974_v31 }
 0x31a   :  { %v4047_v18 = vpop.permute.xlu0 %1761 }
 0x31b   :  { %5108 = vst [vmem:[#allocation18_spill] sm:$0xff] %v4047_v18 }
 0x31f   :  { %1559 = vrot.lane.b32.xlu2 %v3310_v34, %s2133_s28  ;;  %v1532_v1 = vpop.permute.xlu1 %1531 }
 0x320   :  { %v3980_v20 = vsel %vm5098_vm15, %v1532_v1, %v1540_v27  ;;  %v3984_v43 = vsel %vm5100_vm13, %v1540_v27, %v1532_v1  ;;  %v1511_v27 = vadd.f32 %v1510_v41, %v1504_v60  ;;  %v1310_v1 = vadd.f32 %v1309_v19, %v3867_v44  ;;  %v4055_v60 = vld [vmem:[#allocation7 + $0x60] sm:$0xff]  ;;  %vm5112_vm15 = vmmov %vm5090_vm0 }
 0x321   :  { %5099 = vst [vmem:[#allocation50_spill] sm:$0xff] %v3980_v20  ;;  %v1370_v19 = vrot.slane %v3324_v57, 2  ;;  %v1441_v41 = vand.u32 2147483647, %v1433_v12  ;;  %v1449_v36 = vmul.f32 %v4055_v60, %v1389_v53  ;;  %v1506_v23 = vsel %vm5111_vm12, %v4055_v60, 0.0  ;;  %v4068_v53 = vld [vmem:[#allocation7 + $0x68] sm:$0xff]  ;;  %vm5117_vm0 = vmmov %vm5105_vm9 }
 0x322   :  { %5101 = vst [vmem:[#allocation49_spill] sm:$0xff] %v3984_v43  ;;  %v1512_v51 = vadd.f32 %v1511_v27, %v1505_v22  ;;  %v1311_v9 = vrot.slane %v1310_v1, 2  ;;  %v1363_v12 = vsel %vm5112_vm15, %v1354_v24, %v1346_v52  ;;  %v1417_v13 = vmul.f32 %v4055_v60, %v1359_v8  ;;  %vm5122_vm9 = vmmov %vm5117_vm0 }
 0x323   :  { %vm5114_vm13 = vnez %v5113_v26  ;;  %v1374_v24 = vsel %vm5117_vm0, %v1370_v19, %v1372_v25  ;;  %v4080_v52 = vmul.f32 %v1449_v36, %v1441_v41  ;;  %v1386_v8 = vrot.slane %v4068_v53, 2  ;;  %vm5124_vm14 = vmmov %vm5117_vm0 }
 0x324   :  { %v1507_v22 = vsel %vm5114_vm13, %v4068_v53, 0.0  ;;  %v1513_v27 = vadd.f32 %v1512_v51, %v1506_v23  ;;  %v1418_v23 = vmul.f32 %v4068_v53, %v1363_v12  ;;  %v1312_v55 = vadd.f32 %v1311_v9, %v1310_v1  ;;  %vm5125_vm15 = vmmov %vm5117_vm0 }
 0x325   :  { %v4088_v43 = vmul.f32 %v1417_v13, %v1409_v21  ;;  %v1434_v31 = vsub.f32 %v1374_v24, %v3324_v57  ;;  %v4091_v36 = vand.u32 2147483647, %v1403_v6  ;;  %v4105_v21 = vand.u32 2147483647, %v1404_v28  ;;  %vm5130_vm7 = vmmov %vm5117_vm0 }
 0x326   :  { %v1514_v18 = vadd.f32 %v1513_v27, %v1507_v22  ;;  %v5120_v22 = vrot.slane %v5039_v16, 2  ;;  %v1390_v1 = vsel %vm5125_vm15, %v1386_v8, %v1388_v46  ;;  %v5126_v24 = vrot.slane %v3281_v49, 2 }
 0x327   :  { %1553 = vrot.lane.b32.xlu2 %v3285_v63, %s2133_s28  ;;  %v4049_v44 = vpop.permute.xlu1 %1747  ;;  %v1450_v13 = vmul.f32 %v4068_v53, %v1390_v1  ;;  %v1608_v26 = vsub.f32 %v3960_v7, %v3315_v17 }
 0x328   :  { %5109 = vst [vmem:[#allocation20_spill] sm:$0xff] %v4049_v44  ;;  %v1515_v20 = vadd.f32 %v1514_v18, %v1508_v33  ;;  %v4112_v18 = vmul.f32 %v1418_v23, %v1410_v3  ;;  %v1313_v33 = vrot.slane %v1312_v55, 1  ;;  %v1442_v23 = vand.u32 2147483647, %v1434_v31 }
 0x32a   :  { %v1516_v6 = vadd.f32 %v1515_v20, %v1509_v11  ;;  %v1465_v11 = vsel %vm5111_vm12, %v4088_v43, 0.0  ;;  %v5158_v43 = vld [vmem:[#allocation38_spill] sm:$0xff] }
 0x32c   :  { %1517 = vadd.xlane.f32.xlu0 %v1516_v6 }
 0x32f   :  { %1745 = vrot.lane.b32.xlu2 %v3315_v17, %s2134_s29  ;;  %v1348_v12 = vpop.permute.xlu1 %1347 }
 0x337   :  { %1739 = vrot.lane.b32.xlu2 %v5040_v42, %s2134_s29 }
 0x33f   :  { %1769 = vrot.lane.b32.xlu2 %v3310_v34, %s2134_s29 }
 0x347   :  { %1555 = vrot.lane.b32.xlu2 %v3292_v4, %s2133_s28 }
 0x34f   :  { %1771 = vrot.lane.b32.xlu2 %v3615_v29, %s2134_s29 }
 0x357   :  { %1741 = vrot.lane.b32.xlu2 %v5039_v16, %s2134_s29 }
 0x35f   :  { %1565 = vrot.lane.b32.xlu2 %v3426_v48, %s2133_s28  ;;  %v1376_v48 = vsel %vm5124_vm14, %v5123_v50, %v1370_v19  ;;  %v5127_v19 = vrot.slane %v3306_v32, 2  ;;  %vm5133_vm14 = vcmp.lt.s32.totalorder %v2294_v61, 126  ;;  %s1955_s28 = sshll.u32 %s4660_s3, 4  ;;  %s1956_s28 = int_to_ptr.hbm [resolvable:$true] %s1955_s28 }
 0x360   :  { %v1432_v3 = vsub.f32 %v1376_v48, %v3624_v39  ;;  %vm5134_vm15 = vmmov %vm5133_vm14 }
 0x361   :  { %v1379_v28 = vsel %vm5117_vm0, %v5127_v19, %v5126_v24  ;;  %v5131_v24 = vrot.slane %v3615_v29, 2 }
 0x362   :  { %v1291_v47 = vpop.xlane.xlu2 %1290  ;;  %v1435_v48 = vsub.f32 %v1379_v28, %v3306_v32  ;;  %v4836_v28 = vrot.slane %v3281_v49, 4 }
 0x363   :  { %v1292_v44 = vrot.slane %v1291_v47, 4 }
 0x365   :  { %v1293_v51 = vadd.f32 %v1292_v44, %v1291_v47  ;;  %v5121_v47 = vrot.slane %v5040_v42, 2  ;;  %v1356_v44 = vpop.permute.xlu0 %1355 }
 0x366   :  { %v1364_v31 = vsel %vm5134_vm15, %v1356_v44, %v1348_v12  ;;  %vm5142_vm15 = vmmov %vm5117_vm0 }
 0x367   :  { %v1294_v41 = vrot.slane %v1293_v51, 2  ;;  %1743 = vrot.lane.b32.xlu2 %v3306_v32, %s2134_s29  ;;  %v1375_v9 = vsel %vm5122_vm9, %v5121_v47, %v5120_v22  ;;  %v5129_v47 = vrot.slane %v3285_v63, 2  ;;  %vm5132_vm9 = vmmov %vm5117_vm0 }
 0x368   :  { %v1431_v22 = vsub.f32 %v1375_v9, %v5040_v42  ;;  %v1392_v19 = vsel %vm5132_vm9, %v5131_v24, %v1386_v8  ;;  %v1360_v9 = vsel %vm5133_vm14, %v1348_v12, %v1356_v44  ;;  %v1440_v24 = vand.u32 2147483647, %v1432_v3 }
 0x369   :  { %v1295_v27 = vadd.f32 %v1294_v41, %v1293_v51  ;;  %v5128_v41 = vrot.slane %v3292_v4, 2  ;;  %v5135_v4 = vrot.slane %v3315_v17, 2  ;;  %v1448_v12 = vmul.f32 %v1392_v19, %v3615_v29 }
 0x36a   :  { %v1328_v20 = vpop.permute.xlu2 %1327  ;;  %v1419_v19 = vmul.f32 %v4073_v2, %v1360_v9 }
 0x36b   :  { %v1296_v51 = vrot.slane %v1295_v27, 1  ;;  %v1391_v50 = vsel %vm5130_vm7, %v5129_v47, %v5128_v41  ;;  %v1380_v63 = vsel %vm5117_vm0, %v1372_v25, %v5135_v4  ;;  %vm5136_vm7 = vmmov %vm5133_vm14  ;;  %v1314_v41 = vadd.f32 %v1313_v33, %v1312_v55  ;;  %v4153_v25 = vld [vmem:[#allocation7 + $0x78] sm:$0xff] }
 0x36c   :  { %v1334_v6 = vsel %vm5136_vm7, %v3743_v10, %v1328_v20  ;;  %vm5137_vm9 = vmmov %vm5136_vm7  ;;  %v1439_v47 = vand.u32 2147483647, %v1431_v22  ;;  %v1447_v44 = vmul.f32 %v4023_v54, %v1391_v50  ;;  %v1577_v4 = vrot.slane %v5040_v42, 4 }
 0x36d   :  { %v1338_v8 = vsel %vm5137_vm9, %v1328_v20, %v3743_v10  ;;  %v1297_v1 = vadd.f32 %v1296_v51, %v1295_v27  ;;  %v1436_v10 = vsub.f32 %v1380_v63, %v3429_v14  ;;  %v1458_v27 = vmul.f32 %v1450_v13, %v1442_v23  ;;  %vm5140_vm14 = vmmov %vm5117_vm0 }
 0x36e   :  { %v1399_v55 = vsub.f32 %v1334_v6, %v5040_v42  ;;  %v1400_v33 = vsub.f32 %v1338_v8, %v3624_v39  ;;  %v5138_v20 = vrot.slane %v3278_v62, 2  ;;  %v5139_v22 = vrot.slane %v3301_v58, 2  ;;  %vm5143_vm0 = vmmov %vm5136_vm7 }
 0x36f   :  { %1982 = vpush %v1297_v1  ;;  %1775 = vrot.lane.b32.xlu2 %v4153_v25, %s2134_s29  ;;  %v5141_v51 = vrot.slane %v3310_v34, 2  ;;  %v1420_v13 = vmul.f32 %v4153_v25, %v1364_v31  ;;  %v4835_v23 = vrot.slane %v3315_v17, 4  ;;  %v1578_v63 = vrot.slane %v3624_v39, 4  ;;  %vm5144_vm7 = vmmov %vm5143_vm0 }
 0x370   :  { %1984 = vpush %v1314_v41  ;;  %v1395_v3 = vsel %vm5140_vm14, %v5139_v22, %v5138_v20  ;;  %v1455_v6 = vmul.f32 %v1447_v44, %v1439_v47  ;;  %v1456_v62 = vmul.f32 %v1448_v12, %v1440_v24  ;;  %v1591_v58 = vrot.slane %v4011_v15, 4  ;;  %v4198_v44 = vld [vmem:[#allocation7 + $0x48] sm:$0xff] }
 0x371   :  { %v1396_v50 = vsel %vm5142_vm15, %v1388_v46, %v5141_v51  ;;  %v1443_v1 = vand.u32 2147483647, %v1435_v48  ;;  %vm5145_vm9 = vcmp.lt.s32.totalorder %v5042_v56, 4  ;;  %v1593_v31 = vrot.slane %v4023_v54, 4 }
 0x372   :  { %v1352_v8 = vpop.permute.xlu2 %1351  ;;  %v1587_v9 = vsel %vm5145_vm9, %v4836_v28, %v1577_v4  ;;  %v1407_v41 = vand.u32 2147483647, %v1399_v55  ;;  %v1408_v47 = vand.u32 2147483647, %v1400_v33  ;;  %vm5146_vm14 = vmmov %vm5145_vm9  ;;  %v1592_v12 = vrot.slane %v4198_v44, 4 }
 0x373   :  { %v1358_v34 = vsel %vm5143_vm0, %v3920_v35, %v1352_v8  ;;  %v1362_v46 = vsel %vm5144_vm7, %v1352_v8, %v3920_v35  ;;  %v1588_v35 = vsel %vm5146_vm14, %v4835_v23, %v1578_v63  ;;  %v1594_v20 = vrot.slane %v3615_v29, 4  ;;  %vm5149_vm0 = vmmov %vm5145_vm9 }
 0x374   :  { %v1415_v48 = vmul.f32 %v4023_v54, %v1358_v34  ;;  %v1416_v24 = vmul.f32 %v1362_v46, %v3615_v29  ;;  %v1451_v55 = vmul.f32 %v4073_v2, %v1395_v3  ;;  %v1471_v33 = vsel %vm2486_vm10, %v1455_v6, 0.0  ;;  %v5147_v34 = vld [vmem:[#allocation35_spill] sm:$0xff]  ;;  %vm5152_vm9 = vmmov %vm5149_vm0 }
 0x375   :  { %v1639_v8 = vsub.f32 %v1587_v9, %v3281_v49  ;;  %vm5148_vm15 = vnez %v5147_v34  ;;  %v1603_v23 = vsel %vm5149_vm0, %v1591_v58, %v1593_v31  ;;  %v1444_v28 = vand.u32 2147483647, %v1436_v10  ;;  %vm5163_vm14 = vmmov %vm5149_vm0 }
 0x376   :  { %v1423_v22 = vmul.f32 %v1415_v48, %v1407_v41  ;;  %v1424_v51 = vmul.f32 %v1416_v24, %v1408_v47  ;;  %v1466_v46 = vsel %vm5148_vm15, %v4112_v18, 0.0  ;;  %v1452_v3 = vmul.f32 %v4153_v25, %v1396_v50  ;;  %v5150_v41 = vld [vmem:[#allocation34_spill] sm:$0xff] }
 0x377   :  { %v1472_v6 = vsel %vm2505_vm11, %v1456_v62, 0.0  ;;  %vm5151_vm7 = vnez %v5150_v41  ;;  %v1640_v18 = vsub.f32 %v1588_v35, %v3315_v17  ;;  %v1427_v48 = vmul.f32 %v1419_v19, %v4091_v36 }
 0x378   :  { %v1463_v9 = vsel %vm2486_vm10, %v1423_v22, 0.0  ;;  %v1464_v47 = vsel %vm5151_vm7, %v1424_v51, 0.0  ;;  %v1604_v10 = vsel %vm5152_vm9, %v1592_v12, %v1594_v20  ;;  %v1474_v0 = vsel %vm5114_vm13, %v1458_v27, 0.0  ;;  %vm5166_vm7 = vmmov %vm5152_vm9 }
 0x379   :  { %v1479_v24 = vadd.f32 %v1471_v33, %v1463_v9  ;;  %v1428_v50 = vmul.f32 %v1420_v13, %v4105_v21  ;;  %v1647_v62 = vand.u32 2147483647, %v1639_v8  ;;  %v1655_v22 = vmul.f32 %v4011_v15, %v1603_v23  ;;  %v5156_v8 = vld [vmem:[#allocation36_spill] sm:$0xff] }
 0x37a   :  { %v1530_v37 = vpop.permute.xlu2 %1529  ;;  %v1459_v51 = vmul.f32 %v1451_v55, %v1443_v1  ;;  %v1480_v34 = vadd.f32 %v1472_v6, %v1464_v47  ;;  %v1460_v36 = vmul.f32 %v1452_v3, %v1444_v28  ;;  %v1579_v19 = vrot.slane %v5039_v16, 4  ;;  %v5154_v55 = vld [vmem:[#allocation37_spill] sm:$0xff] }
 0x37b   :  { %v1486_v35 = vadd.f32 %v3952_v5, %v1479_v24  ;;  %v1607_v33 = vsub.f32 %v3956_v40, %v3281_v49  ;;  %v1648_v27 = vand.u32 2147483647, %v1640_v18  ;;  %v1656_v21 = vmul.f32 %v4198_v44, %v1604_v10  ;;  %v5161_v24 = vld [vmem:[#allocation32_spill] sm:$0xff] }
 0x37c   :  { %v5153_v5 = vsel %vm5111_vm12, %v4080_v52, 0.0  ;;  %v1467_v13 = vsel %vm5116_vm5, %v1427_v48, 0.0  ;;  %v1482_v23 = vadd.f32 %v1474_v0, %v1466_v46  ;;  %v1663_v1 = vmul.f32 %v1655_v22, %v1647_v62  ;;  %vm5160_vm12 = vmmov %vm5149_vm0 }
 0x37d   :  { %v1481_v28 = vadd.f32 %v5153_v5, %v1465_v11  ;;  %v1487_v40 = vadd.f32 %v1486_v35, %v1480_v34  ;;  %vm5155_vm10 = vnez %v5154_v55  ;;  %vm5157_vm11 = vnez %v5156_v8 }
 0x37e   :  { %v1468_v7 = vsel %vm5155_vm10, %v1428_v50, 0.0  ;;  %v1475_v3 = vsel %vm5157_vm11, %v1459_v51, 0.0  ;;  %v1580_v6 = vrot.slane %v3324_v57, 4  ;;  %vm5159_vm13 = vnez %v5158_v43  ;;  %vm5169_vm10 = vmmov %vm5166_vm7 }
 0x37f   :  { %v1476_v45 = vsel %vm5159_vm13, %v1460_v36, 0.0  ;;  %v1488_v9 = vadd.f32 %v1487_v40, %v1481_v28  ;;  %v1585_v59 = vsel %vm5160_vm12, %v1577_v4, %v1579_v19  ;;  %v1595_v52 = vrot.slane %v4055_v60, 4  ;;  %v5167_v36 = vld [vmem:[#allocation19_spill] sm:$0xff] }
 0x380   :  { %v1664_v11 = vmul.f32 %v1656_v21, %v1648_v27  ;;  %v1596_v46 = vrot.slane %v4068_v53, 4  ;;  %v1615_v41 = vand.u32 2147483647, %v1607_v33  ;;  %v1616_v47 = vand.u32 2147483647, %v1608_v26 }
 0x381   :  { %v1483_v18 = vadd.f32 %v1475_v3, %v1467_v13  ;;  %v1489_v48 = vadd.f32 %v1488_v9, %v1482_v23  ;;  %vm5162_vm5 = vnez %v5161_v24  ;;  %v1484_v50 = vadd.f32 %v1476_v45, %v1468_v7  ;;  %v5172_v7 = vld [vmem:[#allocation43_spill] sm:$0xff] }
 0x382   :  { %v1679_v10 = vsel %vm5162_vm5, %v1663_v1, 0.0  ;;  %v1560_v0 = vpop.permute.xlu2 %1559  ;;  %v1586_v4 = vsel %vm5163_vm14, %v1578_v63, %v1580_v6  ;;  %v1641_v62 = vsub.f32 %v1585_v59, %v5040_v42  ;;  %vm5164_vm15 = vcmp.lt.s32.totalorder %v2294_v61, 124 }
 0x383   :  { %v1567_v22 = vsel %vm5164_vm15, %v3962_v38, %v1560_v0  ;;  %vm5165_vm0 = vmmov %vm5164_vm15  ;;  %v1490_v34 = vadd.f32 %v1489_v48, %v1483_v18  ;;  %v1601_v35 = vsel %vm5166_vm7, %v1593_v31, %v1595_v52  ;;  %vm5168_vm9 = vnez %v5167_v36 }
 0x384   :  { %v1571_v51 = vsel %vm5165_vm0, %v1560_v0, %v3962_v38  ;;  %v1680_v63 = vsel %vm5168_vm9, %v1664_v11, 0.0  ;;  %v1623_v33 = vmul.f32 %v4011_v15, %v1567_v22  ;;  %v1602_v38 = vsel %vm5169_vm10, %v1594_v20, %v1596_v46  ;;  %vm5170_vm11 = vmmov %vm5165_vm0  ;;  %v5174_v11 = vld [vmem:[#allocation16_spill] sm:$0xff] }
 0x385   :  { %v1624_v26 = vmul.f32 %v4198_v44, %v1571_v51  ;;  %v1544_v27 = vsel %vm5170_vm11, %v1530_v37, %v3966_v30  ;;  %vm5171_vm13 = vmmov %vm5165_vm0  ;;  %v1491_v21 = vadd.f32 %v1490_v34, %v1484_v50  ;;  %v1642_v5 = vsub.f32 %v1586_v4, %v3624_v39  ;;  %v5177_v4 = vld [vmem:[#allocation22_spill] sm:$0xff] }
 0x386   :  { %v1548_v31 = vsel %vm5171_vm13, %v3966_v30, %v1530_v37  ;;  %v1631_v28 = vmul.f32 %v1623_v33, %v1615_v41  ;;  %v1649_v23 = vand.u32 2147483647, %v1641_v62  ;;  %v1657_v40 = vmul.f32 %v4023_v54, %v1601_v35  ;;  %vm5175_vm14 = vmmov %vm5165_vm0  ;;  %v5179_v35 = vld [vmem:[#allocation23_spill] sm:$0xff]  ;;  %v5181_v33 = vld [vmem:[#allocation44_spill] sm:$0xff] }
 0x387   :  { %v1632_v13 = vmul.f32 %v1624_v26, %v1616_v47  ;;  %1492 = vadd.xlane.f32.xlu1 %v1491_v21  ;;  %v1609_v1 = vsub.f32 %v1544_v27, %v5040_v42  ;;  %v1610_v20 = vsub.f32 %v1548_v31, %v3624_v39  ;;  %vm5173_vm12 = vnez %v5172_v7  ;;  %vm5176_vm15 = vmmov %vm5165_vm0 }
 0x388   :  { %v1671_v55 = vsel %vm5162_vm5, %v1631_v28, 0.0  ;;  %v1650_v3 = vand.u32 2147483647, %v1642_v5  ;;  %v1658_v43 = vmul.f32 %v1602_v38, %v3615_v29  ;;  %v1665_v45 = vmul.f32 %v1657_v40, %v1649_v23  ;;  %v4330_v28 = vpop.permute.xlu0 %1763 }
 0x389   :  { %v1672_v8 = vsel %vm5173_vm12, %v1632_v13, 0.0  ;;  %v1687_v30 = vadd.f32 %v1679_v10, %v1671_v55  ;;  %v1617_v18 = vand.u32 2147483647, %v1609_v1  ;;  %v1618_v48 = vand.u32 2147483647, %v1610_v20  ;;  %v1564_v13 = vpop.permute.xlu1 %1563 }
 0x38a   :  { %v1688_v37 = vadd.f32 %v1680_v63, %v1672_v8  ;;  %v1554_v9 = vpop.permute.xlu2 %1553  ;;  %v1666_v50 = vmul.f32 %v1658_v43, %v1650_v3  ;;  %vm5178_vm0 = vnez %v5177_v4  ;;  %vm5180_vm7 = vnez %v5179_v35 }
 0x38b   :  { %v1568_v41 = vsel %vm5175_vm14, %v1554_v9, %v5174_v11  ;;  %v1572_v47 = vsel %vm5176_vm15, %v5174_v11, %v1554_v9  ;;  %v1681_v62 = vsel %vm5178_vm0, %v1665_v45, 0.0  ;;  %vm5182_vm10 = vnez %v5181_v33  ;;  %v4371_v11 = vld [vmem:[#allocation7 + $0x58] sm:$0xff] }
 0x38c   :  { %v1695_v59 = vadd.f32 %v1688_v37, %v1687_v30  ;;  %v1625_v0 = vmul.f32 %v4023_v54, %v1568_v41  ;;  %v1626_v10 = vmul.f32 %v1572_v47, %v3615_v29  ;;  %v1682_v63 = vsel %vm5180_vm7, %v1666_v50, 0.0  ;;  %v5187_v47 = vld [vmem:[#allocation50_spill] sm:$0xff]  ;;  %v5188_v50 = vld [vmem:[#allocation49_spill] sm:$0xff] }
 0x38d   :  { %v1581_v23 = vrot.slane %v3306_v32, 4  ;;  %v1582_v40 = vrot.slane %v3429_v14, 4  ;;  %vm5183_vm11 = vcmp.lt.s32.totalorder %v5042_v56, 4  ;;  %v1597_v20 = vrot.slane %v4073_v2, 4 }
 0x38e   :  { %v1633_v22 = vmul.f32 %v1625_v0, %v1617_v18  ;;  %v1634_v51 = vmul.f32 %v1626_v10, %v1618_v48  ;;  %v1712_v55 = vsel %vm5162_vm5, %v4011_v15, 0.0  ;;  %v1713_v7 = vsel %vm5168_vm9, %v4198_v44, 0.0  ;;  %vm5184_vm13 = vmmov %vm5183_vm11 }
 0x38f   :  { %v1583_v1 = vsel %vm5183_vm11, %v1579_v19, %v1581_v23  ;;  %v1584_v8 = vsel %vm5184_vm13, %v1580_v6, %v1582_v40  ;;  %v1598_v30 = vrot.slane %v4153_v25, 4  ;;  %v1720_v3 = vadd.f32 %v1713_v7, %v1712_v55  ;;  %vm5185_vm5 = vmmov %vm5183_vm11 }
 0x390   :  { %v1673_v34 = vsel %vm5178_vm0, %v1633_v22, 0.0  ;;  %v1674_v26 = vsel %vm5182_vm10, %v1634_v51, 0.0  ;;  %v1643_v37 = vsub.f32 %v1583_v1, %v5039_v16  ;;  %v1599_v24 = vsel %vm5185_vm5, %v1595_v52, %v1597_v20  ;;  %v1542_v45 = vpop.permute.xlu0 %1541  ;;  %vm5186_vm9 = vmmov %vm5185_vm5 }
 0x391   :  { %v1689_v38 = vadd.f32 %v1681_v62, %v1673_v34  ;;  %v1690_v29 = vadd.f32 %v1682_v63, %v1674_v26  ;;  %v1817_v36 = vsub.f32 %v5040_v42, %v3281_v49  ;;  %v1644_v43 = vsub.f32 %v1584_v8, %v3324_v57  ;;  %v1534_v9 = vpop.permute.xlu1 %1533  ;;  %v5189_v62 = vld [vmem:[#allocation39_spill] sm:$0xff] }
 0x392   :  { %v4324_v27 = vpop.permute.xlu2 %1745  ;;  %v1818_v6 = vsub.f32 %v3624_v39, %v3315_v17  ;;  %v1715_v52 = vsel %vm5180_vm7, %v4371_v11, 0.0  ;;  %v1600_v41 = vsel %vm5186_vm9, %v1596_v46, %v1598_v30  ;;  %v1611_v18 = vsub.f32 %v5187_v47, %v5039_v16 }
 0x393   :  { %v1696_v31 = vadd.f32 %v1695_v59, %v1689_v38  ;;  %v1714_v59 = vsel %vm5178_vm0, %v4023_v54, 0.0  ;;  %v1651_v48 = vand.u32 2147483647, %v1643_v37  ;;  %v1659_v0 = vmul.f32 %v4055_v60, %v1599_v24  ;;  %v5191_v38 = vld [vmem:[#allocation40_spill] sm:$0xff]  ;;  %vm5193_vm0 = vmmov %vm5176_vm15  ;;  %v5194_v24 = vld [vmem:[#allocation41_spill] sm:$0xff] }
 0x394   :  { %v1721_v10 = vadd.f32 %v1720_v3, %v1714_v59  ;;  %v1612_v4 = vsub.f32 %v5188_v50, %v3324_v57  ;;  %vm5190_vm12 = vnez %v5189_v62  ;;  %v1825_v51 = vand.u32 2147483647, %v1817_v36  ;;  %vm5200_vm13 = vmmov %vm5193_vm0 }
 0x395   :  { %v4326_v21 = vadd.f32 %v1696_v31, %v1690_v29  ;;  %v1716_v22 = vsel %vm5190_vm12, %v4055_v60, 0.0  ;;  %v1652_v35 = vand.u32 2147483647, %v1644_v43  ;;  %v1660_v63 = vmul.f32 %v4068_v53, %v1600_v41  ;;  %vm5201_vm5 = vmmov %vm5193_vm0 }
 0x396   :  { %v1722_v34 = vadd.f32 %v1721_v10, %v1715_v52  ;;  %v1826_v46 = vand.u32 2147483647, %v1818_v6  ;;  %v1833_v33 = vmul.f32 %v4023_v54, %v4011_v15  ;;  %v1834_v26 = vmul.f32 %v4371_v11, %v4198_v44 }
 0x397   :  { %vm5192_vm14 = vnez %v5191_v38  ;;  %v1619_v29 = vand.u32 2147483647, %v1611_v18  ;;  %v1667_v1 = vmul.f32 %v1659_v0, %v1651_v48  ;;  %v1620_v8 = vand.u32 2147483647, %v1612_v4  ;;  %v5196_v18 = vld [vmem:[#allocation42_spill] sm:$0xff]  ;;  %v5198_v4 = vld [vmem:[#allocation15_spill] sm:$0xff] }
 0x398   :  { %v1717_v31 = vsel %vm5192_vm14, %v4068_v53, 0.0  ;;  %v1723_v7 = vadd.f32 %v1722_v34, %v1716_v22  ;;  %vm5195_vm7 = vnez %v5194_v24  ;;  %v1668_v52 = vmul.f32 %v1660_v63, %v1652_v35  ;;  %v4426_v63 = vpop.permute.xlu0 %1557 }
 0x399   :  { %v1718_v36 = vsel %vm5195_vm7, %v4073_v2, 0.0  ;;  %v4407_v41 = vmul.f32 %v1833_v33, %v1825_v51  ;;  %v4409_v47 = vmul.f32 %v1834_v26, %v1826_v46  ;;  %vm5197_vm10 = vnez %v5196_v18  ;;  %v4428_v46 = vpop.permute.xlu1 %1749  ;;  %v5202_v26 = vld [vmem:[#allocation45_spill] sm:$0xff] }
 0x39a   :  { %v4328_v5 = vpop.permute.xlu2 %1739  ;;  %v1724_v59 = vadd.f32 %v1723_v7, %v1717_v31  ;;  %v1719_v48 = vsel %vm5197_vm10, %v4153_v25, 0.0  ;;  %vm5199_vm11 = vcmp.lt.s32.totalorder %v2294_v61, 120  ;;  %v1546_v51 = vsel %vm5200_vm13, %v1534_v9, %v1542_v45 }
 0x39b   :  { %v1753_v22 = vsel %vm5199_vm11, %v5198_v4, %v4324_v27  ;;  %v1550_v34 = vsel %vm5201_vm5, %v1542_v45, %v1534_v9  ;;  %v1819_v35 = vsub.f32 %v5039_v16, %v5040_v42  ;;  %vm5203_vm9 = vnez %v5202_v26  ;;  %vm5213_vm10 = vmmov %vm5199_vm11 }
 0x39c   :  { %v1725_v50 = vadd.f32 %v1724_v59, %v1718_v36  ;;  %v1820_v45 = vsub.f32 %v3324_v57, %v3624_v39  ;;  %v1613_v7 = vsub.f32 %v1546_v51, %v3306_v32  ;;  %v1614_v62 = vsub.f32 %v1550_v34, %v3429_v14  ;;  %vm5217_vm5 = vmmov %vm5213_vm10  ;;  %v5235_v36 = vld [vmem:[#allocation48_spill] sm:$0xff] }
 0x3a0   :  { %s1983_s11 = spop %1982 }
 0x3a1   :  { %s1985_s12 = spop %1984  ;;  %s1299_s13 = sadd.f32 %s1983_s11, %s1967_s30 }
 0x3a2   :  { %v4354_v19 = vpop.permute.xlu2 %1769  ;;  %s1316_s15 = sadd.f32 %s1985_s12, %s1969_s4 }
 0x3aa   :  { %v1556_v55 = vpop.permute.xlu2 %1555 }
 0x3ab   :  { %v1569_v37 = vsel %vm5176_vm15, %v1556_v55, %v1564_v13  ;;  %v1573_v3 = vsel %vm5193_vm0, %v1564_v13, %v1556_v55  ;;  %v1683_v13 = vsel %vm5190_vm12, %v1667_v1, 0.0  ;;  %v1684_v1 = vsel %vm5192_vm14, %v1668_v52, 0.0  ;;  %vm5204_vm15 = vmmov %vm5199_vm11 }
 0x3ac   :  { %v1627_v43 = vmul.f32 %v4055_v60, %v1569_v37  ;;  %v1628_v6 = vmul.f32 %v4068_v53, %v1573_v3  ;;  %v1757_v9 = vsel %vm5204_vm15, %v4324_v27, %v5198_v4  ;;  %v1785_v37 = vsub.f32 %v1753_v22, %v3281_v49  ;;  %vm5209_vm14 = vmmov %vm5199_vm11 }
 0x3ad   :  { %v1827_v27 = vand.u32 2147483647, %v1819_v35  ;;  %v1835_v52 = vmul.f32 %v4055_v60, %v4023_v54  ;;  %v1786_v18 = vsub.f32 %v1757_v9, %v3315_v17  ;;  %v4465_v4 = vand.u32 2147483647, %v1614_v62  ;;  %v5212_v35 = vld [vmem:[#allocation20_spill] sm:$0xff]  ;;  %vm5214_vm11 = vmmov %vm5213_vm10  ;;  %v1766_v9 = vpop.permute.xlu1 %1765 }
 0x3ae   :  { %v1635_v0 = vmul.f32 %v1627_v43, %v1619_v29  ;;  %v1636_v10 = vmul.f32 %v1628_v6, %v1620_v8  ;;  %v1726_v29 = vadd.f32 %v1725_v50, %v1719_v48  ;;  %v1857_v43 = vsel %vm3347_vm8, %v4407_v41, 0.0  ;;  %v5206_v6 = vld [vmem:[#allocation52_spill] sm:$0xff]  ;;  %vm5219_vm15 = vmmov %vm5217_vm5 }
 0x3af   :  { %v1828_v48 = vand.u32 2147483647, %v1820_v45  ;;  %v4463_v50 = vand.u32 2147483647, %v1613_v7  ;;  %v5210_v22 = vrot.slane %v3281_v49, 4  ;;  %vm5211_vm0 = vcmp.lt.s32.totalorder %v5042_v56, 4 }
 0x3b0   :  { %v1675_v33 = vsel %vm5190_vm12, %v1635_v0, 0.0  ;;  %v1676_v31 = vsel %vm5203_vm9, %v1636_v10, 0.0  ;;  %1727 = vadd.xlane.f32.xlu1 %v1726_v29  ;;  %vm5207_vm12 = vnez %v5206_v6  ;;  %v1793_v34 = vand.u32 2147483647, %v1785_v37  ;;  %vm5216_vm13 = vmmov %vm5211_vm0 }
 0x3b1   :  { %v1691_v55 = vadd.f32 %v1683_v13, %v1675_v33  ;;  %v1692_v3 = vadd.f32 %v1684_v1, %v1676_v31  ;;  %v1858_v59 = vsel %vm5207_vm12, %v4409_v47, 0.0  ;;  %v1836_v13 = vmul.f32 %v4371_v11, %v4068_v53  ;;  %vm5218_vm9 = vmmov %vm5211_vm0 }
 0x3b2   :  { %v1772_v8 = vpop.permute.xlu2 %1771  ;;  %v1589_v51 = vsel %vm5211_vm0, %v1581_v23, %v5210_v22  ;;  %v1754_v33 = vsel %vm5213_vm10, %v4328_v5, %v5212_v35  ;;  %v5215_v31 = vrot.slane %v3315_v17, 4  ;;  %v1758_v23 = vsel %vm5217_vm5, %v5212_v35, %v4328_v5 }
 0x3b3   :  { %v1698_v38 = vadd.f32 %v4326_v21, %v1691_v55  ;;  %v5208_v21 = vld [vmem:[#allocation18_spill] sm:$0xff]  ;;  %v4491_v29 = vmul.f32 %v1835_v52, %v1827_v27  ;;  %v1890_v1 = vsel %vm3347_vm8, %v4011_v15, 0.0  ;;  %v1891_v17 = vsel %vm5207_vm12, %v4198_v44, 0.0 }
 0x3b4   :  { %v1777_v10 = vsel %vm5209_vm14, %v5208_v21, %v4354_v19  ;;  %v1781_v26 = vsel %vm5214_vm11, %v4354_v19, %v5208_v21  ;;  %v1590_v49 = vsel %vm5216_vm13, %v1582_v40, %v5215_v31  ;;  %v1794_v19 = vand.u32 2147483647, %v1786_v18  ;;  %v1774_v40 = vpop.permute.xlu0 %1773  ;;  %vm5220_vm14 = vmmov %vm5211_vm0 }
 0x3b5   :  { %v4457_v0 = vadd.f32 %v1698_v38, %v1692_v3  ;;  %v1801_v55 = vmul.f32 %v4011_v15, %v1777_v10  ;;  %v4500_v45 = vmul.f32 %v1836_v13, %v1828_v48  ;;  %v1645_v7 = vsub.f32 %v1589_v51, %v3306_v32  ;;  %vm5222_vm0 = vmmov %vm5217_vm5 }
 0x3b6   :  { %v1787_v5 = vsub.f32 %v1754_v33, %v5040_v42  ;;  %v1802_v62 = vmul.f32 %v4198_v44, %v1781_v26  ;;  %v1605_v3 = vsel %vm5218_vm9, %v1597_v20, %v1591_v58  ;;  %v1646_v38 = vsub.f32 %v1590_v49, %v3429_v14  ;;  %vm5223_vm10 = vmmov %vm5222_vm0 }
 0x3b7   :  { %v1788_v27 = vsub.f32 %v1758_v23, %v3624_v39  ;;  %v1778_v52 = vsel %vm5219_vm15, %v4330_v28, %v1772_v8  ;;  %v1606_v42 = vsel %vm5220_vm14, %v1598_v30, %v1592_v12  ;;  %v1898_v15 = vadd.f32 %v1891_v17, %v1890_v1  ;;  %vm5225_vm11 = vmmov %vm5222_vm0 }
 0x3b8   :  { %v1859_v58 = vsel %vm3368_vm2, %v4491_v29, 0.0  ;;  %v1821_v20 = vsub.f32 %v3306_v32, %v5039_v16  ;;  %v1779_v39 = vsel %vm5222_vm0, %v1766_v9, %v1774_v40  ;;  %v1892_v44 = vsel %vm3368_vm2, %v4023_v54, 0.0  ;;  %vm5229_vm5 = vmmov %vm5222_vm0 }
 0x3b9   :  { %v1809_v48 = vmul.f32 %v1801_v55, %v1793_v34  ;;  %v1653_v12 = vand.u32 2147483647, %v1645_v7  ;;  %v1661_v30 = vmul.f32 %v4073_v2, %v1605_v3  ;;  %v1810_v13 = vmul.f32 %v1802_v62, %v1794_v19  ;;  %v5226_v55 = vld [vmem:[#allocation14_spill] sm:$0xff]  ;;  %vm5232_vm14 = vmmov %vm5222_vm0 }
 0x3ba   :  { %v1742_v37 = vpop.permute.xlu2 %1741  ;;  %v1803_v21 = vmul.f32 %v4023_v54, %v1778_v52  ;;  %v1654_v10 = vand.u32 2147483647, %v1646_v38  ;;  %v1662_v22 = vmul.f32 %v4153_v25, %v1606_v42  ;;  %v1795_v51 = vand.u32 2147483647, %v1787_v5  ;;  %vm5244_vm12 = vmmov %vm5229_vm5 }
 0x3bb   :  { %v1755_v56 = vsel %vm5223_vm10, %v1742_v37, %v4428_v46  ;;  %v1796_v35 = vand.u32 2147483647, %v1788_v27  ;;  %v1822_v33 = vsub.f32 %v3429_v14, %v3324_v57  ;;  %v1899_v26 = vadd.f32 %v1898_v15, %v1892_v44  ;;  %v5233_v44 = vld [vmem:[#allocation46_spill] sm:$0xff]  ;;  %vm5249_vm10 = vmmov %vm5229_vm5 }
 0x3bc   :  { %v1789_v34 = vsub.f32 %v1755_v56, %v5039_v16  ;;  %v1829_v31 = vand.u32 2147483647, %v1821_v20  ;;  %v1837_v49 = vmul.f32 %v4073_v2, %v4055_v60  ;;  %v1893_v29 = vsel %vm3379_vm6, %v4371_v11, 0.0 }
 0x3bd   :  { %v1849_v54 = vsel %vm3347_vm8, %v1809_v48, 0.0  ;;  %v1782_v1 = vsel %vm5225_vm11, %v1772_v8, %v4330_v28  ;;  %v1805_v17 = vmul.f32 %v4055_v60, %v1779_v39  ;;  %v1669_v19 = vmul.f32 %v1661_v30, %v1653_v12  ;;  %vm5250_vm11 = vmmov %vm5229_vm5 }
 0x3be   :  { %vm5227_vm13 = vnez %v5226_v55  ;;  %v1811_v7 = vmul.f32 %v1803_v21, %v1795_v51  ;;  %v1670_v62 = vmul.f32 %v1662_v22, %v1654_v10  ;;  %v1894_v38 = vsel %vm3388_vm3, %v4055_v60, 0.0 }
 0x3bf   :  { %v1850_v16 = vsel %vm5227_vm13, %v1810_v13, 0.0  ;;  %v1759_v27 = vsel %vm5229_vm5, %v4428_v46, %v1742_v37  ;;  %vm5230_vm9 = vcmp.lt.s32.totalorder %v2294_v61, 124  ;;  %v1900_v52 = vadd.f32 %v1899_v26, %v1893_v29  ;;  %v1752_v26 = vpop.permute.xlu1 %1751 }
 0x3c0   :  { %vm5231_vm15 = vmmov %vm5230_vm9  ;;  %v1804_v42 = vmul.f32 %v4371_v11, %v1782_v1  ;;  %v1797_v15 = vand.u32 2147483647, %v1789_v34  ;;  %v1865_v46 = vadd.f32 %v1857_v43, %v1849_v54  ;;  %v1845_v37 = vmul.f32 %v1837_v49, %v1829_v31 }
 0x3c1   :  { %v1783_v39 = vsel %vm5232_vm14, %v1774_v40, %v1766_v9  ;;  %vm5234_vm0 = vnez %v5233_v44  ;;  %v1851_v11 = vsel %vm3368_vm2, %v1811_v7, 0.0  ;;  %v1790_v48 = vsub.f32 %v1759_v27, %v3324_v57  ;;  %v5245_v27 = vld [vmem:[#allocation58_spill] sm:$0xff] }
 0x3c2   :  { %v1566_v5 = vpop.permute.xlu2 %1565  ;;  %v1866_v41 = vadd.f32 %v1858_v59, %v1850_v16  ;;  %vm5236_vm8 = vnez %v5235_v36  ;;  %v1895_v9 = vsel %vm3399_vm1, %v4068_v53, 0.0  ;;  %v1901_v18 = vadd.f32 %v1900_v52, %v1894_v38  ;;  %v1768_v38 = vpop.permute.xlu0 %1767 }
 0x3c3   :  { %v1570_v28 = vsel %vm5230_vm9, %v4426_v63, %v1566_v5  ;;  %v1574_v8 = vsel %vm5231_vm15, %v1566_v5, %v4426_v63  ;;  %v1685_v63 = vsel %vm5234_vm0, %v1669_v19, 0.0  ;;  %v1686_v43 = vsel %vm5236_vm8, %v1670_v62, 0.0 }
 0x3c4   :  { %v1629_v20 = vmul.f32 %v4073_v2, %v1570_v28  ;;  %v1630_v60 = vmul.f32 %v4153_v25, %v1574_v8  ;;  %v1812_v30 = vmul.f32 %v1804_v42, %v1796_v35  ;;  %v1813_v13 = vmul.f32 %v1805_v17, %v1797_v15  ;;  %v5247_v42 = vld [vmem:[#allocation12_spill] sm:$0xff] }
 0x3c5   :  { %v1860_v47 = vsel %vm3379_vm6, %v4500_v45, 0.0  ;;  %v1867_v6 = vadd.f32 %v1859_v58, %v1851_v11  ;;  %v1798_v21 = vand.u32 2147483647, %v1790_v48  ;;  %v1830_v10 = vand.u32 2147483647, %v1822_v33  ;;  %v5241_v33 = vld [vmem:[#allocation57_spill] sm:$0xff] }
 0x3c6   :  { %v1637_v56 = vmul.f32 %v1629_v20, %v4463_v50  ;;  %v1638_v12 = vmul.f32 %v1630_v60, %v4465_v4  ;;  %v5238_v50 = vld [vmem:[#allocation47_spill] sm:$0xff]  ;;  %v1838_v22 = vmul.f32 %v4153_v25, %v4068_v53  ;;  %v1806_v51 = vmul.f32 %v4068_v53, %v1783_v39 }
 0x3c7   :  { %vm5239_vm2 = vnez %v5238_v50  ;;  %v1873_v24 = vadd.f32 %v1866_v41, %v1865_v46  ;;  %v1902_v49 = vadd.f32 %v1901_v18, %v1895_v9  ;;  %v1852_v23 = vsel %vm3555_vm4, %v1812_v30, 0.0 }
 0x3c8   :  { %v1677_v57 = vsel %vm5195_vm7, %v1637_v56, 0.0  ;;  %v1678_v4 = vsel %vm5239_vm2, %v1638_v12, 0.0  ;;  %v1861_v45 = vsel %vm3388_vm3, %v1845_v37, 0.0  ;;  %v1853_v58 = vsel %vm3388_vm3, %v1813_v13, 0.0  ;;  %vm5243_vm7 = vmmov %vm5229_vm5 }
 0x3c9   :  { %v1693_v59 = vadd.f32 %v1685_v63, %v1677_v57  ;;  %v1694_v34 = vadd.f32 %v1686_v43, %v1678_v4  ;;  %vm5242_vm6 = vnez %v5241_v33  ;;  %v1874_v54 = vadd.f32 %v1873_v24, %v1867_v6  ;;  %v5251_v43 = vld [vmem:[#allocation17_spill] sm:$0xff] }
 0x3ca   :  { %v1744_v35 = vpop.permute.xlu2 %1743  ;;  %v1896_v53 = vsel %vm5242_vm6, %v4073_v2, 0.0  ;;  %v1846_v19 = vmul.f32 %v1838_v22, %v1830_v10  ;;  %v1814_v55 = vmul.f32 %v1806_v51, %v1798_v21  ;;  %v1868_v16 = vadd.f32 %v1860_v47, %v1852_v23  ;;  %v1518_v18 = vpop.xlane.xlu0 %1517 }
 0x3cb   :  { %v1700_v31 = vadd.f32 %v4457_v0, %v1693_v59  ;;  %v1756_v1 = vsel %vm5243_vm7, %v1744_v35, %v1752_v26  ;;  %v1760_v0 = vsel %vm5244_vm12, %v1752_v26, %v1744_v35  ;;  %v1869_v7 = vadd.f32 %v1861_v45, %v1853_v58 }
 0x3cc   :  { %v1903_v5 = vadd.f32 %v1902_v49, %v1896_v53  ;;  %v1791_v62 = vsub.f32 %v1756_v1, %v3306_v32  ;;  %v1792_v3 = vsub.f32 %v1760_v0, %v3429_v14  ;;  %vm5246_vm3 = vnez %v5245_v27 }
 0x3cd   :  { %v1701_v17 = vadd.f32 %v1700_v31, %v1694_v34  ;;  %v1897_v28 = vsel %vm5246_vm3, %v4153_v25, 0.0  ;;  %v1875_v8 = vadd.f32 %v1874_v54, %v1868_v16  ;;  %v1862_v52 = vsel %vm3399_vm1, %v1846_v19, 0.0 }
 0x3ce   :  { %vm5248_vm4 = vnez %v5247_v42  ;;  %v1904_v14 = vadd.f32 %v1903_v5, %v1897_v28  ;;  %v1799_v37 = vand.u32 2147483647, %v1791_v62  ;;  %v1800_v39 = vand.u32 2147483647, %v1792_v3 }
 0x3cf   :  { %1702 = vadd.xlane.f32.xlu2 %v1701_v17  ;;  %v1854_v15 = vsel %vm5248_vm4, %v1814_v55, 0.0  ;;  %v1876_v60 = vadd.f32 %v1875_v8, %v1869_v7  ;;  %vm5252_vm1 = vnez %v5251_v43  ;;  %v1519_v30 = vrot.slane %v1518_v18, 4 }
 0x3d0   :  { %v1870_v11 = vadd.f32 %v1862_v52, %v1854_v15  ;;  %vm1915_vm13 = vcmp.eq.s32.totalorder %v2294_v61, 0  ;;  %v1916_v52 = vstv %s1299_s13  ;;  %vm1919_vm5 = vcmp.eq.s32.totalorder %v2294_v61, 1 }
 0x3d1   :  { %v1520_v13 = vadd.f32 %v1519_v30, %v1518_v18  ;;  %v1920_v42 = vstv %s1316_s15  ;;  %vm1923_vm9 = vcmp.eq.s32.totalorder %v2294_v61, 2  ;;  %vm1927_vm15 = vcmp.eq.s32.totalorder %v2294_v61, 3 }
 0x3d2   :  { %v1776_v20 = vpop.permute.xlu2 %1775  ;;  %v1877_v12 = vadd.f32 %v1876_v60, %v1870_v11  ;;  %v1921_v60 = vsel %vm1919_vm5, %v1920_v42, 0.0  ;;  %vm1931_vm14 = vcmp.eq.s32.totalorder %v2294_v61, 4  ;;  %vm1935_vm0 = vcmp.eq.s32.totalorder %v2294_v61, 5 }
 0x3d3   :  { %v1780_v46 = vsel %vm5249_vm10, %v1768_v38, %v1776_v20  ;;  %v1784_v32 = vsel %vm5250_vm11, %v1776_v20, %v1768_v38  ;;  %v1917_v20 = vsel %vm1915_vm13, %v1916_v52, 0.0  ;;  %vm1939_vm8 = vcmp.eq.s32.totalorder %v2294_v61, 6 }
 0x3d4   :  { %v1807_v44 = vmul.f32 %v4073_v2, %v1780_v46  ;;  %v1808_v63 = vmul.f32 %v4153_v25, %v1784_v32  ;;  %v1521_v2 = vrot.slane %v1520_v13, 2  ;;  %v1922_v32 = vadd.f32 %v1921_v60, %v1917_v20 }
 0x3d5   :  { %vm1943_vm2 = vcmp.eq.s32.totalorder %v2294_v61, 7 }
 0x3d6   :  { %v1815_v48 = vmul.f32 %v1807_v44, %v1799_v37  ;;  %v1816_v56 = vmul.f32 %v1808_v63, %v1800_v39  ;;  %v1522_v50 = vadd.f32 %v1521_v2, %v1520_v13 }
 0x3d7   :  { %1905 = vadd.xlane.f32.xlu2 %v1904_v14 }
 0x3d8   :  { %v1855_v41 = vsel %vm5242_vm6, %v1815_v48, 0.0  ;;  %v1856_v40 = vsel %vm5252_vm1, %v1816_v56, 0.0  ;;  %v1523_v6 = vrot.slane %v1522_v50, 1 }
 0x3d9   :  { %v1878_v36 = vadd.f32 %v1877_v12, %v1855_v41 }
 0x3da   :  { %v1524_v10 = vadd.f32 %v1523_v6, %v1522_v50 }
 0x3db   :  { %v1879_v9 = vadd.f32 %v1878_v36, %v1856_v40 }
 0x3dd   :  { %1880 = vadd.xlane.f32.xlu0 %v1879_v9 }
 0x3fa   :  { %v1493_v57 = vpop.xlane.xlu1 %1492 }
 0x3fb   :  { %v1494_v25 = vrot.slane %v1493_v57, 4 }
 0x3fd   :  { %v1495_v4 = vadd.f32 %v1494_v25, %v1493_v57 }
 0x3ff   :  { %v1496_v47 = vrot.slane %v1495_v4, 2 }
 0x401   :  { %v1497_v59 = vadd.f32 %v1496_v47, %v1495_v4 }
 0x403   :  { %v1498_v21 = vrot.slane %v1497_v59, 1 }
 0x405   :  { %v1499_v22 = vadd.f32 %v1498_v21, %v1497_v59 }
 0x407   :  { %1986 = vpush %v1499_v22 }
 0x408   :  { %1988 = vpush %v1524_v10 }
 0x423   :  { %v1728_v51 = vpop.xlane.xlu1 %1727 }
 0x424   :  { %v1729_v35 = vrot.slane %v1728_v51, 4 }
 0x426   :  { %v1730_v26 = vadd.f32 %v1729_v35, %v1728_v51 }
 0x428   :  { %v1731_v24 = vrot.slane %v1730_v26, 2 }
 0x42a   :  { %v1732_v49 = vadd.f32 %v1731_v24, %v1730_v26 }
 0x42c   :  { %v1733_v45 = vrot.slane %v1732_v49, 1 }
 0x42e   :  { %v1734_v1 = vadd.f32 %v1733_v45, %v1732_v49 }
 0x438   :  { %s1987_s14 = spop %1986 }
 0x439   :  { %s1501_s16 = sadd.f32 %s1987_s14, %s1971_s5  ;;  %s1989_s17 = spop %1988 }
 0x43a   :  { %s1526_s19 = sadd.f32 %s1989_s17, %s1973_s6 }
 0x43b   :  { %v1924_v15 = vstv %s1501_s16 }
 0x43c   :  { %v1925_v46 = vsel %vm1923_vm9, %v1924_v15, 0.0  ;;  %v1928_v37 = vstv %s1526_s19 }
 0x43d   :  { %v1926_v14 = vadd.f32 %v1925_v46, %v1922_v32  ;;  %v1929_v44 = vsel %vm1927_vm15, %v1928_v37, 0.0 }
 0x43f   :  { %v1930_v11 = vadd.f32 %v1929_v44, %v1926_v14 }
 0x442   :  { %v1703_v34 = vpop.xlane.xlu2 %1702 }
 0x443   :  { %v1704_v31 = vrot.slane %v1703_v34, 4 }
 0x445   :  { %v1705_v29 = vadd.f32 %v1704_v31, %v1703_v34 }
 0x447   :  { %v1706_v23 = vrot.slane %v1705_v29, 2 }
 0x449   :  { %v1707_v58 = vadd.f32 %v1706_v23, %v1705_v29 }
 0x44a   :  { %v1906_v33 = vpop.xlane.xlu2 %1905 }
 0x44b   :  { %v1907_v53 = vrot.slane %v1906_v33, 4  ;;  %v1708_v54 = vrot.slane %v1707_v58, 1 }
 0x44d   :  { %v1908_v0 = vadd.f32 %v1907_v53, %v1906_v33  ;;  %v1709_v17 = vadd.f32 %v1708_v54, %v1707_v58 }
 0x44f   :  { %1990 = vpush %v1709_v17  ;;  %v1909_v19 = vrot.slane %v1908_v0, 2 }
 0x450   :  { %1992 = vpush %v1734_v1  ;;  %v1881_v55 = vpop.xlane.xlu0 %1880 }
 0x451   :  { %v1882_v16 = vrot.slane %v1881_v55, 4  ;;  %v1910_v5 = vadd.f32 %v1909_v19, %v1908_v0 }
 0x453   :  { %v1883_v7 = vadd.f32 %v1882_v16, %v1881_v55  ;;  %v1911_v38 = vrot.slane %v1910_v5, 1 }
 0x455   :  { %v1884_v62 = vrot.slane %v1883_v7, 2  ;;  %v1912_v8 = vadd.f32 %v1911_v38, %v1910_v5 }
 0x457   :  { %v1885_v3 = vadd.f32 %v1884_v62, %v1883_v7 }
 0x459   :  { %v1886_v27 = vrot.slane %v1885_v3, 1 }
 0x45b   :  { %v1887_v28 = vadd.f32 %v1886_v27, %v1885_v3 }
 0x45d   :  { %1994 = vpush %v1887_v28 }
 0x45e   :  { %1996 = vpush %v1912_v8 }
 0x480   :  { %s1991_s18 = spop %1990 }
 0x481   :  { %s1711_s20 = sadd.f32 %s1991_s18, %s4634_s7  ;;  %s1993_s21 = spop %1992 }
 0x482   :  { %s1736_s22 = sadd.f32 %s1993_s21, %s4636_s8 }
 0x483   :  { %v1932_v39 = vstv %s1711_s20 }
 0x484   :  { %v1933_v63 = vsel %vm1931_vm14, %v1932_v39, 0.0  ;;  %v1936_v56 = vstv %s1736_s22 }
 0x485   :  { %v1934_v48 = vadd.f32 %v1933_v63, %v1930_v11  ;;  %v1937_v12 = vsel %vm1935_vm0, %v1936_v56, 0.0 }
 0x487   :  { %v1938_v41 = vadd.f32 %v1937_v12, %v1934_v48 }
 0x48e   :  { %s1995_s23 = spop %1994 }
 0x48f   :  { %s1889_s24 = sadd.f32 %s1995_s23, %s4638_s9  ;;  %s1997_s25 = spop %1996 }
 0x490   :  { %s1914_s26 = sadd.f32 %s1997_s25, %s4640_s10 }
 0x491   :  { %v1940_v36 = vstv %s1889_s24 }
 0x492   :  { %v1941_v43 = vsel %vm1939_vm8, %v1940_v36, 0.0  ;;  %v1944_v40 = vstv %s1914_s26 }
 0x493   :  { %v1942_v9 = vadd.f32 %v1941_v43, %v1938_v41  ;;  %v1945_v18 = vsel %vm1943_vm2, %v1944_v40, 0.0 }
 0x495   :  { %v1946_v30 = vadd.f32 %v1945_v18, %v1942_v9 }
 0x497   :  { %1947 = vst [vmem:[#allocation8] sm:$0x1] %v1946_v30 }
 0x498   :  { %1958 = dma.vmem_to_hbm [thread:$0]  %s1954_s27, 16, %s1956_s28, [#allocation4]  }
 0x499   :  { %2124 = dma.done.wait [#allocation4], 16  }
 0x49a   :  { %2125 = vsyncadd [#allocation4], 4294967280 }
 0x49b   :  { %1963 = vsyncpa [#allocation3], 1 }
 0x49c   :  { %1964 = vsyncpa [#allocation6], 1 }
 0x49d   :  { %1965 = vsyncpa [#allocation4], 1 }

</bundles_post_ra>
